<compile_context>
chip_gen: v6e
topology: v6e:2x2x1
jax: 0.10.0
libtpu: 0.0.40
codegen_flags: <defaults>
</compile_context>

<pallas_src>
import functools

import jax
import jax.numpy as jnp
from jax import lax
from jax.experimental import pallas as pl
from jax.experimental.pallas import tpu as pltpu

LN_EPS = 1e-5


def _erf(x):
    # Abramowitz & Stegun 7.1.26 rational approximation (|err| < 1.5e-7).
    p = 0.3275911
    a1, a2, a3, a4, a5 = (0.254829592, -0.284496736, 1.421413741,
                          -1.453152027, 1.061405429)
    s = jnp.where(x < 0.0, -1.0, 1.0)
    ax = jnp.abs(x)
    t = 1.0 / (1.0 + p * ax)
    poly = ((((a5 * t + a4) * t + a3) * t + a2) * t + a1) * t
    return s * (1.0 - poly * jnp.exp(-ax * ax))


def _gelu_exact(x):
    return 0.5 * x * (1.0 + _erf(x * 0.7071067811865476))


def _layernorm(x, w, b):
    mu = jnp.mean(x, axis=-1, keepdims=True)
    xc = x - mu
    var = jnp.mean(xc * xc, axis=-1, keepdims=True)
    return xc * lax.rsqrt(var + LN_EPS) * w + b


def _block_kernel(x_ref, n1w_ref, n1b_ref, wqkv_ref, wproj_ref, bproj_ref,
                  n2w_ref, n2b_ref, wfc1_ref, bfc1_ref, wfc2_ref, bfc2_ref,
                  out_ref, attn_ref, ao_ref,
                  *, num_heads, scale, n_valid, mm_dtype):
    x = x_ref[...].astype(jnp.float32)           # (Np, C), batch dim squeezed
    Np, C = x.shape
    hd = C // num_heads

    # ---- norm1 ----
    x1 = _layernorm(x, n1w_ref[...], n1b_ref[...])

    # ---- attention: QKV projection (bf16 operands, f32 accumulation) ----
    qkv = jnp.dot(x1.astype(mm_dtype), wqkv_ref[...],
                  preferred_element_type=jnp.float32)          # (Np, 3C) f32

    # Additive bias that zeroes padded key columns after softmax.
    if n_valid < Np:
        col = lax.broadcasted_iota(jnp.int32, (1, Np), 1)
        key_bias = jnp.where(col < n_valid, 0.0, -1e30).astype(jnp.float32)
    else:
        key_bias = None

    for h in range(num_heads):                   # static unroll over heads
        qh = qkv[:, h * hd:(h + 1) * hd]
        kh = qkv[:, C + h * hd:C + (h + 1) * hd]
        vh = qkv[:, 2 * C + h * hd:2 * C + (h + 1) * hd]
        # q @ k^T without an explicit transpose (contract last dims).
        s = lax.dot_general(qh.astype(mm_dtype), kh.astype(mm_dtype),
                            (((1,), (1,)), ((), ())),
                            preferred_element_type=jnp.float32) * scale
        if key_bias is not None:
            s = s + key_bias
        s = s - jnp.max(s, axis=-1, keepdims=True)
        e = jnp.exp(s)
        p = e * pl.reciprocal(jnp.sum(e, axis=-1, keepdims=True))
        attn_ref[h] = p                          # lane-dense (Np multiple of 128)
        # Stage this head's output into its lane slice of the (Np, C) scratch.
        ao_ref[:, h * hd:(h + 1) * hd] = jnp.dot(
            p.astype(mm_dtype), vh.astype(mm_dtype),
            preferred_element_type=jnp.float32)

    # Single K=C output projection (full MXU contraction depth).
    attn_out = jnp.dot(ao_ref[...].astype(mm_dtype), wproj_ref[...],
                       preferred_element_type=jnp.float32) + bproj_ref[...]
    x2 = x1 + attn_out                           # first residual (on normed x)

    # ---- norm2 + MLP ----
    xn2 = _layernorm(x2, n2w_ref[...], n2b_ref[...])
    h1 = jnp.dot(xn2.astype(mm_dtype), wfc1_ref[...],
                 preferred_element_type=jnp.float32) + bfc1_ref[...]
    g = _gelu_exact(h1)
    m = jnp.dot(g.astype(mm_dtype), wfc2_ref[...],
                preferred_element_type=jnp.float32) + bfc2_ref[...]

    out_ref[...] = (x2 + m).astype(out_ref.dtype)


def block_forward(x, params, *, num_heads, matmul_dtype=jnp.bfloat16):
    """Pallas implementation of Block.forward -> (x_out, attention_weights)."""
    x = jnp.asarray(x, jnp.float32)              # module does x.to(float32)
    B, N, C = x.shape
    hidden = params["fc1_w"].shape[0]
    hd = C // num_heads
    scale = hd ** -0.5
    mm_itemsize = jax.dtypes.canonicalize_dtype(matmul_dtype).itemsize

    # Pad N to a lane multiple so score tiles / reductions / weight stores are
    # lane-dense (unmasked vst); padded key columns are masked in-kernel.
    Np = ((N + 127) // 128) * 128
    x_p = jnp.pad(x, ((0, 0), (0, Np - N), (0, 0))) if Np != N else x

    # Layout plumbing (outside the kernel): (in, out) weights in MXU dtype,
    # (1, C) f32 vectors for LayerNorm params / biases.
    n1w = params["norm1_w"].reshape(1, C).astype(jnp.float32)
    n1b = params["norm1_b"].reshape(1, C).astype(jnp.float32)
    wqkv = params["qkv_w"].T.astype(matmul_dtype)            # (C, 3C)
    wproj = params["proj_w"].T.astype(matmul_dtype)          # (C, C)
    bproj = params["proj_b"].reshape(1, C).astype(jnp.float32)
    n2w = params["norm2_w"].reshape(1, C).astype(jnp.float32)
    n2b = params["norm2_b"].reshape(1, C).astype(jnp.float32)
    wfc1 = params["fc1_w"].T.astype(matmul_dtype)            # (C, hidden)
    bfc1 = params["fc1_b"].reshape(1, hidden).astype(jnp.float32)
    wfc2 = params["fc2_w"].T.astype(matmul_dtype)            # (hidden, C)
    bfc2 = params["fc2_b"].reshape(1, C).astype(jnp.float32)

    kernel = functools.partial(_block_kernel, num_heads=num_heads, scale=scale,
                               n_valid=N, mm_dtype=matmul_dtype)

    def bcast(shape):
        zeros = (0,) * len(shape)
        return pl.BlockSpec(shape, lambda b: zeros)

    # --- audited VMEM budget: double-buffered blocks + in-kernel temporaries ---
    weight_bytes = (mm_itemsize * (3 * C * C + C * C + 2 * C * hidden)
                    + 4 * (6 * C + hidden))
    block_bytes = (4 * Np * C                                   # x block
                   + weight_bytes
                   + 4 * (Np * C + num_heads * Np * Np))        # out + attn blocks
    interm_bytes = 4 * (Np * 3 * C + 2 * Np * hidden + 4 * Np * Np + 6 * Np * C)
    vmem_limit = int(min(max(2 * block_bytes + interm_bytes + (2 << 20),
                             32 << 20),
                         64 << 20))   # 64 MiB cap: valid on v5e/v6e/v7x

    flops = 2 * B * (Np * C * 3 * C                  # qkv matmul
                     + num_heads * (2 * Np * Np * hd)  # qk^T and attn@v
                     + Np * C * C                     # output projection
                     + 2 * Np * C * hidden)           # fc1 + fc2
    transcendentals = B * (num_heads * Np * Np + Np * hidden)
    bytes_accessed = (4 * B * Np * C                  # x in
                      + weight_bytes
                      + 4 * B * Np * C                # x out
                      + 4 * B * num_heads * Np * Np)  # attention weights out

    out_p, weights_p = pl.pallas_call(
        kernel,
        out_shape=(jax.ShapeDtypeStruct((B, Np, C), jnp.float32),
                   jax.ShapeDtypeStruct((B, num_heads, Np, Np), jnp.float32)),
        grid_spec=pltpu.PrefetchScalarGridSpec(
            num_scalar_prefetch=0,
            grid=(B,),
            in_specs=[
                pl.BlockSpec((None, Np, C), lambda b: (b, 0, 0)),   # x
                bcast((1, C)), bcast((1, C)),                       # norm1 w/b
                bcast((C, 3 * C)),                                  # qkv weight
                bcast((C, C)), bcast((1, C)),                       # proj w/b
                bcast((1, C)), bcast((1, C)),                       # norm2 w/b
                bcast((C, hidden)), bcast((1, hidden)),             # fc1 w/b
                bcast((hidden, C)), bcast((1, C)),                  # fc2 w/b
            ],
            out_specs=(
                pl.BlockSpec((None, Np, C), lambda b: (b, 0, 0)),
                pl.BlockSpec((None, num_heads, Np, Np),
                             lambda b: (b, 0, 0, 0)),
            ),
            scratch_shapes=[pltpu.VMEM((Np, C), jnp.float32)],      # head concat
        ),
        compiler_params=pltpu.CompilerParams(
            dimension_semantics=("parallel",),
            vmem_limit_bytes=vmem_limit),
        cost_estimate=pl.CostEstimate(flops=int(flops),
                                      transcendentals=int(transcendentals),
                                      bytes_accessed=int(bytes_accessed)),
    )(x_p, n1w, n1b, wqkv, wproj, bproj, n2w, n2b, wfc1, bfc1, wfc2, bfc2)

    return out_p[:, :N, :], weights_p[:, :, :N, :N]


def block_forward_ref(x, params, *, num_heads):
    """Pure-JAX f32 reference matching the PyTorch Block.forward exactly."""
    x = jnp.asarray(x, jnp.float32)
    B, N, C = x.shape
    hd = C // num_heads
    scale = hd ** -0.5

    def ln(v, w, b):
        mu = jnp.mean(v, axis=-1, keepdims=True)
        var = jnp.mean((v - mu) ** 2, axis=-1, keepdims=True)
        return (v - mu) / jnp.sqrt(var + LN_EPS) * w + b

    with jax.default_matmul_precision("highest"):     # true-f32 reference
        x1 = ln(x, params["norm1_w"], params["norm1_b"])
        qkv = x1 @ params["qkv_w"].T                                 # (B, N, 3C)
        qkv = qkv.reshape(B, N, 3, num_heads, hd).transpose(2, 0, 3, 1, 4)
        q, k, v = qkv[0], qkv[1], qkv[2]                             # (B, nh, N, hd)
        attn = jnp.einsum("bhnd,bhmd->bhnm", q, k) * scale
        attn = jax.nn.softmax(attn, axis=-1)
        weights = attn
        ao = jnp.einsum("bhnm,bhmd->bhnd", attn, v)
        ao = ao.transpose(0, 2, 1, 3).reshape(B, N, C)
        ao = ao @ params["proj_w"].T + params["proj_b"]
        x2 = x1 + ao
        xn2 = ln(x2, params["norm2_w"], params["norm2_b"])
        h1 = xn2 @ params["fc1_w"].T + params["fc1_b"]
        g = jax.nn.gelu(h1, approximate=False)                       # exact GELU
        m = g @ params["fc2_w"].T + params["fc2_b"]
    return x2 + m, weights


if __name__ == "__main__":
    B, N, C = 2, 8, 32
    num_heads = 4
    hidden = int(C * 4.0)

    key = jax.random.PRNGKey(0)
    ks = jax.random.split(key, 12)

    def rnd(k, shape, s):
        return s * jax.random.normal(k, shape, dtype=jnp.float32)

    x = rnd(ks[0], (B, N, C), 1.0)
    params = dict(
        norm1_w=1.0 + 0.1 * jax.random.normal(ks[1], (C,), dtype=jnp.float32),
        norm1_b=0.1 * jax.random.normal(ks[2], (C,), dtype=jnp.float32),
        qkv_w=rnd(ks[3], (3 * C, C), C ** -0.5),
        proj_w=rnd(ks[4], (C, C), C ** -0.5),
        proj_b=rnd(ks[5], (C,), 0.5),
        norm2_w=1.0 + 0.1 * jax.random.normal(ks[6], (C,), dtype=jnp.float32),
        norm2_b=0.1 * jax.random.normal(ks[7], (C,), dtype=jnp.float32),
        fc1_w=rnd(ks[8], (hidden, C), C ** -0.5),
        fc1_b=rnd(ks[9], (hidden,), 0.5),
        fc2_w=rnd(ks[10], (C, hidden), hidden ** -0.5),
        fc2_b=rnd(ks[11], (C,), 0.5),
    )

    # Production path: bf16 MXU operands with f32 accumulation (default).
    out, weights = block_forward(x, params, num_heads=num_heads)
    out, weights = jax.block_until_ready((out, weights))

    out_ref, weights_ref = block_forward_ref(x, params, num_heads=num_heads)

    assert out.shape == (B, N, C)
    assert weights.shape == (B, num_heads, N, N)
    assert bool(jnp.all(jnp.isfinite(out))) and bool(jnp.all(jnp.isfinite(weights)))
    # Rows of the returned attention weights must sum to 1 over the *real* keys
    # (verifies the padded-key masking).
    assert jnp.allclose(jnp.sum(weights, axis=-1), 1.0, atol=1e-3), (
        float(jnp.max(jnp.abs(jnp.sum(weights, axis=-1) - 1.0))))
    # Tolerances account for bf16 matmul operands (f32 accumulation) vs. the
    # all-f32 reference; structural bugs produce O(1) errors and are caught.
    assert jnp.allclose(weights, weights_ref, rtol=5e-2, atol=3e-2), (
        float(jnp.max(jnp.abs(weights - weights_ref))))
    assert jnp.allclose(out, out_ref, rtol=1e-1, atol=3e-1), (
        float(jnp.max(jnp.abs(out - out_ref))))

    print("KERNEL_OK")
</pallas_src>

<mosaic_0001>
module attributes {stable_mosaic.version = 11 : i64} {
  func.func @_block_kernel(%arg0: i32, %arg1: memref<1x128x32xf32, #tpu.memory_space<vmem>>, %arg2: memref<1x32xf32, #tpu.memory_space<vmem>>, %arg3: memref<1x32xf32, #tpu.memory_space<vmem>>, %arg4: memref<32x96xbf16, #tpu.memory_space<vmem>>, %arg5: memref<32x32xbf16, #tpu.memory_space<vmem>>, %arg6: memref<1x32xf32, #tpu.memory_space<vmem>>, %arg7: memref<1x32xf32, #tpu.memory_space<vmem>>, %arg8: memref<1x32xf32, #tpu.memory_space<vmem>>, %arg9: memref<32x128xbf16, #tpu.memory_space<vmem>>, %arg10: memref<1x128xf32, #tpu.memory_space<vmem>>, %arg11: memref<128x32xbf16, #tpu.memory_space<vmem>>, %arg12: memref<1x32xf32, #tpu.memory_space<vmem>>, %arg13: memref<1x128x32xf32, #tpu.memory_space<vmem>>, %arg14: memref<1x4x128x128xf32, #tpu.memory_space<vmem>>, %arg15: memref<128x32xf32, #tpu.memory_space<vmem>>) attributes {dimension_semantics = [#tpu.dimension_semantics<parallel>], iteration_bounds = array<i64: 2>, scalar_prefetch = 0 : i64, scratch_operands = 1 : i64, tpu.core_type = #tpu.core_type<tc>, window_params = [{transform_indices = @transform_0, window_bounds = array<i64: 1, 128, 32>}, {pipeline_mode = #tpu.pipeline_mode<synchronous>, transform_indices = @transform_1, window_bounds = array<i64: 1, 32>}, {pipeline_mode = #tpu.pipeline_mode<synchronous>, transform_indices = @transform_2, window_bounds = array<i64: 1, 32>}, {pipeline_mode = #tpu.pipeline_mode<synchronous>, transform_indices = @transform_3, window_bounds = array<i64: 32, 96>}, {pipeline_mode = #tpu.pipeline_mode<synchronous>, transform_indices = @transform_4, window_bounds = array<i64: 32, 32>}, {pipeline_mode = #tpu.pipeline_mode<synchronous>, transform_indices = @transform_5, window_bounds = array<i64: 1, 32>}, {pipeline_mode = #tpu.pipeline_mode<synchronous>, transform_indices = @transform_6, window_bounds = array<i64: 1, 32>}, {pipeline_mode = #tpu.pipeline_mode<synchronous>, transform_indices = @transform_7, window_bounds = array<i64: 1, 32>}, {pipeline_mode = #tpu.pipeline_mode<synchronous>, transform_indices = @transform_8, window_bounds = array<i64: 32, 128>}, {pipeline_mode = #tpu.pipeline_mode<synchronous>, transform_indices = @transform_9, window_bounds = array<i64: 1, 128>}, {pipeline_mode = #tpu.pipeline_mode<synchronous>, transform_indices = @transform_10, window_bounds = array<i64: 128, 32>}, {pipeline_mode = #tpu.pipeline_mode<synchronous>, transform_indices = @transform_11, window_bounds = array<i64: 1, 32>}, {transform_indices = @transform_12, window_bounds = array<i64: 1, 128, 32>}, {transform_indices = @transform_13, window_bounds = array<i64: 1, 4, 128, 128>}]} {
    %c0 = arith.constant 0 : index
    %c0_0 = arith.constant 0 : index
    %c0_1 = arith.constant 0 : index
    %0 = vector.load %arg1[%c0, %c0_0, %c0_1] : memref<1x128x32xf32, #tpu.memory_space<vmem>>, vector<1x128x32xf32>
    %1 = vector.shape_cast %0 : vector<1x128x32xf32> to vector<128x32xf32>
    %c0_2 = arith.constant 0 : index
    %c0_3 = arith.constant 0 : index
    %2 = vector.load %arg2[%c0_2, %c0_3] : memref<1x32xf32, #tpu.memory_space<vmem>>, vector<1x32xf32>
    %c0_4 = arith.constant 0 : index
    %c0_5 = arith.constant 0 : index
    %3 = vector.load %arg3[%c0_4, %c0_5] : memref<1x32xf32, #tpu.memory_space<vmem>>, vector<1x32xf32>
    %cst = arith.constant dense<0.000000e+00> : vector<128xf32>
    %4 = vector.multi_reduction <add>, %1, %cst [1] : vector<128x32xf32> to vector<128xf32>
    %5 = vector.shape_cast %4 : vector<128xf32> to vector<128x1xf32>
    %cst_6 = arith.constant 3.200000e+01 : f32
    %6 = vector.broadcast %cst_6 : f32 to vector<128x1xf32>
    %7 = arith.divf %5, %6 : vector<128x1xf32>
    %8 = vector.broadcast %7 : vector<128x1xf32> to vector<128x32xf32>
    %9 = arith.subf %1, %8 : vector<128x32xf32>
    %10 = arith.mulf %9, %9 : vector<128x32xf32>
    %cst_7 = arith.constant dense<0.000000e+00> : vector<128xf32>
    %11 = vector.multi_reduction <add>, %10, %cst_7 [1] : vector<128x32xf32> to vector<128xf32>
    %12 = vector.shape_cast %11 : vector<128xf32> to vector<128x1xf32>
    %cst_8 = arith.constant 3.200000e+01 : f32
    %13 = vector.broadcast %cst_8 : f32 to vector<128x1xf32>
    %14 = arith.divf %12, %13 : vector<128x1xf32>
    %cst_9 = arith.constant 9.99999974E-6 : f32
    %15 = vector.broadcast %cst_9 : f32 to vector<128x1xf32>
    %16 = arith.addf %14, %15 : vector<128x1xf32>
    %17 = math.rsqrt %16 : vector<128x1xf32>
    %18 = vector.broadcast %17 : vector<128x1xf32> to vector<128x32xf32>
    %19 = arith.mulf %9, %18 : vector<128x32xf32>
    %20 = vector.broadcast %2 : vector<1x32xf32> to vector<128x32xf32>
    %21 = arith.mulf %19, %20 : vector<128x32xf32>
    %22 = vector.broadcast %3 : vector<1x32xf32> to vector<128x32xf32>
    %23 = arith.addf %21, %22 : vector<128x32xf32>
    %24 = arith.truncf %23 : vector<128x32xf32> to vector<128x32xbf16>
    %c0_10 = arith.constant 0 : index
    %c0_11 = arith.constant 0 : index
    %25 = vector.load %arg4[%c0_10, %c0_11] : memref<32x96xbf16, #tpu.memory_space<vmem>>, vector<32x96xbf16>
    %cst_12 = arith.constant dense<0.000000e+00> : vector<128x96xf32>
    %26 = tpu.matmul %24, %25, %cst_12 {dimension_numbers = #tpu.dot_dimension_numbers<[1], [0], [0], [1], [0, 0, 1, 1], [], []>} : vector<128x32xbf16>, vector<32x96xbf16>, vector<128x96xf32> -> vector<128x96xf32>
    %27 = tpu.iota {dimensions = array<i32: 1>} : vector<1x128xi32>
    %c8_i32 = arith.constant 8 : i32
    %28 = vector.broadcast %c8_i32 : i32 to vector<1x128xi32>
    %29 = arith.cmpi slt, %27, %28 : vector<1x128xi32>
    %cst_13 = arith.constant 0.000000e+00 : f32
    %cst_14 = arith.constant -1.000000e+30 : f32
    %30 = vector.broadcast %cst_13 : f32 to vector<1x128xf32>
    %31 = vector.broadcast %cst_14 : f32 to vector<1x128xf32>
    %32 = arith.select %29, %30, %31 : vector<1x128xi1>, vector<1x128xf32>
    %33 = vector.extract_strided_slice %26 {offsets = [0, 0], sizes = [128, 8], strides = [1, 1]} : vector<128x96xf32> to vector<128x8xf32>
    %34 = vector.extract_strided_slice %26 {offsets = [0, 32], sizes = [128, 8], strides = [1, 1]} : vector<128x96xf32> to vector<128x8xf32>
    %35 = vector.extract_strided_slice %26 {offsets = [0, 64], sizes = [128, 8], strides = [1, 1]} : vector<128x96xf32> to vector<128x8xf32>
    %36 = arith.truncf %33 : vector<128x8xf32> to vector<128x8xbf16>
    %37 = arith.truncf %34 : vector<128x8xf32> to vector<128x8xbf16>
    %cst_15 = arith.constant dense<0.000000e+00> : vector<128x128xf32>
    %38 = tpu.matmul %36, %37, %cst_15 {dimension_numbers = #tpu.dot_dimension_numbers<[1], [1], [0], [0], [0, 0, 1, 0], [], []>} : vector<128x8xbf16>, vector<128x8xbf16>, vector<128x128xf32> -> vector<128x128xf32>
    %cst_16 = arith.constant 0.353553385 : f32
    %39 = vector.broadcast %cst_16 : f32 to vector<128x128xf32>
    %40 = arith.mulf %38, %39 : vector<128x128xf32>
    %41 = vector.broadcast %32 : vector<1x128xf32> to vector<128x128xf32>
    %42 = arith.addf %40, %41 : vector<128x128xf32>
    %cst_17 = arith.constant dense<0xFF800000> : vector<128xf32>
    %43 = vector.multi_reduction <maximumf>, %42, %cst_17 [1] : vector<128x128xf32> to vector<128xf32>
    %44 = vector.shape_cast %43 : vector<128xf32> to vector<128x1xf32>
    %45 = vector.broadcast %44 : vector<128x1xf32> to vector<128x128xf32>
    %46 = arith.subf %42, %45 : vector<128x128xf32>
    %47 = math.exp %46 : vector<128x128xf32>
    %cst_18 = arith.constant dense<0.000000e+00> : vector<128xf32>
    %48 = vector.multi_reduction <add>, %47, %cst_18 [1] : vector<128x128xf32> to vector<128xf32>
    %49 = vector.shape_cast %48 : vector<128xf32> to vector<128x1xf32>
    %50 = tpu.reciprocal %49 : vector<128x1xf32> -> vector<128x1xf32>
    %51 = vector.broadcast %50 : vector<128x1xf32> to vector<128x128xf32>
    %52 = arith.mulf %47, %51 : vector<128x128xf32>
    %c0_19 = arith.constant 0 : index
    %c0_20 = arith.constant 0 : index
    %c0_21 = arith.constant 0 : index
    %c0_22 = arith.constant 0 : index
    %53 = vector.load %arg14[%c0_19, %c0_20, %c0_21, %c0_22] : memref<1x4x128x128xf32, #tpu.memory_space<vmem>>, vector<1x1x128x128xf32>
    %54 = vector.shape_cast %53 : vector<1x1x128x128xf32> to vector<128x128xf32>
    %55 = vector.shape_cast %52 : vector<128x128xf32> to vector<1x1x128x128xf32>
    tpu.vector_store %arg14[%c0_19, %c0_20, %c0_21, %c0_22], %55 {strides = array<i32>} : memref<1x4x128x128xf32, #tpu.memory_space<vmem>>, vector<1x1x128x128xf32>,
    %56 = arith.truncf %52 : vector<128x128xf32> to vector<128x128xbf16>
    %57 = arith.truncf %35 : vector<128x8xf32> to vector<128x8xbf16>
    %cst_23 = arith.constant dense<0.000000e+00> : vector<128x8xf32>
    %58 = tpu.matmul %56, %57, %cst_23 {dimension_numbers = #tpu.dot_dimension_numbers<[1], [0], [0], [1], [0, 0, 1, 1], [], []>} : vector<128x128xbf16>, vector<128x8xbf16>, vector<128x8xf32> -> vector<128x8xf32>
    %c0_24 = arith.constant 0 : index
    %c0_25 = arith.constant 0 : index
    %59 = vector.load %arg15[%c0_24, %c0_25] : memref<128x32xf32, #tpu.memory_space<vmem>>, vector<128x8xf32>
    tpu.vector_store %arg15[%c0_24, %c0_25], %58 {strides = array<i32>} : memref<128x32xf32, #tpu.memory_space<vmem>>, vector<128x8xf32>,
    %60 = vector.extract_strided_slice %26 {offsets = [0, 8], sizes = [128, 8], strides = [1, 1]} : vector<128x96xf32> to vector<128x8xf32>
    %61 = vector.extract_strided_slice %26 {offsets = [0, 40], sizes = [128, 8], strides = [1, 1]} : vector<128x96xf32> to vector<128x8xf32>
    %62 = vector.extract_strided_slice %26 {offsets = [0, 72], sizes = [128, 8], strides = [1, 1]} : vector<128x96xf32> to vector<128x8xf32>
    %63 = arith.truncf %60 : vector<128x8xf32> to vector<128x8xbf16>
    %64 = arith.truncf %61 : vector<128x8xf32> to vector<128x8xbf16>
    %cst_26 = arith.constant dense<0.000000e+00> : vector<128x128xf32>
    %65 = tpu.matmul %63, %64, %cst_26 {dimension_numbers = #tpu.dot_dimension_numbers<[1], [1], [0], [0], [0, 0, 1, 0], [], []>} : vector<128x8xbf16>, vector<128x8xbf16>, vector<128x128xf32> -> vector<128x128xf32>
    %cst_27 = arith.constant 0.353553385 : f32
    %66 = vector.broadcast %cst_27 : f32 to vector<128x128xf32>
    %67 = arith.mulf %65, %66 : vector<128x128xf32>
    %68 = vector.broadcast %32 : vector<1x128xf32> to vector<128x128xf32>
    %69 = arith.addf %67, %68 : vector<128x128xf32>
    %cst_28 = arith.constant dense<0xFF800000> : vector<128xf32>
    %70 = vector.multi_reduction <maximumf>, %69, %cst_28 [1] : vector<128x128xf32> to vector<128xf32>
    %71 = vector.shape_cast %70 : vector<128xf32> to vector<128x1xf32>
    %72 = vector.broadcast %71 : vector<128x1xf32> to vector<128x128xf32>
    %73 = arith.subf %69, %72 : vector<128x128xf32>
    %74 = math.exp %73 : vector<128x128xf32>
    %cst_29 = arith.constant dense<0.000000e+00> : vector<128xf32>
    %75 = vector.multi_reduction <add>, %74, %cst_29 [1] : vector<128x128xf32> to vector<128xf32>
    %76 = vector.shape_cast %75 : vector<128xf32> to vector<128x1xf32>
    %77 = tpu.reciprocal %76 : vector<128x1xf32> -> vector<128x1xf32>
    %78 = vector.broadcast %77 : vector<128x1xf32> to vector<128x128xf32>
    %79 = arith.mulf %74, %78 : vector<128x128xf32>
    %c0_30 = arith.constant 0 : index
    %c1 = arith.constant 1 : index
    %c0_31 = arith.constant 0 : index
    %c0_32 = arith.constant 0 : index
    %80 = vector.load %arg14[%c0_30, %c1, %c0_31, %c0_32] : memref<1x4x128x128xf32, #tpu.memory_space<vmem>>, vector<1x1x128x128xf32>
    %81 = vector.shape_cast %80 : vector<1x1x128x128xf32> to vector<128x128xf32>
    %82 = vector.shape_cast %79 : vector<128x128xf32> to vector<1x1x128x128xf32>
    tpu.vector_store %arg14[%c0_30, %c1, %c0_31, %c0_32], %82 {strides = array<i32>} : memref<1x4x128x128xf32, #tpu.memory_space<vmem>>, vector<1x1x128x128xf32>,
    %83 = arith.truncf %79 : vector<128x128xf32> to vector<128x128xbf16>
    %84 = arith.truncf %62 : vector<128x8xf32> to vector<128x8xbf16>
    %cst_33 = arith.constant dense<0.000000e+00> : vector<128x8xf32>
    %85 = tpu.matmul %83, %84, %cst_33 {dimension_numbers = #tpu.dot_dimension_numbers<[1], [0], [0], [1], [0, 0, 1, 1], [], []>} : vector<128x128xbf16>, vector<128x8xbf16>, vector<128x8xf32> -> vector<128x8xf32>
    %c0_34 = arith.constant 0 : index
    %c8 = arith.constant 8 : index
    %86 = vector.load %arg15[%c0_34, %c8] : memref<128x32xf32, #tpu.memory_space<vmem>>, vector<128x8xf32>
    tpu.vector_store %arg15[%c0_34, %c8], %85 {strides = array<i32>} : memref<128x32xf32, #tpu.memory_space<vmem>>, vector<128x8xf32>,
    %87 = vector.extract_strided_slice %26 {offsets = [0, 16], sizes = [128, 8], strides = [1, 1]} : vector<128x96xf32> to vector<128x8xf32>
    %88 = vector.extract_strided_slice %26 {offsets = [0, 48], sizes = [128, 8], strides = [1, 1]} : vector<128x96xf32> to vector<128x8xf32>
    %89 = vector.extract_strided_slice %26 {offsets = [0, 80], sizes = [128, 8], strides = [1, 1]} : vector<128x96xf32> to vector<128x8xf32>
    %90 = arith.truncf %87 : vector<128x8xf32> to vector<128x8xbf16>
    %91 = arith.truncf %88 : vector<128x8xf32> to vector<128x8xbf16>
    %cst_35 = arith.constant dense<0.000000e+00> : vector<128x128xf32>
    %92 = tpu.matmul %90, %91, %cst_35 {dimension_numbers = #tpu.dot_dimension_numbers<[1], [1], [0], [0], [0, 0, 1, 0], [], []>} : vector<128x8xbf16>, vector<128x8xbf16>, vector<128x128xf32> -> vector<128x128xf32>
    %cst_36 = arith.constant 0.353553385 : f32
    %93 = vector.broadcast %cst_36 : f32 to vector<128x128xf32>
    %94 = arith.mulf %92, %93 : vector<128x128xf32>
    %95 = vector.broadcast %32 : vector<1x128xf32> to vector<128x128xf32>
    %96 = arith.addf %94, %95 : vector<128x128xf32>
    %cst_37 = arith.constant dense<0xFF800000> : vector<128xf32>
    %97 = vector.multi_reduction <maximumf>, %96, %cst_37 [1] : vector<128x128xf32> to vector<128xf32>
    %98 = vector.shape_cast %97 : vector<128xf32> to vector<128x1xf32>
    %99 = vector.broadcast %98 : vector<128x1xf32> to vector<128x128xf32>
    %100 = arith.subf %96, %99 : vector<128x128xf32>
    %101 = math.exp %100 : vector<128x128xf32>
    %cst_38 = arith.constant dense<0.000000e+00> : vector<128xf32>
    %102 = vector.multi_reduction <add>, %101, %cst_38 [1] : vector<128x128xf32> to vector<128xf32>
    %103 = vector.shape_cast %102 : vector<128xf32> to vector<128x1xf32>
    %104 = tpu.reciprocal %103 : vector<128x1xf32> -> vector<128x1xf32>
    %105 = vector.broadcast %104 : vector<128x1xf32> to vector<128x128xf32>
    %106 = arith.mulf %101, %105 : vector<128x128xf32>
    %c0_39 = arith.constant 0 : index
    %c2 = arith.constant 2 : index
    %c0_40 = arith.constant 0 : index
    %c0_41 = arith.constant 0 : index
    %107 = vector.load %arg14[%c0_39, %c2, %c0_40, %c0_41] : memref<1x4x128x128xf32, #tpu.memory_space<vmem>>, vector<1x1x128x128xf32>
    %108 = vector.shape_cast %107 : vector<1x1x128x128xf32> to vector<128x128xf32>
    %109 = vector.shape_cast %106 : vector<128x128xf32> to vector<1x1x128x128xf32>
    tpu.vector_store %arg14[%c0_39, %c2, %c0_40, %c0_41], %109 {strides = array<i32>} : memref<1x4x128x128xf32, #tpu.memory_space<vmem>>, vector<1x1x128x128xf32>,
    %110 = arith.truncf %106 : vector<128x128xf32> to vector<128x128xbf16>
    %111 = arith.truncf %89 : vector<128x8xf32> to vector<128x8xbf16>
    %cst_42 = arith.constant dense<0.000000e+00> : vector<128x8xf32>
    %112 = tpu.matmul %110, %111, %cst_42 {dimension_numbers = #tpu.dot_dimension_numbers<[1], [0], [0], [1], [0, 0, 1, 1], [], []>} : vector<128x128xbf16>, vector<128x8xbf16>, vector<128x8xf32> -> vector<128x8xf32>
    %c0_43 = arith.constant 0 : index
    %c16 = arith.constant 16 : index
    %113 = vector.load %arg15[%c0_43, %c16] : memref<128x32xf32, #tpu.memory_space<vmem>>, vector<128x8xf32>
    tpu.vector_store %arg15[%c0_43, %c16], %112 {strides = array<i32>} : memref<128x32xf32, #tpu.memory_space<vmem>>, vector<128x8xf32>,
    %114 = vector.extract_strided_slice %26 {offsets = [0, 24], sizes = [128, 8], strides = [1, 1]} : vector<128x96xf32> to vector<128x8xf32>
    %115 = vector.extract_strided_slice %26 {offsets = [0, 56], sizes = [128, 8], strides = [1, 1]} : vector<128x96xf32> to vector<128x8xf32>
    %116 = vector.extract_strided_slice %26 {offsets = [0, 88], sizes = [128, 8], strides = [1, 1]} : vector<128x96xf32> to vector<128x8xf32>
    %117 = arith.truncf %114 : vector<128x8xf32> to vector<128x8xbf16>
    %118 = arith.truncf %115 : vector<128x8xf32> to vector<128x8xbf16>
    %cst_44 = arith.constant dense<0.000000e+00> : vector<128x128xf32>
    %119 = tpu.matmul %117, %118, %cst_44 {dimension_numbers = #tpu.dot_dimension_numbers<[1], [1], [0], [0], [0, 0, 1, 0], [], []>} : vector<128x8xbf16>, vector<128x8xbf16>, vector<128x128xf32> -> vector<128x128xf32>
    %cst_45 = arith.constant 0.353553385 : f32
    %120 = vector.broadcast %cst_45 : f32 to vector<128x128xf32>
    %121 = arith.mulf %119, %120 : vector<128x128xf32>
    %122 = vector.broadcast %32 : vector<1x128xf32> to vector<128x128xf32>
    %123 = arith.addf %121, %122 : vector<128x128xf32>
    %cst_46 = arith.constant dense<0xFF800000> : vector<128xf32>
    %124 = vector.multi_reduction <maximumf>, %123, %cst_46 [1] : vector<128x128xf32> to vector<128xf32>
    %125 = vector.shape_cast %124 : vector<128xf32> to vector<128x1xf32>
    %126 = vector.broadcast %125 : vector<128x1xf32> to vector<128x128xf32>
    %127 = arith.subf %123, %126 : vector<128x128xf32>
    %128 = math.exp %127 : vector<128x128xf32>
    %cst_47 = arith.constant dense<0.000000e+00> : vector<128xf32>
    %129 = vector.multi_reduction <add>, %128, %cst_47 [1] : vector<128x128xf32> to vector<128xf32>
    %130 = vector.shape_cast %129 : vector<128xf32> to vector<128x1xf32>
    %131 = tpu.reciprocal %130 : vector<128x1xf32> -> vector<128x1xf32>
    %132 = vector.broadcast %131 : vector<128x1xf32> to vector<128x128xf32>
    %133 = arith.mulf %128, %132 : vector<128x128xf32>
    %c0_48 = arith.constant 0 : index
    %c3 = arith.constant 3 : index
    %c0_49 = arith.constant 0 : index
    %c0_50 = arith.constant 0 : index
    %134 = vector.load %arg14[%c0_48, %c3, %c0_49, %c0_50] : memref<1x4x128x128xf32, #tpu.memory_space<vmem>>, vector<1x1x128x128xf32>
    %135 = vector.shape_cast %134 : vector<1x1x128x128xf32> to vector<128x128xf32>
    %136 = vector.shape_cast %133 : vector<128x128xf32> to vector<1x1x128x128xf32>
    tpu.vector_store %arg14[%c0_48, %c3, %c0_49, %c0_50], %136 {strides = array<i32>} : memref<1x4x128x128xf32, #tpu.memory_space<vmem>>, vector<1x1x128x128xf32>,
    %137 = arith.truncf %133 : vector<128x128xf32> to vector<128x128xbf16>
    %138 = arith.truncf %116 : vector<128x8xf32> to vector<128x8xbf16>
    %cst_51 = arith.constant dense<0.000000e+00> : vector<128x8xf32>
    %139 = tpu.matmul %137, %138, %cst_51 {dimension_numbers = #tpu.dot_dimension_numbers<[1], [0], [0], [1], [0, 0, 1, 1], [], []>} : vector<128x128xbf16>, vector<128x8xbf16>, vector<128x8xf32> -> vector<128x8xf32>
    %c0_52 = arith.constant 0 : index
    %c24 = arith.constant 24 : index
    %140 = vector.load %arg15[%c0_52, %c24] : memref<128x32xf32, #tpu.memory_space<vmem>>, vector<128x8xf32>
    tpu.vector_store %arg15[%c0_52, %c24], %139 {strides = array<i32>} : memref<128x32xf32, #tpu.memory_space<vmem>>, vector<128x8xf32>,
    %c0_53 = arith.constant 0 : index
    %c0_54 = arith.constant 0 : index
    %141 = vector.load %arg15[%c0_53, %c0_54] : memref<128x32xf32, #tpu.memory_space<vmem>>, vector<128x32xf32>
    %142 = arith.truncf %141 : vector<128x32xf32> to vector<128x32xbf16>
    %c0_55 = arith.constant 0 : index
    %c0_56 = arith.constant 0 : index
    %143 = vector.load %arg5[%c0_55, %c0_56] : memref<32x32xbf16, #tpu.memory_space<vmem>>, vector<32x32xbf16>
    %cst_57 = arith.constant dense<0.000000e+00> : vector<128x32xf32>
    %144 = tpu.matmul %142, %143, %cst_57 {dimension_numbers = #tpu.dot_dimension_numbers<[1], [0], [0], [1], [0, 0, 1, 1], [], []>} : vector<128x32xbf16>, vector<32x32xbf16>, vector<128x32xf32> -> vector<128x32xf32>
    %c0_58 = arith.constant 0 : index
    %c0_59 = arith.constant 0 : index
    %145 = vector.load %arg6[%c0_58, %c0_59] : memref<1x32xf32, #tpu.memory_space<vmem>>, vector<1x32xf32>
    %146 = vector.broadcast %145 : vector<1x32xf32> to vector<128x32xf32>
    %147 = arith.addf %144, %146 : vector<128x32xf32>
    %148 = arith.addf %23, %147 : vector<128x32xf32>
    %c0_60 = arith.constant 0 : index
    %c0_61 = arith.constant 0 : index
    %149 = vector.load %arg7[%c0_60, %c0_61] : memref<1x32xf32, #tpu.memory_space<vmem>>, vector<1x32xf32>
    %c0_62 = arith.constant 0 : index
    %c0_63 = arith.constant 0 : index
    %150 = vector.load %arg8[%c0_62, %c0_63] : memref<1x32xf32, #tpu.memory_space<vmem>>, vector<1x32xf32>
    %cst_64 = arith.constant dense<0.000000e+00> : vector<128xf32>
    %151 = vector.multi_reduction <add>, %148, %cst_64 [1] : vector<128x32xf32> to vector<128xf32>
    %152 = vector.shape_cast %151 : vector<128xf32> to vector<128x1xf32>
    %cst_65 = arith.constant 3.200000e+01 : f32
    %153 = vector.broadcast %cst_65 : f32 to vector<128x1xf32>
    %154 = arith.divf %152, %153 : vector<128x1xf32>
    %155 = vector.broadcast %154 : vector<128x1xf32> to vector<128x32xf32>
    %156 = arith.subf %148, %155 : vector<128x32xf32>
    %157 = arith.mulf %156, %156 : vector<128x32xf32>
    %cst_66 = arith.constant dense<0.000000e+00> : vector<128xf32>
    %158 = vector.multi_reduction <add>, %157, %cst_66 [1] : vector<128x32xf32> to vector<128xf32>
    %159 = vector.shape_cast %158 : vector<128xf32> to vector<128x1xf32>
    %cst_67 = arith.constant 3.200000e+01 : f32
    %160 = vector.broadcast %cst_67 : f32 to vector<128x1xf32>
    %161 = arith.divf %159, %160 : vector<128x1xf32>
    %cst_68 = arith.constant 9.99999974E-6 : f32
    %162 = vector.broadcast %cst_68 : f32 to vector<128x1xf32>
    %163 = arith.addf %161, %162 : vector<128x1xf32>
    %164 = math.rsqrt %163 : vector<128x1xf32>
    %165 = vector.broadcast %164 : vector<128x1xf32> to vector<128x32xf32>
    %166 = arith.mulf %156, %165 : vector<128x32xf32>
    %167 = vector.broadcast %149 : vector<1x32xf32> to vector<128x32xf32>
    %168 = arith.mulf %166, %167 : vector<128x32xf32>
    %169 = vector.broadcast %150 : vector<1x32xf32> to vector<128x32xf32>
    %170 = arith.addf %168, %169 : vector<128x32xf32>
    %171 = arith.truncf %170 : vector<128x32xf32> to vector<128x32xbf16>
    %c0_69 = arith.constant 0 : index
    %c0_70 = arith.constant 0 : index
    %172 = vector.load %arg9[%c0_69, %c0_70] : memref<32x128xbf16, #tpu.memory_space<vmem>>, vector<32x128xbf16>
    %cst_71 = arith.constant dense<0.000000e+00> : vector<128x128xf32>
    %173 = tpu.matmul %171, %172, %cst_71 {dimension_numbers = #tpu.dot_dimension_numbers<[1], [0], [0], [1], [0, 0, 1, 1], [], []>} : vector<128x32xbf16>, vector<32x128xbf16>, vector<128x128xf32> -> vector<128x128xf32>
    %c0_72 = arith.constant 0 : index
    %c0_73 = arith.constant 0 : index
    %174 = vector.load %arg10[%c0_72, %c0_73] : memref<1x128xf32, #tpu.memory_space<vmem>>, vector<1x128xf32>
    %175 = vector.broadcast %174 : vector<1x128xf32> to vector<128x128xf32>
    %176 = arith.addf %173, %175 : vector<128x128xf32>
    %cst_74 = arith.constant 5.000000e-01 : f32
    %177 = vector.broadcast %cst_74 : f32 to vector<128x128xf32>
    %178 = arith.mulf %177, %176 : vector<128x128xf32>
    %cst_75 = arith.constant 0.707106769 : f32
    %179 = vector.broadcast %cst_75 : f32 to vector<128x128xf32>
    %180 = arith.mulf %176, %179 : vector<128x128xf32>
    %cst_76 = arith.constant 0.000000e+00 : f32
    %181 = vector.broadcast %cst_76 : f32 to vector<128x128xf32>
    %182 = arith.cmpf olt, %180, %181 : vector<128x128xf32>
    %cst_77 = arith.constant -1.000000e+00 : f32
    %cst_78 = arith.constant 1.000000e+00 : f32
    %183 = vector.broadcast %cst_77 : f32 to vector<128x128xf32>
    %184 = vector.broadcast %cst_78 : f32 to vector<128x128xf32>
    %185 = arith.select %182, %183, %184 : vector<128x128xi1>, vector<128x128xf32>
    %186 = math.absf %180 : vector<128x128xf32>
    %cst_79 = arith.constant 0.327591091 : f32
    %187 = vector.broadcast %cst_79 : f32 to vector<128x128xf32>
    %188 = arith.mulf %187, %186 : vector<128x128xf32>
    %cst_80 = arith.constant 1.000000e+00 : f32
    %189 = vector.broadcast %cst_80 : f32 to vector<128x128xf32>
    %190 = arith.addf %189, %188 : vector<128x128xf32>
    %cst_81 = arith.constant 1.000000e+00 : f32
    %191 = vector.broadcast %cst_81 : f32 to vector<128x128xf32>
    %192 = arith.divf %191, %190 : vector<128x128xf32>
    %cst_82 = arith.constant 1.06140542 : f32
    %193 = vector.broadcast %cst_82 : f32 to vector<128x128xf32>
    %194 = arith.mulf %193, %192 : vector<128x128xf32>
    %cst_83 = arith.constant -1.45315206 : f32
    %195 = vector.broadcast %cst_83 : f32 to vector<128x128xf32>
    %196 = arith.addf %194, %195 : vector<128x128xf32>
    %197 = arith.mulf %196, %192 : vector<128x128xf32>
    %cst_84 = arith.constant 1.42141378 : f32
    %198 = vector.broadcast %cst_84 : f32 to vector<128x128xf32>
    %199 = arith.addf %197, %198 : vector<128x128xf32>
    %200 = arith.mulf %199, %192 : vector<128x128xf32>
    %cst_85 = arith.constant -0.284496725 : f32
    %201 = vector.broadcast %cst_85 : f32 to vector<128x128xf32>
    %202 = arith.addf %200, %201 : vector<128x128xf32>
    %203 = arith.mulf %202, %192 : vector<128x128xf32>
    %cst_86 = arith.constant 0.254829586 : f32
    %204 = vector.broadcast %cst_86 : f32 to vector<128x128xf32>
    %205 = arith.addf %203, %204 : vector<128x128xf32>
    %206 = arith.mulf %205, %192 : vector<128x128xf32>
    %cst_87 = arith.constant 0.000000e+00 : f32
    %207 = vector.broadcast %cst_87 : f32 to vector<128x128xf32>
    %208 = arith.subf %207, %186 : vector<128x128xf32>
    %209 = arith.mulf %208, %186 : vector<128x128xf32>
    %210 = math.exp %209 : vector<128x128xf32>
    %211 = arith.mulf %206, %210 : vector<128x128xf32>
    %cst_88 = arith.constant 1.000000e+00 : f32
    %212 = vector.broadcast %cst_88 : f32 to vector<128x128xf32>
    %213 = arith.subf %212, %211 : vector<128x128xf32>
    %214 = arith.mulf %185, %213 : vector<128x128xf32>
    %cst_89 = arith.constant 1.000000e+00 : f32
    %215 = vector.broadcast %cst_89 : f32 to vector<128x128xf32>
    %216 = arith.addf %215, %214 : vector<128x128xf32>
    %217 = arith.mulf %178, %216 : vector<128x128xf32>
    %218 = arith.truncf %217 : vector<128x128xf32> to vector<128x128xbf16>
    %c0_90 = arith.constant 0 : index
    %c0_91 = arith.constant 0 : index
    %219 = vector.load %arg11[%c0_90, %c0_91] : memref<128x32xbf16, #tpu.memory_space<vmem>>, vector<128x32xbf16>
    %cst_92 = arith.constant dense<0.000000e+00> : vector<128x32xf32>
    %220 = tpu.matmul %218, %219, %cst_92 {dimension_numbers = #tpu.dot_dimension_numbers<[1], [0], [0], [1], [0, 0, 1, 1], [], []>} : vector<128x128xbf16>, vector<128x32xbf16>, vector<128x32xf32> -> vector<128x32xf32>
    %c0_93 = arith.constant 0 : index
    %c0_94 = arith.constant 0 : index
    %221 = vector.load %arg12[%c0_93, %c0_94] : memref<1x32xf32, #tpu.memory_space<vmem>>, vector<1x32xf32>
    %222 = vector.broadcast %221 : vector<1x32xf32> to vector<128x32xf32>
    %223 = arith.addf %220, %222 : vector<128x32xf32>
    %224 = arith.addf %148, %223 : vector<128x32xf32>
    %c0_95 = arith.constant 0 : index
    %c0_96 = arith.constant 0 : index
    %c0_97 = arith.constant 0 : index
    %225 = vector.load %arg13[%c0_95, %c0_96, %c0_97] : memref<1x128x32xf32, #tpu.memory_space<vmem>>, vector<1x128x32xf32>
    %226 = vector.shape_cast %225 : vector<1x128x32xf32> to vector<128x32xf32>
    %227 = vector.shape_cast %224 : vector<128x32xf32> to vector<1x128x32xf32>
    tpu.vector_store %arg13[%c0_95, %c0_96, %c0_97], %227 {strides = array<i32>} : memref<1x128x32xf32, #tpu.memory_space<vmem>>, vector<1x128x32xf32>,
    return
  }
  func.func @transform_0(%arg0: i32) -> (i32, i32, i32) {
    %c0_i32 = arith.constant 0 : i32
    %c0_i32_0 = arith.constant 0 : i32
    %c0_i32_1 = arith.constant 0 : i32
    return %arg0, %c0_i32, %c0_i32_0 : i32, i32, i32
  }
  func.func @transform_1(%arg0: i32) -> (i32, i32) {
    %c0_i32 = arith.constant 0 : i32
    %c0_i32_0 = arith.constant 0 : i32
    %c0_i32_1 = arith.constant 0 : i32
    return %c0_i32, %c0_i32_0 : i32, i32
  }
  func.func @transform_2(%arg0: i32) -> (i32, i32) {
    %c0_i32 = arith.constant 0 : i32
    %c0_i32_0 = arith.constant 0 : i32
    %c0_i32_1 = arith.constant 0 : i32
    return %c0_i32, %c0_i32_0 : i32, i32
  }
  func.func @transform_3(%arg0: i32) -> (i32, i32) {
    %c0_i32 = arith.constant 0 : i32
    %c0_i32_0 = arith.constant 0 : i32
    %c0_i32_1 = arith.constant 0 : i32
    return %c0_i32, %c0_i32_0 : i32, i32
  }
  func.func @transform_4(%arg0: i32) -> (i32, i32) {
    %c0_i32 = arith.constant 0 : i32
    %c0_i32_0 = arith.constant 0 : i32
    %c0_i32_1 = arith.constant 0 : i32
    return %c0_i32, %c0_i32_0 : i32, i32
  }
  func.func @transform_5(%arg0: i32) -> (i32, i32) {
    %c0_i32 = arith.constant 0 : i32
    %c0_i32_0 = arith.constant 0 : i32
    %c0_i32_1 = arith.constant 0 : i32
    return %c0_i32, %c0_i32_0 : i32, i32
  }
  func.func @transform_6(%arg0: i32) -> (i32, i32) {
    %c0_i32 = arith.constant 0 : i32
    %c0_i32_0 = arith.constant 0 : i32
    %c0_i32_1 = arith.constant 0 : i32
    return %c0_i32, %c0_i32_0 : i32, i32
  }
  func.func @transform_7(%arg0: i32) -> (i32, i32) {
    %c0_i32 = arith.constant 0 : i32
    %c0_i32_0 = arith.constant 0 : i32
    %c0_i32_1 = arith.constant 0 : i32
    return %c0_i32, %c0_i32_0 : i32, i32
  }
  func.func @transform_8(%arg0: i32) -> (i32, i32) {
    %c0_i32 = arith.constant 0 : i32
    %c0_i32_0 = arith.constant 0 : i32
    %c0_i32_1 = arith.constant 0 : i32
    return %c0_i32, %c0_i32_0 : i32, i32
  }
  func.func @transform_9(%arg0: i32) -> (i32, i32) {
    %c0_i32 = arith.constant 0 : i32
    %c0_i32_0 = arith.constant 0 : i32
    %c0_i32_1 = arith.constant 0 : i32
    return %c0_i32, %c0_i32_0 : i32, i32
  }
  func.func @transform_10(%arg0: i32) -> (i32, i32) {
    %c0_i32 = arith.constant 0 : i32
    %c0_i32_0 = arith.constant 0 : i32
    %c0_i32_1 = arith.constant 0 : i32
    return %c0_i32, %c0_i32_0 : i32, i32
  }
  func.func @transform_11(%arg0: i32) -> (i32, i32) {
    %c0_i32 = arith.constant 0 : i32
    %c0_i32_0 = arith.constant 0 : i32
    %c0_i32_1 = arith.constant 0 : i32
    return %c0_i32, %c0_i32_0 : i32, i32
  }
  func.func @transform_12(%arg0: i32) -> (i32, i32, i32) {
    %c0_i32 = arith.constant 0 : i32
    %c0_i32_0 = arith.constant 0 : i32
    %c0_i32_1 = arith.constant 0 : i32
    return %arg0, %c0_i32, %c0_i32_0 : i32, i32, i32
  }
  func.func @transform_13(%arg0: i32) -> (i32, i32, i32, i32) {
    %c0_i32 = arith.constant 0 : i32
    %c0_i32_0 = arith.constant 0 : i32
    %c0_i32_1 = arith.constant 0 : i32
    %c0_i32_2 = arith.constant 0 : i32
    return %arg0, %c0_i32, %c0_i32_0, %c0_i32_1 : i32, i32, i32, i32
  }
}

</mosaic_0001>

<bundles_post_ra>
// kernel: tpu_custom_call.1
= control target key start
LH: loop header
LB: loop body
LE: loop exit
PB: predicated region body
PF: predicated region fallthrough
CT: control target
= control target key end

     0   :  { %s8018_s0 = inlined_call_operand.vmem [shape: f32[2,128,32], index: 0, kind: input, shape index: {}]   ;;  %s8019_s1 = inlined_call_operand.vmem [shape: f32[1,32], index: 1, kind: input, shape index: {}]   ;;  %s8020_s2 = inlined_call_operand.vmem [shape: f32[1,32], index: 2, kind: input, shape index: {}]   ;;  %s8021_s3 = inlined_call_operand.vmem [shape: bf16[32,96], index: 3, kind: input, shape index: {}]   ;;  %s8022_s4 = inlined_call_operand.vmem [shape: bf16[32,32], index: 4, kind: input, shape index: {}]   ;;  %s8023_s5 = inlined_call_operand.vmem [shape: f32[1,32], index: 5, kind: input, shape index: {}]   ;;  %s8024_s6 = inlined_call_operand.vmem [shape: f32[1,32], index: 6, kind: input, shape index: {}]   ;;  %s8025_s7 = inlined_call_operand.vmem [shape: f32[1,32], index: 7, kind: input, shape index: {}]   ;;  %s8026_s8 = inlined_call_operand.vmem [shape: bf16[32,128], index: 8, kind: input, shape index: {}]   ;;  %s8027_s9 = inlined_call_operand.vmem [shape: f32[1,128], index: 9, kind: input, shape index: {}]   ;;  %s8028_s10 = inlined_call_operand.vmem [shape: bf16[128,32], index: 10, kind: input, shape index: {}]   ;;  %s8029_s11 = inlined_call_operand.vmem [shape: f32[1,32], index: 11, kind: input, shape index: {}]   ;;  %s8030_s12 = inlined_call_operand.vmem [shape: f32[2,128,32], index: 12, kind: output, shape index: {0}]   ;;  %s8031_s13 = inlined_call_operand.hbm [shape: f32[2,4,128,128], index: 13, kind: output, shape index: {1}]  }
   0x1   :  { %8057 = sst [smem:[#allocation22_spill]] %s8018_s0 }
   0x2   :  { %8058 = sst [smem:[#allocation23_spill]] %s8019_s1 }
   0x3   :  { %8059 = sst [smem:[#allocation24_spill]] %s8020_s2 }
   0x4   :  { %8060 = sst [smem:[#allocation25_spill]] %s8021_s3 }
   0x5   :  { %19 = vsyncpa [#allocation4], 0 }
   0x6   :  { %21 = vsyncpa [#allocation4 + $0x1], 0  ;;  %s5784_s25 = smov 0   ;;  %s5786_s26 = smov 0  }
   0x7   :  { %s5788_s27 = smov 0   ;;  %s5790_s28 = smov 0  }
   0x8 LB: > { %s5805_s29 = sadd.s32 4294967295, %s5694_s28   ;;  %s4468_s30 = sadd.s32 4294967294, %s5694_s28   ;;  %s5694_s28 = sphi %s5790_s28, %s8117_s28   ;;  %s5690_s27 = sphi %s5788_s27, %s8116_s27   ;;  %s5686_s26 = sphi %s5786_s26, %s8115_s26   ;;  %s5682_s25 = sphi %s5784_s25, %s8114_s25  }
   0x9   : > { %s5809_s14 = sadd.s32 1, %s5694_s28   ;;  %s317_s15 = sadd.s32 1, %s5690_s27 }
   0xa   : > { %s314_s16 = ssub.s32 %s5694_s28, %s5809_s14  ;;  %p327_p0 = scmp.ne.s32.totalorder %s5690_s27, %s5686_s26 }
   0xb   : > { %p315_p1 = scmp.eq.s32.totalorder %s314_s16, 0  ;;  %p328_p2 = scmp.eq.s32.totalorder %s5805_s29, 1 }
   0xc   : > { %p333_p3 = scmp.ne.s32.totalorder %s5686_s26, %s5682_s25  ;;  %p334_p4 = scmp.eq.s32.totalorder %s4468_s30, 1 }
   0xd   : > { %s5820_s17 = scalar_select %p315_p1, %s5690_s27, %s317_s15  }
   0xe   : > { %p5822_p5 = por %p328_p2, %p327_p0  ;;  %p5826_p6 = por %p334_p4, %p333_p3 }
   0xf   : > { %p4471_p7 = scmp.ge.s32.totalorder %s5694_s28, 1  ;;  %p393_p8 = scmp.lt.s32.totalorder %s5694_s28, 3 }
  0x11   : > { %p394_p9 = pnand %p4471_p7, %p393_p8 }
  0x13   : > { %397 = sbr.rel (%p394_p9) target bundleno = 4485 (0x1185), region = 68 }
  0x18   : > { %p442_p10 = scmp.lt.s32.totalorder %s5805_s29, 1  ;;  %vm471_vm0 = vcmask 261120   ;;  %s8063_s0 = sld [smem:[#allocation22_spill]]  ;;  %vm906_vm1 = vcmask 64512   ;;  %vm1952_vm3 = vcmask 130112   ;;  %vm2532_vm4 = vcmask 195712  }
  0x19   : > { %s8064_s3 = sld [smem:[#allocation25_spill]]  ;;  %s5696_s16 = smov 96   ;;  %vm3112_vm5 = vcmask 261312  }
  0x1a   : > { %s5834_s20 = scalar_select %p442_p10, %s5805_s29, 1 }
  0x1b   : > { %s8065_s1 = sld [smem:[#allocation23_spill]]  ;;  %s5697_s22 = smov 64  }
  0x1c   : > { %s8048_s21 = sshll.u32 %s5834_s20, 7  ;;  %s8066_s2 = sld [smem:[#allocation24_spill]] }
  0x1d   : > { %s5699_s23 = smov 88   ;;  %s5701_s30 = smov 56  }
  0x1e   : > { %s5842_s24 = scalar_lea.vmem %s8063_s0, %s8048_s21  ;;  %s8050_s15 = sand.u32 1, %s5686_s26  }
  0x1f   : > { %v453_v0 = vld [vmem:[%s5842_s24] sm:$0xff]  ;;  %v455_v1 = vld [vmem:[%s5842_s24 + $0x10] sm:$0xff]  ;;  %v454_v2 = vld [vmem:[%s5842_s24 + $0x8] sm:$0xff]  ;;  %s4609_s21 = sshll.u32 %s5805_s29, 13  ;;  %s5712_s29 = smov [#allocation3]  }
  0x20   : > { %v472_v3 = vsel %vm471_vm0, %v453_v0, 0.0  ;;  %v478_v4 = vsel %vm471_vm0, %v455_v1, 0.0  ;;  %v456_v5 = vld [vmem:[%s5842_s24 + $0x18] sm:$0xff]  ;;  %v5851_v6 = vld [vmem:[%s5842_s24 + $0x20] sm:$0xff]  ;;  %v475_v7 = vsel %vm471_vm0, %v454_v2, 0.0  ;;  %v458_v9 = vld [vmem:[%s5842_s24 + $0x28] sm:$0xff] }
  0x21   : > { %473 = vadd.xlane.f32.xlu0 %v472_v3  ;;  %479 = vadd.xlane.f32.xlu1 %v478_v4  ;;  %v481_v8 = vsel %vm471_vm0, %v456_v5, 0.0  ;;  %v484_v10 = vsel %vm471_vm0, %v5851_v6, 0.0  ;;  %v487_v11 = vsel %vm471_vm0, %v458_v9, 0.0  ;;  %v5860_v12 = vld [vmem:[%s5842_s24 + $0x30] sm:$0xff]  ;;  %v5863_v13 = vld [vmem:[%s5842_s24 + $0x38] sm:$0xff]  ;;  %v5870_v16 = vld [vmem:[%s5842_s24 + $0x40] sm:$0xff] }
  0x22   : > { %v490_v14 = vsel %vm471_vm0, %v5860_v12, 0.0  ;;  %v493_v15 = vsel %vm471_vm0, %v5863_v13, 0.0  ;;  %v5873_v17 = vld [vmem:[%s5842_s24 + $0x48] sm:$0xff]  ;;  %v496_v18 = vsel %vm471_vm0, %v5870_v16, 0.0  ;;  %v5880_v20 = vld [vmem:[%s5842_s24 + $0x50] sm:$0xff]  ;;  %v5883_v21 = vld [vmem:[%s5842_s24 + $0x58] sm:$0xff] }
  0x23   : > { %v499_v19 = vsel %vm471_vm0, %v5873_v17, 0.0  ;;  %v502_v22 = vsel %vm471_vm0, %v5880_v20, 0.0  ;;  %v505_v23 = vsel %vm471_vm0, %v5883_v21, 0.0  ;;  %v5890_v24 = vld [vmem:[%s5842_s24 + $0x60] sm:$0xff]  ;;  %v5893_v25 = vld [vmem:[%s5842_s24 + $0x68] sm:$0xff]  ;;  %v5900_v28 = vld [vmem:[%s5842_s24 + $0x70] sm:$0xff] }
  0x24   : > { %v508_v26 = vsel %vm471_vm0, %v5890_v24, 0.0  ;;  %v511_v27 = vsel %vm471_vm0, %v5893_v25, 0.0  ;;  %v5903_v29 = vld [vmem:[%s5842_s24 + $0x78] sm:$0xff]  ;;  %v514_v30 = vsel %vm471_vm0, %v5900_v28, 0.0  ;;  %s5700_s24 = smov 120  }
  0x25   : > { %476 = vadd.xlane.f32.xlu0 %v475_v7  ;;  %482 = vadd.xlane.f32.xlu1 %v481_v8  ;;  %v517_v31 = vsel %vm471_vm0, %v5903_v29, 0.0 }
  0x29   : > { %485 = vadd.xlane.f32.xlu0 %v484_v10  ;;  %488 = vadd.xlane.f32.xlu1 %v487_v11 }
  0x2d   : > { %491 = vadd.xlane.f32.xlu0 %v490_v14  ;;  %494 = vadd.xlane.f32.xlu1 %v493_v15 }
  0x31   : > { %497 = vadd.xlane.f32.xlu0 %v496_v18  ;;  %500 = vadd.xlane.f32.xlu1 %v499_v19 }
  0x35   : > { %503 = vadd.xlane.f32.xlu0 %v502_v22  ;;  %506 = vadd.xlane.f32.xlu1 %v505_v23 }
  0x39   : > { %509 = vadd.xlane.f32.xlu0 %v508_v26  ;;  %512 = vadd.xlane.f32.xlu1 %v511_v27 }
  0x3d   : > { %515 = vadd.xlane.f32.xlu0 %v514_v30  ;;  %518 = vadd.xlane.f32.xlu1 %v517_v31 }
  0xaa   : > { %v474_v32 = vpop.xlane.xlu0 %473  ;;  %v480_v33 = vpop.xlane.xlu1 %479 }
  0xab   : > { %v521_v34 = vmul.f32 0.03125, %v474_v32  ;;  %v523_v35 = vmul.f32 0.03125, %v480_v33 }
  0xad   : > { %v5909_v36 = vsub.f32 %v453_v0, %v521_v34  ;;  %v5911_v37 = vsub.f32 %v455_v1, %v523_v35 }
  0xae   : > { %v477_v38 = vpop.xlane.xlu0 %476  ;;  %v483_v39 = vpop.xlane.xlu1 %482 }
  0xaf   : > { %v522_v40 = vmul.f32 0.03125, %v477_v38  ;;  %v524_v41 = vmul.f32 0.03125, %v483_v39  ;;  %v553_v42 = vmul.f32 %v5909_v36, %v5909_v36  ;;  %v555_v43 = vmul.f32 %v5911_v37, %v5911_v37 }
  0xb1   : > { %v5917_v44 = vsub.f32 %v454_v2, %v522_v40  ;;  %v5919_v45 = vsub.f32 %v456_v5, %v524_v41  ;;  %v569_v46 = vsel %vm471_vm0, %v553_v42, 0.0  ;;  %v575_v49 = vsel %vm471_vm0, %v555_v43, 0.0 }
  0xb2   : > { %570 = vadd.xlane.f32.xlu0 %v569_v46  ;;  %v486_v47 = vpop.xlane.xlu0 %485  ;;  %v489_v48 = vpop.xlane.xlu1 %488 }
  0xb3   : > { %v525_v50 = vmul.f32 0.03125, %v486_v47  ;;  %v526_v51 = vmul.f32 0.03125, %v489_v48  ;;  %v554_v52 = vmul.f32 %v5917_v44, %v5917_v44  ;;  %v556_v53 = vmul.f32 %v5919_v45, %v5919_v45 }
  0xb5   : > { %v5928_v54 = vsub.f32 %v5851_v6, %v525_v50  ;;  %v5930_v55 = vsub.f32 %v458_v9, %v526_v51  ;;  %v572_v56 = vsel %vm471_vm0, %v554_v52, 0.0  ;;  %v578_v59 = vsel %vm471_vm0, %v556_v53, 0.0  ;;  %v5237_v53 = vld [vmem:[%s8064_s3] sm:$0xff]  }
  0xb6   : > { %576 = vadd.xlane.f32.xlu0 %v575_v49  ;;  %573 = vadd.xlane.f32.xlu1 %v572_v56  ;;  %v492_v57 = vpop.xlane.xlu0 %491  ;;  %v495_v58 = vpop.xlane.xlu1 %494 }
  0xb7   : > { %v527_v60 = vmul.f32 0.03125, %v492_v57  ;;  %v528_v61 = vmul.f32 0.03125, %v495_v58  ;;  %v557_v62 = vmul.f32 %v5928_v54, %v5928_v54  ;;  %v558_v63 = vmul.f32 %v5930_v55, %v5930_v55 }
  0xb9   : > { %v5939_v0 = vsub.f32 %v5860_v12, %v527_v60  ;;  %v5942_v1 = vsub.f32 %v5863_v13, %v528_v61  ;;  %v581_v2 = vsel %vm471_vm0, %v557_v62, 0.0  ;;  %v584_v5 = vsel %vm471_vm0, %v558_v63, 0.0 }
  0xba   : > { %579 = vadd.xlane.f32.xlu1 %v578_v59  ;;  %582 = vadd.xlane.f32.xlu0 %v581_v2  ;;  %v498_v3 = vpop.xlane.xlu0 %497  ;;  %v501_v4 = vpop.xlane.xlu1 %500 }
  0xbb   : > { %v529_v6 = vmul.f32 0.03125, %v498_v3  ;;  %v530_v7 = vmul.f32 0.03125, %v501_v4  ;;  %v559_v8 = vmul.f32 %v5939_v0, %v5939_v0  ;;  %v560_v9 = vmul.f32 %v5942_v1, %v5942_v1 }
  0xbd   : > { %v5951_v10 = vsub.f32 %v5870_v16, %v529_v6  ;;  %v5954_v11 = vsub.f32 %v5873_v17, %v530_v7  ;;  %v587_v12 = vsel %vm471_vm0, %v559_v8, 0.0  ;;  %v590_v15 = vsel %vm471_vm0, %v560_v9, 0.0 }
  0xbe   : > { %585 = vadd.xlane.f32.xlu1 %v584_v5  ;;  %588 = vadd.xlane.f32.xlu0 %v587_v12  ;;  %v504_v13 = vpop.xlane.xlu0 %503  ;;  %v507_v14 = vpop.xlane.xlu1 %506 }
  0xbf   : > { %v531_v18 = vmul.f32 0.03125, %v504_v13  ;;  %v532_v19 = vmul.f32 0.03125, %v507_v14  ;;  %v561_v22 = vmul.f32 %v5951_v10, %v5951_v10  ;;  %v562_v16 = vmul.f32 %v5954_v11, %v5954_v11 }
  0xc1   : > { %v5963_v23 = vsub.f32 %v5880_v20, %v531_v18  ;;  %v5966_v17 = vsub.f32 %v5883_v21, %v532_v19  ;;  %v593_v26 = vsel %vm471_vm0, %v561_v22, 0.0  ;;  %v596_v31 = vsel %vm471_vm0, %v562_v16, 0.0 }
  0xc2   : > { %591 = vadd.xlane.f32.xlu1 %v590_v15  ;;  %594 = vadd.xlane.f32.xlu0 %v593_v26  ;;  %v510_v27 = vpop.xlane.xlu0 %509  ;;  %v513_v30 = vpop.xlane.xlu1 %512 }
  0xc3   : > { %v533_v32 = vmul.f32 0.03125, %v510_v27  ;;  %v534_v33 = vmul.f32 0.03125, %v513_v30  ;;  %v563_v34 = vmul.f32 %v5963_v23, %v5963_v23  ;;  %v564_v20 = vmul.f32 %v5966_v17, %v5966_v17 }
  0xc5   : > { %v5975_v35 = vsub.f32 %v5890_v24, %v533_v32  ;;  %v5978_v21 = vsub.f32 %v5893_v25, %v534_v33  ;;  %v599_v38 = vsel %vm471_vm0, %v563_v34, 0.0  ;;  %v602_v41 = vsel %vm471_vm0, %v564_v20, 0.0  ;;  %v6009_v32 = vld [vmem:[%s8065_s1] ss:$0 sm:$0xff]  ;;  %s8105_s1 = sand.u32 1, %s5686_s26  }
  0xc6   : > { %597 = vadd.xlane.f32.xlu1 %v596_v31  ;;  %600 = vadd.xlane.f32.xlu0 %v599_v38  ;;  %v516_v39 = vpop.xlane.xlu0 %515  ;;  %v519_v40 = vpop.xlane.xlu1 %518 }
  0xc7   : > { %v535_v42 = vmul.f32 0.03125, %v516_v39  ;;  %v536_v43 = vmul.f32 0.03125, %v519_v40  ;;  %v565_v46 = vmul.f32 %v5975_v35, %v5975_v35  ;;  %v566_v24 = vmul.f32 %v5978_v21, %v5978_v21 }
  0xc9   : > { %v5987_v47 = vsub.f32 %v5900_v28, %v535_v42  ;;  %v5990_v25 = vsub.f32 %v5903_v29, %v536_v43  ;;  %v605_v48 = vsel %vm471_vm0, %v565_v46, 0.0  ;;  %v608_v49 = vsel %vm471_vm0, %v566_v24, 0.0  ;;  %v5236_v29 = vld [vmem:[%s8064_s3 + $0x8] sm:$0xff]   ;;  %v6016_v24 = vld [vmem:[%s8066_s2] ss:$0 sm:$0xff]  ;;  %s5638_s2 = sshll.u32 %s5712_s29, 4  ;;  %s5639_s2 = int_to_ptr.vmem [resolvable:$false] %s5638_s2 }
  0xca   : > { %603 = vadd.xlane.f32.xlu1 %v602_v41  ;;  %606 = vadd.xlane.f32.xlu0 %v605_v48 }
  0xcb   : > { %v567_v50 = vmul.f32 %v5987_v47, %v5987_v47  ;;  %v568_v51 = vmul.f32 %v5990_v25, %v5990_v25  ;;  %4784 = vmatprep.subr.bf16.mxu0 %v5236_v29 }
  0xcc   : > { %4785 = vmatpush3.bf16.msra.mxu0 %v5236_v29 }
  0xcd   : > { %v611_v52 = vsel %vm471_vm0, %v567_v50, 0.0  ;;  %v614_v28 = vsel %vm471_vm0, %v568_v51, 0.0  ;;  %4786 = vmatprep.subr.bf16.mxu0 %v5237_v53 }
  0xce   : > { %609 = vadd.xlane.f32.xlu1 %v608_v49  ;;  %612 = vadd.xlane.f32.xlu0 %v611_v52 }
  0xd0   : > { %4787 = vmatpush3.bf16.msra.mxu0 %v5237_v53 }
  0xd2   : > { %615 = vadd.xlane.f32.xlu1 %v614_v28 }
 0x13b   : > { %v571_v56 = vpop.xlane.xlu0 %570 }
 0x13c   : > { %v617_v57 = vmul.f32 0.03125, %v571_v56 }
 0x13e   : > { %v633_v58 = vadd.f32 1e-05, %v617_v57 }
 0x13f   : > { %v574_v59 = vpop.xlane.xlu1 %573  ;;  %v577_v60 = vpop.xlane.xlu0 %576 }
 0x140   : > { %5250 = vrsqrt.f32 %v633_v58  ;;  %v618_v61 = vmul.f32 0.03125, %v574_v59  ;;  %v619_v62 = vmul.f32 0.03125, %v577_v60 }
 0x142   : > { %v634_v63 = vadd.f32 1e-05, %v618_v61  ;;  %v635_v2 = vadd.f32 1e-05, %v619_v62 }
 0x143   : > { %v580_v3 = vpop.xlane.xlu1 %579  ;;  %v583_v4 = vpop.xlane.xlu0 %582 }
 0x144   : > { %5252 = vrsqrt.f32 %v634_v63  ;;  %v620_v5 = vmul.f32 0.03125, %v580_v3  ;;  %v621_v6 = vmul.f32 0.03125, %v583_v4 }
 0x145   : > { %5254 = vrsqrt.f32 %v635_v2 }
 0x146   : > { %v636_v7 = vadd.f32 1e-05, %v620_v5  ;;  %v637_v8 = vadd.f32 1e-05, %v621_v6 }
 0x147   : > { %v586_v9 = vpop.xlane.xlu1 %585  ;;  %v589_v12 = vpop.xlane.xlu0 %588 }
 0x148   : > { %5256 = vrsqrt.f32 %v636_v7  ;;  %v622_v13 = vmul.f32 0.03125, %v586_v9  ;;  %v623_v14 = vmul.f32 0.03125, %v589_v12 }
 0x149   : > { %5258 = vrsqrt.f32 %v637_v8 }
 0x14a   : > { %v638_v15 = vadd.f32 1e-05, %v622_v13  ;;  %v639_v18 = vadd.f32 1e-05, %v623_v14 }
 0x14b   : > { %v592_v19 = vpop.xlane.xlu1 %591  ;;  %v595_v22 = vpop.xlane.xlu0 %594 }
 0x14c   : > { %5260 = vrsqrt.f32 %v638_v15  ;;  %v624_v16 = vmul.f32 0.03125, %v592_v19  ;;  %v625_v26 = vmul.f32 0.03125, %v595_v22 }
 0x14d   : > { %v5251_v27 = vpop.eup %5250  ;;  %5262 = vrsqrt.f32 %v639_v18 }
 0x14e   : > { %v640_v30 = vadd.f32 1e-05, %v624_v16  ;;  %v641_v31 = vadd.f32 1e-05, %v625_v26  ;;  %v665_v33 = vmul.f32 %v5251_v27, %v5909_v36 }
 0x14f   : > { %v598_v34 = vpop.xlane.xlu1 %597  ;;  %v601_v20 = vpop.xlane.xlu0 %600 }
 0x150   : > { %5264 = vrsqrt.f32 %v640_v30  ;;  %v626_v38 = vmul.f32 0.03125, %v598_v34  ;;  %v627_v39 = vmul.f32 0.03125, %v601_v20  ;;  %v687_v41 = vmul.f32 %v6009_v32, %v665_v33 }
 0x151   : > { %v5253_v40 = vpop.eup %5252  ;;  %5266 = vrsqrt.f32 %v641_v31 }
 0x152   : > { %v5255_v42 = vpop.eup %5254  ;;  %v642_v43 = vadd.f32 1e-05, %v626_v38  ;;  %v643_v46 = vadd.f32 1e-05, %v627_v39  ;;  %v666_v48 = vmul.f32 %v5253_v40, %v5917_v44  ;;  %v6022_v53 = vadd.f32 %v6016_v24, %v687_v41 }
 0x153   : > { %v604_v36 = vpop.xlane.xlu1 %603  ;;  %v607_v49 = vpop.xlane.xlu0 %606  ;;  %v667_v50 = vmul.f32 %v5255_v42, %v5911_v37 }
 0x154   : > { %5268 = vrsqrt.f32 %v642_v43  ;;  %v628_v51 = vmul.f32 0.03125, %v604_v36  ;;  %v629_v52 = vmul.f32 0.03125, %v607_v49  ;;  %v688_v28 = vmul.f32 %v6009_v32, %v666_v48  ;;  %8067 = vst [vmem:[#allocation6_spill] sm:$0xff] %v6022_v53 }
 0x155   : > { %v5257_v29 = vpop.eup %5256  ;;  %5270 = vrsqrt.f32 %v643_v46  ;;  %v689_v61 = vmul.f32 %v6009_v32, %v667_v50 }
 0x156   : > { %v5259_v56 = vpop.eup %5258  ;;  %v644_v57 = vadd.f32 1e-05, %v628_v51  ;;  %v645_v58 = vadd.f32 1e-05, %v629_v52  ;;  %v6025_v59 = vadd.f32 %v6016_v24, %v688_v28  ;;  %v668_v44 = vmul.f32 %v5257_v29, %v5919_v45 }
 0x157   : > { %v610_v60 = vpop.xlane.xlu1 %609  ;;  %v613_v37 = vpop.xlane.xlu0 %612  ;;  %v669_v62 = vmul.f32 %v5259_v56, %v5928_v54  ;;  %v6037_v12 = vadd.f32 %v6016_v24, %v689_v61 }
 0x158   : > { %8068 = vst [vmem:[#allocation7_spill] sm:$0xff] %v6025_v59  ;;  %5272 = vrsqrt.f32 %v644_v57  ;;  %v630_v63 = vmul.f32 0.03125, %v610_v60  ;;  %v631_v2 = vmul.f32 0.03125, %v613_v37  ;;  %v725_v3 = vpack.c.bf16 %v6025_v59, %v6022_v53 }
 0x159   : > { %v5261_v4 = vpop.eup %5260  ;;  %5274 = vrsqrt.f32 %v645_v58  ;;  %v690_v5 = vmul.f32 %v6009_v32, %v668_v44  ;;  %v691_v6 = vmul.f32 %v6009_v32, %v669_v62  ;;  %8069 = vst [vmem:[#allocation8_spill] sm:$0xff] %v6037_v12 }
 0x15a   : > { %v5263_v7 = vpop.eup %5262  ;;  %v646_v45 = vadd.f32 1e-05, %v630_v63  ;;  %v647_v8 = vadd.f32 1e-05, %v631_v2  ;;  %4788 = vmatprep.mubr.msk.bf16.mxu0 %vm471_vm0, %v725_v3  ;;  %v670_v9 = vmul.f32 %v5261_v4, %v5930_v55 }
 0x15b   : > { %v616_v54 = vpop.xlane.xlu1 %615  ;;  %v6040_v13 = vadd.f32 %v6016_v24, %v690_v5  ;;  %v671_v14 = vmul.f32 %v5263_v7, %v5939_v0  ;;  %v6047_v55 = vadd.f32 %v6016_v24, %v691_v6 }
 0x15c   : > { %5276 = vrsqrt.f32 %v646_v45  ;;  %v632_v15 = vmul.f32 0.03125, %v616_v54  ;;  %v692_v18 = vmul.f32 %v6009_v32, %v670_v9 }
 0x15d   : > { %8070 = vst [vmem:[#allocation9_spill] sm:$0xff] %v6040_v13  ;;  %v5265_v19 = vpop.eup %5264  ;;  %5278 = vrsqrt.f32 %v647_v8  ;;  %v726_v22 = vpack.c.bf16 %v6040_v13, %v6037_v12  ;;  %8071 = vst [vmem:[#allocation10_spill] sm:$0xff] %v6047_v55  ;;  %v693_v0 = vmul.f32 %v6009_v32, %v671_v14 }
 0x15e   : > { %v5267_v16 = vpop.eup %5266  ;;  %v648_v26 = vadd.f32 1e-05, %v632_v15  ;;  %v6050_v27 = vadd.f32 %v6016_v24, %v692_v18  ;;  %v672_v30 = vmul.f32 %v5265_v19, %v5942_v1 }
 0x15f   : > { %4789 = vmatmul.mubr.msk.bf16.vlgmr.msra.gmra.mxu0 %vm471_vm0, %v726_v22  ;;  %v673_v31 = vmul.f32 %v5267_v16, %v5951_v10  ;;  %v6061_v39 = vadd.f32 %v6016_v24, %v693_v0 }
 0x160   : > { %8072 = vst [vmem:[#allocation11_spill] sm:$0xff] %v6050_v27  ;;  %5280 = vrsqrt.f32 %v648_v26  ;;  %v727_v33 = vpack.c.bf16 %v6050_v27, %v6047_v55  ;;  %v694_v34 = vmul.f32 %v6009_v32, %v672_v30 }
 0x161   : > { %v5269_v20 = vpop.eup %5268  ;;  %8073 = vst [vmem:[#allocation12_spill] sm:$0xff] %v6061_v39  ;;  %v695_v10 = vmul.f32 %v6009_v32, %v673_v31 }
 0x162   : > { %v5271_v38 = vpop.eup %5270  ;;  %4792 = vmatprep.mubr.msk.bf16.mxu0 %vm471_vm0, %v727_v33  ;;  %v6064_v1 = vadd.f32 %v6016_v24, %v694_v34  ;;  %v674_v40 = vmul.f32 %v5269_v20, %v5954_v11 }
 0x163   : > { %v675_v41 = vmul.f32 %v5271_v38, %v5963_v23  ;;  %v6073_v36 = vadd.f32 %v6016_v24, %v695_v10 }
 0x164   : > { %8074 = vst [vmem:[#allocation13_spill] sm:$0xff] %v6064_v1  ;;  %v728_v42 = vpack.c.bf16 %v6064_v1, %v6061_v39  ;;  %v696_v43 = vmul.f32 %v6009_v32, %v674_v40 }
 0x165   : > { %v5273_v46 = vpop.eup %5272  ;;  %8075 = vst [vmem:[#allocation14_spill] sm:$0xff] %v6073_v36  ;;  %v697_v11 = vmul.f32 %v6009_v32, %v675_v41 }
 0x166   : > { %v5275_v48 = vpop.eup %5274  ;;  %v6076_v49 = vadd.f32 %v6016_v24, %v696_v43  ;;  %v676_v50 = vmul.f32 %v5273_v46, %v5966_v17 }
 0x167   : > { %4793 = vmatmul.mubr.msk.bf16.gmra.mxu0 %vm471_vm0, %v728_v42  ;;  %v677_v23 = vmul.f32 %v5275_v48, %v5975_v35  ;;  %v6087_v56 = vadd.f32 %v6016_v24, %v697_v11 }
 0x168   : > { %8076 = vst [vmem:[#allocation15_spill] sm:$0xff] %v6076_v49  ;;  %v729_v51 = vpack.c.bf16 %v6076_v49, %v6073_v36  ;;  %v698_v52 = vmul.f32 %v6009_v32, %v676_v50 }
 0x169   : > { %v5277_v28 = vpop.eup %5276  ;;  %8077 = vst [vmem:[#allocation16_spill] sm:$0xff] %v6087_v56  ;;  %v699_v58 = vmul.f32 %v6009_v32, %v677_v23 }
 0x16a   : > { %v5279_v29 = vpop.eup %5278  ;;  %4796 = vmatprep.mubr.msk.bf16.mxu0 %vm471_vm0, %v729_v51  ;;  %v6090_v17 = vadd.f32 %v6016_v24, %v698_v52  ;;  %v678_v57 = vmul.f32 %v5277_v28, %v5978_v21 }
 0x16b   : > { %v679_v35 = vmul.f32 %v5279_v29, %v5987_v47  ;;  %v6099_v61 = vadd.f32 %v6016_v24, %v699_v58 }
 0x16c   : > { %8078 = vst [vmem:[#allocation17_spill] sm:$0xff] %v6090_v17  ;;  %v730_v44 = vpack.c.bf16 %v6090_v17, %v6087_v56  ;;  %v700_v60 = vmul.f32 %v6009_v32, %v678_v57 }
 0x16d   : > { %v5281_v37 = vpop.eup %5280  ;;  %8079 = vst [vmem:[#allocation18_spill] sm:$0xff] %v6099_v61  ;;  %v701_v21 = vmul.f32 %v6009_v32, %v679_v35 }
 0x16e   : > { %v6102_v62 = vadd.f32 %v6016_v24, %v700_v60  ;;  %v680_v63 = vmul.f32 %v5281_v37, %v5990_v25 }
 0x16f   : > { %4797 = vmatmul.mubr.msk.bf16.gmra.mxu0 %vm471_vm0, %v730_v44  ;;  %v6112_v3 = vadd.f32 %v6016_v24, %v701_v21 }
 0x170   : > { %8080 = vst [vmem:[#allocation19_spill] sm:$0xff] %v6102_v62  ;;  %v731_v47 = vpack.c.bf16 %v6102_v62, %v6099_v61  ;;  %v702_v2 = vmul.f32 %v6009_v32, %v680_v63 }
 0x171   : > { %8081 = vst [vmem:[#allocation20_spill] sm:$0xff] %v6112_v3 }
 0x172   : > { %4800 = vmatprep.mubr.msk.bf16.mxu0 %vm471_vm0, %v731_v47  ;;  %v6115_v4 = vadd.f32 %v6016_v24, %v702_v2  ;;  %v870_v2 = vlaneseq }
 0x174   : > { %8082 = vst [vmem:[#allocation21_spill] sm:$0xff] %v6115_v4  ;;  %v732_v25 = vpack.c.bf16 %v6115_v4, %v6112_v3 }
 0x177   : > { %4801 = vmatmul.mubr.msk.bf16.gmra.mxu0 %vm471_vm0, %v732_v25  ;;  %v871_v25 = vand.u32 127, %v870_v2 }
 0x179   : > { %vm872_vm2 = vcmp.lt.s32.totalorder %v871_v25, 8 }
 0x21f   : > { %v4790_v5 = vpop.f32.mrf.mxu0 }
 0x221   : > { %v807_v6 = vpop.f32.mrf.mxu0 }
 0x223   : > { %v4791_v7 = vpop.f32.mrf.mxu0 }
 0x224   : > { %v6135_v20 = vpack.c.bf16 %v4791_v7, %v4790_v5 }
 0x225   : > { %v810_v45 = vpop.f32.mrf.mxu0 }
 0x226   : > { %v6120_v8 = vpack.c.bf16 %v810_v45, %v807_v6  ;;  %v5698_v6 = vmov -1e+30  }
 0x227   : > { %v4794_v32 = vpop.f32.mrf.mxu0  ;;  %v6190_v7 = vsel %vm872_vm2, 0.0, %v5698_v6 }
 0x228   : > { %4820 = vmatprep.mubr.msk.bf16.mxu1 %vm906_vm1, %v6120_v8 }
 0x229   : > { %v823_v9 = vpop.f32.mrf.mxu0 }
 0x22b   : > { %v4795_v54 = vpop.f32.mrf.mxu0 }
 0x22c   : > { %v6129_v33 = vpack.c.bf16 %v4795_v54, %v4794_v32 }
 0x22d   : > { %v826_v24 = vpop.f32.mrf.mxu0 }
 0x22e   : > { %v6142_v40 = vpack.c.bf16 %v826_v24, %v823_v9 }
 0x22f   : > { %v4798_v14 = vpop.f32.mrf.mxu0 }
 0x231   : > { %v839_v15 = vpop.f32.mrf.mxu0 }
 0x233   : > { %v4799_v18 = vpop.f32.mrf.mxu0 }
 0x234   : > { %v6132_v34 = vpack.c.bf16 %v4799_v18, %v4798_v14 }
 0x235   : > { %v842_v19 = vpop.f32.mrf.mxu0 }
 0x236   : > { %v6138_v38 = vpack.c.bf16 %v842_v19, %v839_v15 }
 0x237   : > { %v4802_v22 = vpop.f32.mrf.mxu0 }
 0x239   : > { %v855_v16 = vpop.f32.mrf.mxu0 }
 0x23b   : > { %v4803_v26 = vpop.f32.mrf.mxu0 }
 0x23c   : > { %v6124_v30 = vpack.c.bf16 %v4803_v26, %v4802_v22 }
 0x23d   : > { %v858_v0 = vpop.f32.mrf.mxu0 }
 0x23e   : > { %v6126_v31 = vpack.c.bf16 %v858_v0, %v855_v16  ;;  %904 = vrot.lane.b32.xlu0 %v6124_v30, %s5696_s16 }
 0x240   : > { %902 = vrot.lane.b32.xlu1 %v6126_v31, %s5696_s16 }
 0x242   : > { %896 = vrot.lane.b32.xlu0 %v6129_v33, %s5696_s16 }
 0x244   : > { %900 = vrot.lane.b32.xlu1 %v6132_v34, %s5696_s16 }
 0x246   : > { %892 = vrot.lane.b32.xlu0 %v6135_v20, %s5696_s16 }
 0x248   : > { %898 = vrot.lane.b32.xlu1 %v6138_v38, %s5696_s16 }
 0x24a   : > { %1266 = vrot.lane.b32.xlu0 %v6124_v30, %s5697_s22 }
 0x24c   : > { %894 = vrot.lane.b32.xlu1 %v6142_v40, %s5696_s16 }
 0x24e   : > { %1262 = vrot.lane.b32.xlu0 %v6132_v34, %s5697_s22 }
 0x250   : > { %890 = vrot.lane.b32.xlu1 %v6120_v8, %s5696_s16  ;;  %s4472_s16 = sshll.u32 %s8050_s15, 9  ;;  %s5710_s15 = smov 24  }
 0x252   : > { %1260 = vrot.lane.b32.xlu0 %v6138_v38, %s5697_s22 }
 0x254   : > { %1256 = vrot.lane.b32.xlu1 %v6142_v40, %s5697_s22 }
 0x256   : > { %1258 = vrot.lane.b32.xlu0 %v6129_v33, %s5697_s22 }
 0x258   : > { %1264 = vrot.lane.b32.xlu1 %v6126_v31, %s5697_s22 }
 0x25c   : > { %1252 = vrot.lane.b32.xlu1 %v6120_v8, %s5697_s22 }
 0x2b0   : > { %v905_v10 = vpop.permute.xlu0 %904 }
 0x2b1   : > { %5148 = vmatprep.subr.msk.bf16.mxu1 %vm906_vm1, %v905_v10  ;;  %v953_v41 = vsel %vm906_vm1, %v905_v10, 0 }
 0x2b2   : > { %4805 = vmatpush3.bf16.xpose.msra.mxu1 %v953_v41  ;;  %v903_v42 = vpop.permute.xlu1 %902 }
 0x2b3   : > { %5149 = vmatprep.subr.msk.bf16.mxu1 %vm906_vm1, %v903_v42  ;;  %v950_v50 = vsel %vm906_vm1, %v903_v42, 0 }
 0x2b4   : > { %v897_v43 = vpop.permute.xlu0 %896 }
 0x2b5   : > { %v941_v60 = vsel %vm906_vm1, %v897_v43, 0 }
 0x2b6   : > { %v901_v46 = vpop.permute.xlu1 %900 }
 0x2b7   : > { %v947_v52 = vsel %vm906_vm1, %v901_v46, 0 }
 0x2b8   : > { %v893_v48 = vpop.permute.xlu0 %892 }
 0x2b9   : > { %v935_v21 = vsel %vm906_vm1, %v893_v48, 0 }
 0x2ba   : > { %4807 = vmatpush3.bf16.xpose.msra.mxu1 %v950_v50  ;;  %v899_v11 = vpop.permute.xlu1 %898 }
 0x2bb   : > { %5150 = vmatprep.subr.msk.bf16.mxu1 %vm906_vm1, %v901_v46  ;;  %v944_v58 = vsel %vm906_vm1, %v899_v11, 0 }
 0x2bc   : > { %v1267_v23 = vpop.permute.xlu0 %1266 }
 0x2bd   : > { %4836 = vmatprep.subr.bf16.mxu0 %v1267_v23 }
 0x2be   : > { %4837 = vmatpush3.bf16.msra.mxu0 %v1267_v23  ;;  %v895_v51 = vpop.permute.xlu1 %894 }
 0x2bf   : > { %v938_v63 = vsel %vm906_vm1, %v895_v51, 0 }
 0x2c0   : > { %v1263_v57 = vpop.permute.xlu0 %1262 }
 0x2c2   : > { %4809 = vmatpush3.bf16.xpose.msra.mxu1 %v947_v52  ;;  %v891_v28 = vpop.permute.xlu1 %890 }
 0x2c3   : > { %5151 = vmatprep.subr.msk.bf16.mxu1 %vm906_vm1, %v899_v11  ;;  %v932_v47 = vsel %vm906_vm1, %v891_v28, 0 }
 0x2c4   : > { %v1261_v44 = vpop.permute.xlu0 %1260 }
 0x2c6   : > { %v1257_v29 = vpop.permute.xlu1 %1256 }
 0x2c8   : > { %v1259_v37 = vpop.permute.xlu0 %1258 }
 0x2ca   : > { %4811 = vmatpush3.bf16.xpose.msra.mxu1 %v944_v58  ;;  %v1265_v35 = vpop.permute.xlu1 %1264 }
 0x2cb   : > { %5152 = vmatprep.subr.msk.bf16.mxu1 %vm906_vm1, %v897_v43  ;;  %4838 = vmatprep.subr.bf16.mxu0 %v1265_v35 }
 0x2cc   : > { %4839 = vmatpush3.bf16.msra.mxu0 %v1265_v35 }
 0x2cd   : > { %4840 = vmatprep.subr.bf16.mxu0 %v1263_v57 }
 0x2d0   : > { %4841 = vmatpush3.bf16.msra.mxu0 %v1263_v57 }
 0x2d1   : > { %4842 = vmatprep.subr.bf16.mxu0 %v1261_v44 }
 0x2d2   : > { %4813 = vmatpush3.bf16.xpose.msra.mxu1 %v941_v60 }
 0x2d3   : > { %5153 = vmatprep.subr.msk.bf16.mxu1 %vm906_vm1, %v895_v51 }
 0x2d4   : > { %4843 = vmatpush3.bf16.msra.mxu0 %v1261_v44 }
 0x2d5   : > { %4844 = vmatprep.subr.bf16.mxu0 %v1259_v37 }
 0x2d8   : > { %4845 = vmatpush3.bf16.msra.mxu0 %v1259_v37 }
 0x2d9   : > { %4846 = vmatprep.subr.bf16.mxu0 %v1257_v29 }
 0x2da   : > { %4815 = vmatpush3.bf16.xpose.msra.mxu1 %v938_v63 }
 0x2db   : > { %5154 = vmatprep.subr.msk.bf16.mxu1 %vm906_vm1, %v893_v48 }
 0x2dc   : > { %4847 = vmatpush3.bf16.msra.mxu0 %v1257_v29 }
 0x2e2   : > { %4817 = vmatpush3.bf16.xpose.msra.mxu1 %v935_v21 }
 0x2e3   : > { %5155 = vmatprep.subr.msk.bf16.mxu1 %vm906_vm1, %v891_v28 }
 0x2ea   : > { %4819 = vmatpush3.bf16.xpose.msra.mxu1 %v932_v47 }
 0x2f1   : > { %4821 = vmatmul.mubr.msk.bf16.vlgmr.msra.gmra.mxu1 %vm906_vm1, %v6135_v20 }
 0x2f2   : > { %4824 = vmatprep.mubr.msk.bf16.mxu1 %vm906_vm1, %v6142_v40 }
 0x2f9   : > { %4825 = vmatmul.mubr.msk.bf16.gmra.mxu1 %vm906_vm1, %v6129_v33 }
 0x2fa   : > { %4828 = vmatprep.mubr.msk.bf16.mxu1 %vm906_vm1, %v6138_v38 }
 0x301   : > { %4829 = vmatmul.mubr.msk.bf16.gmra.mxu1 %vm906_vm1, %v6132_v34 }
 0x302   : > { %4832 = vmatprep.mubr.msk.bf16.mxu1 %vm906_vm1, %v6126_v31 }
 0x309   : > { %4833 = vmatmul.mubr.msk.bf16.gmra.mxu1 %vm906_vm1, %v6124_v30 }
 0x3b1   : > { %v4822_v5 = vpop.f32.mrf.mxu1 }
 0x3b2   : > { %v1054_v45 = vmul.f32 0.35355338, %v4822_v5 }
 0x3b3   : > { %v989_v32 = vpop.f32.mrf.mxu1 }
 0x3b4   : > { %v1052_v9 = vmul.f32 0.35355338, %v989_v32  ;;  %v6193_v54 = vadd.f32 %v1054_v45, %v6190_v7 }
 0x3b5   : > { %v4823_v24 = vpop.f32.mrf.mxu1 }
 0x3b6   : > { %1088 = vmax.xlane.f32.xlu0 %v6193_v54  ;;  %v1055_v15 = vmul.f32 0.35355338, %v4823_v24  ;;  %v6197_v19 = vadd.f32 %v1052_v9, %v6190_v7 }
 0x3b7   : > { %v992_v14 = vpop.f32.mrf.mxu1 }
 0x3b8   : > { %v1053_v18 = vmul.f32 0.35355338, %v992_v14  ;;  %v6205_v0 = vadd.f32 %v1055_v15, %v6190_v7 }
 0x3b9   : > { %v4826_v22 = vpop.f32.mrf.mxu1 }
 0x3ba   : > { %1084 = vmax.xlane.f32.xlu0 %v6197_v19  ;;  %v6201_v16 = vadd.f32 %v1053_v18, %v6190_v7  ;;  %v1058_v58 = vmul.f32 0.35355338, %v4826_v22 }
 0x3bb   : > { %v1005_v26 = vpop.f32.mrf.mxu1 }
 0x3bc   : > { %1086 = vmax.xlane.f32.xlu1 %v6201_v16  ;;  %v1056_v35 = vmul.f32 0.35355338, %v1005_v26  ;;  %v6231_v44 = vadd.f32 %v1058_v58, %v6190_v7 }
 0x3bd   : > { %v4827_v10 = vpop.f32.mrf.mxu1 }
 0x3be   : > { %v1059_v41 = vmul.f32 0.35355338, %v4827_v10  ;;  %1090 = vmax.xlane.f32.xlu0 %v6205_v0  ;;  %v6235_v37 = vadd.f32 %v1056_v35, %v6190_v7 }
 0x3bf   : > { %v1008_v42 = vpop.f32.mrf.mxu1 }
 0x3c0   : > { %v1057_v43 = vmul.f32 0.35355338, %v1008_v42  ;;  %v6209_v46 = vadd.f32 %v1059_v41, %v6190_v7  ;;  %v1253_v41 = vpop.permute.xlu1 %1252 }
 0x3c1   : > { %v4830_v48 = vpop.f32.mrf.mxu1 }
 0x3c2   : > { %1098 = vmax.xlane.f32.xlu1 %v6209_v46  ;;  %v6213_v11 = vadd.f32 %v1057_v43, %v6190_v7  ;;  %v1062_v60 = vmul.f32 0.35355338, %v4830_v48 }
 0x3c3   : > { %v1021_v50 = vpop.f32.mrf.mxu1 }
 0x3c4   : > { %v1060_v21 = vmul.f32 0.35355338, %v1021_v50  ;;  %v6239_v47 = vadd.f32 %v1062_v60, %v6190_v7 }
 0x3c5   : > { %v4831_v23 = vpop.f32.mrf.mxu1 }
 0x3c6   : > { %v1063_v51 = vmul.f32 0.35355338, %v4831_v23  ;;  %1094 = vmax.xlane.f32.xlu1 %v6213_v11  ;;  %v6243_v5 = vadd.f32 %v1060_v21, %v6190_v7 }
 0x3c7   : > { %v1024_v52 = vpop.f32.mrf.mxu1 }
 0x3c8   : > { %v1061_v28 = vmul.f32 0.35355338, %v1024_v52  ;;  %v6217_v29 = vadd.f32 %v1063_v51, %v6190_v7 }
 0x3c9   : > { %v4834_v63 = vpop.f32.mrf.mxu1 }
 0x3ca   : > { %1106 = vmax.xlane.f32.xlu1 %v6217_v29  ;;  %v6221_v57 = vadd.f32 %v1061_v28, %v6190_v7  ;;  %v1066_v25 = vmul.f32 0.35355338, %v4834_v63 }
 0x3cb   : > { %v1037_v2 = vpop.f32.mrf.mxu1 }
 0x3cc   : > { %v1064_v45 = vmul.f32 0.35355338, %v1037_v2  ;;  %v6247_v9 = vadd.f32 %v1066_v25, %v6190_v7 }
 0x3cd   : > { %v4835_v6 = vpop.f32.mrf.mxu1 }
 0x3ce   : > { %1102 = vmax.xlane.f32.xlu1 %v6221_v57  ;;  %v1067_v32 = vmul.f32 0.35355338, %v4835_v6  ;;  %v6251_v15 = vadd.f32 %v1064_v45, %v6190_v7 }
 0x3cf   : > { %v1040_v24 = vpop.f32.mrf.mxu1 }
 0x3d0   : > { %v1065_v14 = vmul.f32 0.35355338, %v1040_v24  ;;  %v6254_v18 = vadd.f32 %v1067_v32, %v6190_v7 }
 0x3d2   : > { %v6259_v22 = vadd.f32 %v1065_v14, %v6190_v7 }
 0x3d4   : > { %1254 = vrot.lane.b32.xlu0 %v6135_v20, %s5697_s22  ;;  %s6372_s22 = scalar_lea.vmem [#allocation3], %s4472_s16  ;;  %s5705_s16 = smov 72  }
 0x3d5   : > { %s4381_s0 = sshll.u32 %s6372_s22, 4  ;;  %s7915_s0 = int_to_ptr.vmem [resolvable:$true] %s4381_s0 }
 0x3d6   : > { %p5641_p0 = scmp.lt.s32.totalorder %s7915_s0, %s5639_s2 }
 0x3df   : > { %1417 = vrot.lane.b32.xlu1 %v6126_v31, %s5699_s23 }
 0x3e3   : > { %1413 = vrot.lane.b32.xlu1 %v6138_v38, %s5699_s23 }
 0x3f3   : > { %1096 = vmax.xlane.f32.xlu0 %v6231_v44 }
 0x3f7   : > { %1092 = vmax.xlane.f32.xlu0 %v6235_v37 }
 0x3fb   : > { %1104 = vmax.xlane.f32.xlu0 %v6239_v47 }
 0x3ff   : > { %1100 = vmax.xlane.f32.xlu0 %v6243_v5 }
 0x403   : > { %1112 = vmax.xlane.f32.xlu0 %v6247_v9 }
 0x407   : > { %1108 = vmax.xlane.f32.xlu0 %v6251_v15  ;;  %1114 = vmax.xlane.f32.xlu1 %v6254_v18 }
 0x40b   : > { %1110 = vmax.xlane.f32.xlu1 %v6259_v22 }
 0x41d   : > { %1419 = vrot.lane.b32.xlu0 %v6124_v30, %s5699_s23 }
 0x421   : > { %1415 = vrot.lane.b32.xlu0 %v6132_v34, %s5699_s23 }
 0x425   : > { %1411 = vrot.lane.b32.xlu0 %v6129_v33, %s5699_s23 }
 0x43f   : > { %v1089_v26 = vpop.xlane.xlu0 %1088 }
 0x440   : > { %v1118_v10 = vsub.f32 %v6193_v54, %v1089_v26 }
 0x442   : > { %v1136_v42 = vmul.f32 1.442695, %v1118_v10 }
 0x443   : > { %v1085_v43 = vpop.xlane.xlu0 %1084 }
 0x444   : > { %5282 = vpow2.f32 %v1136_v42  ;;  %v1116_v48 = vsub.f32 %v6197_v19, %v1085_v43 }
 0x445   : > { %v1087_v50 = vpop.xlane.xlu1 %1086 }
 0x446   : > { %v1132_v23 = vmul.f32 1.442695, %v1116_v48  ;;  %v1117_v52 = vsub.f32 %v6201_v16, %v1087_v50 }
 0x447   : > { %v1091_v51 = vpop.xlane.xlu0 %1090 }
 0x448   : > { %5284 = vpow2.f32 %v1132_v23  ;;  %v1119_v28 = vsub.f32 %v6205_v0, %v1091_v51  ;;  %v1134_v60 = vmul.f32 1.442695, %v1117_v52 }
 0x44a   : > { %v1138_v58 = vmul.f32 1.442695, %v1119_v28 }
 0x44b   : > { %v1255_v35 = vpop.permute.xlu0 %1254  ;;  %v1099_v63 = vpop.xlane.xlu1 %1098 }
 0x44c   : > { %5286 = vpow2.f32 %v1138_v58  ;;  %4848 = vmatprep.subr.bf16.mxu0 %v1255_v35  ;;  %v1123_v24 = vsub.f32 %v6209_v46, %v1099_v63 }
 0x44d   : > { %4849 = vmatpush3.bf16.msra.mxu0 %v1255_v35  ;;  %5288 = vpow2.f32 %v1134_v60 }
 0x44e   : > { %4850 = vmatprep.subr.bf16.mxu0 %v1253_v41  ;;  %v1146_v43 = vmul.f32 1.442695, %v1123_v24 }
 0x44f   : > { %v1095_v21 = vpop.xlane.xlu1 %1094 }
 0x450   : > { %v1121_v25 = vsub.f32 %v6213_v11, %v1095_v21 }
 0x451   : > { %v6272_v54 = vpop.eup %5282  ;;  %4851 = vmatpush3.bf16.msra.mxu0 %v1253_v41 }
 0x452   : > { %1168 = vadd.xlane.f32.xlu1 %v6272_v54  ;;  %v1142_v14 = vmul.f32 1.442695, %v1121_v25 }
 0x453   : > { %v1107_v2 = vpop.xlane.xlu1 %1106 }
 0x455   : > { %v6275_v19 = vpop.eup %5284 }
 0x456   : > { %1164 = vadd.xlane.f32.xlu1 %v6275_v19 }
 0x457   : > { %v1103_v26 = vpop.xlane.xlu1 %1102 }
 0x459   : > { %v6278_v16 = vpop.eup %5286 }
 0x45a   : > { %1170 = vadd.xlane.f32.xlu1 %v6278_v16  ;;  %v6281_v0 = vpop.eup %5288 }
 0x45b   : > { %v6291_v11 = vpop.permute.xlu1 %1417 }
 0x45e   : > { %1166 = vadd.xlane.f32.xlu1 %v6281_v0 }
 0x45f   : > { %v6296_v58 = vpop.permute.xlu1 %1413 }
 0x46f   : > { %1409 = vrot.lane.b32.xlu1 %v6142_v40, %s5699_s23 }
 0x47c   : > { %v1097_v6 = vpop.xlane.xlu0 %1096 }
 0x47d   : > { %v1122_v45 = vsub.f32 %v6231_v44, %v1097_v6  ;;  %v1127_v44 = vsub.f32 %v6217_v29, %v1107_v2 }
 0x47f   : > { %v1144_v32 = vmul.f32 1.442695, %v1122_v45  ;;  %v1154_v28 = vmul.f32 1.442695, %v1127_v44 }
 0x480   : > { %v1093_v10 = vpop.xlane.xlu0 %1092 }
 0x481   : > { %5290 = vpow2.f32 %v1144_v32  ;;  %v1120_v41 = vsub.f32 %v6235_v37, %v1093_v10  ;;  %v1125_v37 = vsub.f32 %v6221_v57, %v1103_v26 }
 0x482   : > { %5292 = vpow2.f32 %v1142_v14 }
 0x483   : > { %v1140_v42 = vmul.f32 1.442695, %v1120_v41  ;;  %v1150_v29 = vmul.f32 1.442695, %v1125_v37 }
 0x484   : > { %v1105_v48 = vpop.xlane.xlu0 %1104 }
 0x485   : > { %5294 = vpow2.f32 %v1140_v42  ;;  %v1126_v50 = vsub.f32 %v6239_v47, %v1105_v48 }
 0x486   : > { %5296 = vpow2.f32 %v1146_v43 }
 0x487   : > { %v1152_v23 = vmul.f32 1.442695, %v1126_v50 }
 0x488   : > { %v1101_v46 = vpop.xlane.xlu0 %1100 }
 0x489   : > { %5298 = vpow2.f32 %v1152_v23  ;;  %v1124_v51 = vsub.f32 %v6243_v5, %v1101_v46 }
 0x48b   : > { %v1148_v52 = vmul.f32 1.442695, %v1124_v51 }
 0x48c   : > { %v1113_v35 = vpop.xlane.xlu0 %1112 }
 0x48d   : > { %5300 = vpow2.f32 %v1148_v52  ;;  %v1130_v47 = vsub.f32 %v6247_v9, %v1113_v35 }
 0x48e   : > { %v6299_v60 = vpop.eup %5290  ;;  %5302 = vpow2.f32 %v1154_v28 }
 0x48f   : > { %v1160_v63 = vmul.f32 1.442695, %v1130_v47  ;;  %1176 = vadd.xlane.f32.xlu0 %v6299_v60  ;;  %v6302_v5 = vpop.eup %5292 }
 0x490   : > { %v1109_v21 = vpop.xlane.xlu0 %1108  ;;  %v1115_v2 = vpop.xlane.xlu1 %1114 }
 0x491   : > { %5304 = vpow2.f32 %v1160_v63  ;;  %v1128_v57 = vsub.f32 %v6251_v15, %v1109_v21  ;;  %v1131_v25 = vsub.f32 %v6254_v18, %v1115_v2 }
 0x492   : > { %v6306_v6 = vpop.eup %5294  ;;  %5306 = vpow2.f32 %v1150_v29 }
 0x493   : > { %v1156_v45 = vmul.f32 1.442695, %v1128_v57  ;;  %1172 = vadd.xlane.f32.xlu0 %v6306_v6  ;;  %1174 = vadd.xlane.f32.xlu1 %v6302_v5  ;;  %v1162_v9 = vmul.f32 1.442695, %v1131_v25  ;;  %v6312_v14 = vpop.eup %5296  ;;  %v1458_v25 = vsel %vm906_vm1, %v6296_v58, 0 }
 0x494   : > { %v6310_v32 = vpop.permute.xlu0 %1419  ;;  %v1111_v24 = vpop.xlane.xlu1 %1110 }
 0x495   : > { %5308 = vpow2.f32 %v1156_v45  ;;  %v1129_v26 = vsub.f32 %v6259_v22, %v1111_v24  ;;  %5156 = vmatprep.subr.msk.bf16.mxu0 %vm906_vm1, %v6310_v32  ;;  %v1467_v57 = vsel %vm906_vm1, %v6310_v32, 0 }
 0x496   : > { %v6317_v15 = vpop.eup %5298  ;;  %5310 = vpow2.f32 %v1162_v9 }
 0x497   : > { %v1158_v18 = vmul.f32 1.442695, %v1129_v26  ;;  %1178 = vadd.xlane.f32.xlu0 %v6312_v14  ;;  %1184 = vadd.xlane.f32.xlu1 %v6317_v15 }
 0x499   : > { %5312 = vpow2.f32 %v1158_v18 }
 0x49a   : > { %v6321_v10 = vpop.eup %5300 }
 0x49b   : > { %1180 = vadd.xlane.f32.xlu1 %v6321_v10  ;;  %v6324_v41 = vpop.eup %5302 }
 0x49e   : > { %v6326_v42 = vpop.eup %5304 }
 0x49f   : > { %1192 = vadd.xlane.f32.xlu0 %v6326_v42  ;;  %1186 = vadd.xlane.f32.xlu1 %v6324_v41  ;;  %v6330_v22 = vpop.eup %5306 }
 0x4a2   : > { %v6332_v43 = vpop.eup %5308 }
 0x4a3   : > { %1188 = vadd.xlane.f32.xlu0 %v6332_v43  ;;  %1182 = vadd.xlane.f32.xlu1 %v6330_v22  ;;  %v6336_v48 = vpop.eup %5310 }
 0x4a6   : > { %v6338_v50 = vpop.eup %5312 }
 0x4a7   : > { %1194 = vadd.xlane.f32.xlu0 %v6336_v48  ;;  %1190 = vadd.xlane.f32.xlu1 %v6338_v50 }
 0x4b8   : > { %1405 = vrot.lane.b32.xlu1 %v6120_v8, %s5699_s23 }
 0x4bc   : > { %1391 = vrot.lane.b32.xlu1 %v6135_v20, %s5700_s24 }
 0x4bd   : > { %1407 = vrot.lane.b32.xlu0 %v6135_v20, %s5699_s23  ;;  %s5702_s23 = smov 80  }
 0x4c0   : > { %1395 = vrot.lane.b32.xlu1 %v6129_v33, %s5700_s24 }
 0x4c1   : > { %1389 = vrot.lane.b32.xlu0 %v6120_v8, %s5700_s24 }
 0x4c4   : > { %1399 = vrot.lane.b32.xlu1 %v6132_v34, %s5700_s24 }
 0x4c5   : > { %1393 = vrot.lane.b32.xlu0 %v6142_v40, %s5700_s24 }
 0x4c8   : > { %1403 = vrot.lane.b32.xlu1 %v6124_v30, %s5700_s24 }
 0x4c9   : > { %1397 = vrot.lane.b32.xlu0 %v6138_v38, %s5700_s24 }
 0x4cc   : > { %1779 = vrot.lane.b32.xlu1 %v6126_v31, %s5701_s30 }
 0x4cd   : > { %1401 = vrot.lane.b32.xlu0 %v6126_v31, %s5700_s24  ;;  %s5703_s24 = smov 112  }
 0x4d0   : > { %1771 = vrot.lane.b32.xlu1 %v6142_v40, %s5701_s30 }
 0x4d1   : > { %1781 = vrot.lane.b32.xlu0 %v6124_v30, %s5701_s30 }
 0x4d4   : > { %1767 = vrot.lane.b32.xlu1 %v6120_v8, %s5701_s30 }
 0x4d5   : > { %1777 = vrot.lane.b32.xlu0 %v6132_v34, %s5701_s30 }
 0x4d9   : > { %1775 = vrot.lane.b32.xlu0 %v6138_v38, %s5701_s30 }
 0x4db   : > { %v1169_v23 = vpop.xlane.xlu1 %1168 }
 0x4dc   : > { %5314 = vrcp.f32 %v1169_v23 }
 0x4dd   : > { %1773 = vrot.lane.b32.xlu0 %v6129_v33, %s5701_s30 }
 0x4df   : > { %v1165_v44 = vpop.xlane.xlu1 %1164 }
 0x4e0   : > { %5316 = vrcp.f32 %v1165_v44 }
 0x4e3   : > { %v1171_v46 = vpop.xlane.xlu1 %1170 }
 0x4e4   : > { %5318 = vrcp.f32 %v1171_v46 }
 0x4e7   : > { %v1167_v51 = vpop.xlane.xlu1 %1166 }
 0x4e8   : > { %5320 = vrcp.f32 %v1167_v51 }
 0x4e9   : > { %v5315_v52 = vpop.eup %5314 }
 0x4ea   : > { %v1214_v28 = vmul.f32 %v5315_v52, %v6272_v54 }
 0x4eb   : > { %v1410_v9 = vpop.permute.xlu1 %1409 }
 0x4ec   : > { %1230 = vst [vmem:[%s6372_s22 + $0x10] sm:$0xff] %v1214_v28 }
 0x4ed   : > { %v5317_v37 = vpop.eup %5316 }
 0x4ee   : > { %v1212_v35 = vmul.f32 %v5317_v37, %v6275_v19  ;;  %v1464_v19 = vsel %vm906_vm1, %v6291_v11, 0 }
 0x4f0   : > { %1228 = vst [vmem:[%s6372_s22] sm:$0xff] %v1212_v35 }
 0x4f1   : > { %v5319_v47 = vpop.eup %5318 }
 0x4f2   : > { %v1215_v63 = vmul.f32 %v5319_v47, %v6278_v16  ;;  %v1416_v16 = vpop.permute.xlu0 %1415 }
 0x4f4   : > { %1231 = vst [vmem:[%s6372_s22 + $0x18] sm:$0xff] %v1215_v63  ;;  %v1245_v2 = vpack.c.bf16 %v1215_v63, %v1214_v28 }
 0x4f5   : > { %v5321_v29 = vpop.eup %5320 }
 0x4f6   : > { %v1213_v21 = vmul.f32 %v5321_v29, %v6281_v0  ;;  %v1461_v0 = vsel %vm906_vm1, %v1416_v16, 0  ;;  %v1412_v45 = vpop.permute.xlu0 %1411 }
 0x4f8   : > { %1229 = vst [vmem:[%s6372_s22 + $0x8] sm:$0xff] %v1213_v21  ;;  %v1244_v54 = vpack.c.bf16 %v1213_v21, %v1212_v35 }
 0x4fa   : > { %4852 = vmatprep.mubr.bf16.mxu0 %v1244_v54 }
 0x4fb   : > { %4853 = vmatmul.mubr.bf16.vlgmr.msra.gmra.mxu0 %v1245_v2 }
 0x4fc   : > { %4869 = vmatpush3.bf16.xpose.msra.mxu0 %v1467_v57 }
 0x4fd   : > { %5157 = vmatprep.subr.msk.bf16.mxu0 %vm906_vm1, %v6291_v11  ;;  %v1455_v11 = vsel %vm906_vm1, %v1412_v45, 0 }
 0x504   : > { %4871 = vmatpush3.bf16.xpose.msra.mxu0 %v1464_v19 }
 0x505   : > { %5158 = vmatprep.subr.msk.bf16.mxu0 %vm906_vm1, %v1416_v16 }
 0x50c   : > { %4873 = vmatpush3.bf16.xpose.msra.mxu0 %v1461_v0 }
 0x50d   : > { %5159 = vmatprep.subr.msk.bf16.mxu0 %vm906_vm1, %v6296_v58  ;;  %v1452_v58 = vsel %vm906_vm1, %v1410_v9, 0 }
 0x514   : > { %4875 = vmatpush3.bf16.xpose.msra.mxu0 %v1458_v25 }
 0x515   : > { %5160 = vmatprep.subr.msk.bf16.mxu0 %vm906_vm1, %v1412_v45 }
 0x518   : > { %v1177_v32 = vpop.xlane.xlu0 %1176 }
 0x519   : > { %5322 = vrcp.f32 %v1177_v32 }
 0x51c   : > { %4877 = vmatpush3.bf16.xpose.msra.mxu0 %v1455_v11  ;;  %v1173_v24 = vpop.xlane.xlu0 %1172  ;;  %v1175_v26 = vpop.xlane.xlu1 %1174 }
 0x51d   : > { %5324 = vrcp.f32 %v1173_v24  ;;  %5161 = vmatprep.subr.msk.bf16.mxu0 %vm906_vm1, %v1410_v9 }
 0x51e   : > { %5326 = vrcp.f32 %v1175_v26 }
 0x520   : > { %v1179_v18 = vpop.xlane.xlu0 %1178  ;;  %v1185_v23 = vpop.xlane.xlu1 %1184 }
 0x521   : > { %5328 = vrcp.f32 %v1179_v18 }
 0x522   : > { %5330 = vrcp.f32 %v1185_v23 }
 0x524   : > { %4879 = vmatpush3.bf16.xpose.msra.mxu0 %v1452_v58  ;;  %v1181_v44 = vpop.xlane.xlu1 %1180 }
 0x525   : > { %5332 = vrcp.f32 %v1181_v44 }
 0x526   : > { %v5323_v46 = vpop.eup %5322 }
 0x527   : > { %v1218_v51 = vmul.f32 %v5323_v46, %v6299_v60 }
 0x528   : > { %v1193_v52 = vpop.xlane.xlu0 %1192  ;;  %v1187_v28 = vpop.xlane.xlu1 %1186 }
 0x529   : > { %5334 = vrcp.f32 %v1193_v52  ;;  %1234 = vst [vmem:[%s6372_s22 + $0x30] sm:$0xff] %v1218_v51 }
 0x52a   : > { %v5325_v37 = vpop.eup %5324  ;;  %5336 = vrcp.f32 %v1187_v28 }
 0x52b   : > { %v5327_v35 = vpop.eup %5326  ;;  %v1216_v47 = vmul.f32 %v5325_v37, %v6306_v6 }
 0x52c   : > { %v1189_v63 = vpop.xlane.xlu0 %1188  ;;  %v1183_v29 = vpop.xlane.xlu1 %1182  ;;  %v1217_v21 = vmul.f32 %v5327_v35, %v6302_v5 }
 0x52d   : > { %5338 = vrcp.f32 %v1189_v63  ;;  %1232 = vst [vmem:[%s6372_s22 + $0x20] sm:$0xff] %v1216_v47 }
 0x52e   : > { %v5329_v54 = vpop.eup %5328  ;;  %5340 = vrcp.f32 %v1183_v29  ;;  %1233 = vst [vmem:[%s6372_s22 + $0x28] sm:$0xff] %v1217_v21  ;;  %v1246_v60 = vpack.c.bf16 %v1217_v21, %v1216_v47 }
 0x52f   : > { %v5331_v2 = vpop.eup %5330  ;;  %v1219_v57 = vmul.f32 %v5329_v54, %v6312_v14 }
 0x530   : > { %4856 = vmatprep.mubr.bf16.mxu0 %v1246_v60  ;;  %v1195_v19 = vpop.xlane.xlu0 %1194  ;;  %v1191_v16 = vpop.xlane.xlu1 %1190  ;;  %v1222_v6 = vmul.f32 %v5331_v2, %v6317_v15 }
 0x531   : > { %5342 = vrcp.f32 %v1195_v19  ;;  %1235 = vst [vmem:[%s6372_s22 + $0x38] sm:$0xff] %v1219_v57  ;;  %v1247_v0 = vpack.c.bf16 %v1219_v57, %v1218_v51 }
 0x532   : > { %v5333_v5 = vpop.eup %5332  ;;  %5344 = vrcp.f32 %v1191_v16  ;;  %1238 = vst [vmem:[%s6372_s22 + $0x50] sm:$0xff] %v1222_v6 }
 0x533   : > { %4857 = vmatmul.mubr.bf16.gmra.mxu0 %v1247_v0  ;;  %v1220_v25 = vmul.f32 %v5333_v5, %v6321_v10 }
 0x534   : > { %v1408_v45 = vpop.permute.xlu0 %1407  ;;  %v1406_v9 = vpop.permute.xlu1 %1405 }
 0x535   : > { %5162 = vmatprep.subr.msk.bf16.mxu0 %vm906_vm1, %v1408_v45  ;;  %v1449_v14 = vsel %vm906_vm1, %v1408_v45, 0  ;;  %1236 = vst [vmem:[%s6372_s22 + $0x40] sm:$0xff] %v1220_v25  ;;  %v1446_v52 = vsel %vm906_vm1, %v1406_v9, 0 }
 0x536   : > { %v5335_v32 = vpop.eup %5334  ;;  %4881 = vmatpush3.bf16.xpose.msra.mxu0 %v1449_v14 }
 0x537   : > { %v5337_v15 = vpop.eup %5336  ;;  %5163 = vmatprep.subr.msk.bf16.mxu0 %vm906_vm1, %v1406_v9  ;;  %v1226_v11 = vmul.f32 %v5335_v32, %v6326_v42 }
 0x538   : > { %v1390_v24 = vpop.permute.xlu0 %1389  ;;  %v1392_v26 = vpop.permute.xlu1 %1391  ;;  %v1223_v10 = vmul.f32 %v5337_v15, %v6324_v41 }
 0x539   : > { %1242 = vst [vmem:[%s6372_s22 + $0x70] sm:$0xff] %v1226_v11 }
 0x53a   : > { %v5339_v18 = vpop.eup %5338  ;;  %1239 = vst [vmem:[%s6372_s22 + $0x58] sm:$0xff] %v1223_v10  ;;  %v1249_v37 = vpack.c.bf16 %v1223_v10, %v1222_v6 }
 0x53b   : > { %v5341_v23 = vpop.eup %5340  ;;  %v1224_v58 = vmul.f32 %v5339_v18, %v6332_v43 }
 0x53c   : > { %v1394_v44 = vpop.permute.xlu0 %1393  ;;  %v1396_v46 = vpop.permute.xlu1 %1395  ;;  %v1221_v51 = vmul.f32 %v5341_v23, %v6330_v22 }
 0x53d   : > { %1240 = vst [vmem:[%s6372_s22 + $0x60] sm:$0xff] %v1224_v58 }
 0x53e   : > { %v5343_v42 = vpop.eup %5342  ;;  %4883 = vmatpush3.bf16.xpose.msra.mxu0 %v1446_v52  ;;  %1237 = vst [vmem:[%s6372_s22 + $0x48] sm:$0xff] %v1221_v51  ;;  %v1248_v28 = vpack.c.bf16 %v1221_v51, %v1220_v25 }
 0x53f   : > { %v5345_v41 = vpop.eup %5344  ;;  %v1227_v35 = vmul.f32 %v5343_v42, %v6336_v48 }
 0x540   : > { %4860 = vmatprep.mubr.bf16.mxu0 %v1248_v28  ;;  %v1398_v47 = vpop.permute.xlu0 %1397  ;;  %v1400_v43 = vpop.permute.xlu1 %1399  ;;  %v1225_v63 = vmul.f32 %v5345_v41, %v6338_v50 }
 0x541   : > { %4861 = vmatmul.mubr.bf16.gmra.mxu0 %v1249_v37  ;;  %1243 = vst [vmem:[%s6372_s22 + $0x78] sm:$0xff] %v1227_v35  ;;  %v1251_v54 = vpack.c.bf16 %v1227_v35, %v1226_v11 }
 0x542   : > { %1241 = vst [vmem:[%s6372_s22 + $0x68] sm:$0xff] %v1225_v63  ;;  %v1250_v22 = vpack.c.bf16 %v1225_v63, %v1224_v58 }
 0x544   : > { %4864 = vmatprep.mubr.bf16.mxu0 %v1250_v22  ;;  %v1402_v29 = vpop.permute.xlu0 %1401  ;;  %v1404_v21 = vpop.permute.xlu1 %1403 }
 0x548   : > { %v1782_v60 = vpop.permute.xlu0 %1781  ;;  %v1780_v2 = vpop.permute.xlu1 %1779 }
 0x549   : > { %4865 = vmatmul.mubr.bf16.gmra.mxu0 %v1251_v54  ;;  %4900 = vmatprep.subr.bf16.mxu1 %v1782_v60 }
 0x54a   : > { %4884 = vmatprep.mubr.msk.bf16.mxu0 %vm906_vm1, %v1390_v24  ;;  %4901 = vmatpush3.bf16.msra.mxu1 %v1782_v60 }
 0x54b   : > { %4902 = vmatprep.subr.bf16.mxu1 %v1780_v2 }
 0x54c   : > { %v1778_v48 = vpop.permute.xlu0 %1777  ;;  %v1772_v19 = vpop.permute.xlu1 %1771 }
 0x54e   : > { %4903 = vmatpush3.bf16.msra.mxu1 %v1780_v2 }
 0x54f   : > { %4904 = vmatprep.subr.bf16.mxu1 %v1778_v48 }
 0x550   : > { %v1776_v50 = vpop.permute.xlu0 %1775 }
 0x551   : > { %4885 = vmatmul.mubr.msk.bf16.vlgmr.msra.gmra.mxu0 %vm906_vm1, %v1392_v26 }
 0x552   : > { %4888 = vmatprep.mubr.msk.bf16.mxu0 %vm906_vm1, %v1394_v44  ;;  %4905 = vmatpush3.bf16.msra.mxu1 %v1778_v48 }
 0x553   : > { %4906 = vmatprep.subr.bf16.mxu1 %v1776_v50 }
 0x554   : > { %v1774_v57 = vpop.permute.xlu0 %1773 }
 0x556   : > { %4907 = vmatpush3.bf16.msra.mxu1 %v1776_v50 }
 0x557   : > { %4908 = vmatprep.subr.bf16.mxu1 %v1774_v57 }
 0x559   : > { %4889 = vmatmul.mubr.msk.bf16.gmra.mxu0 %vm906_vm1, %v1396_v46 }
 0x55a   : > { %4892 = vmatprep.mubr.msk.bf16.mxu0 %vm906_vm1, %v1398_v47  ;;  %4909 = vmatpush3.bf16.msra.mxu1 %v1774_v57 }
 0x55b   : > { %4910 = vmatprep.subr.bf16.mxu1 %v1772_v19 }
 0x55e   : > { %4911 = vmatpush3.bf16.msra.mxu1 %v1772_v19 }
 0x561   : > { %4893 = vmatmul.mubr.msk.bf16.gmra.mxu0 %vm906_vm1, %v1400_v43 }
 0x562   : > { %4896 = vmatprep.mubr.msk.bf16.mxu0 %vm906_vm1, %v1402_v29 }
 0x569   : > { %4897 = vmatmul.mubr.msk.bf16.gmra.mxu0 %vm906_vm1, %v1404_v21 }
 0x5bb   : > { %v4854_v16 = vpop.f32.mrf.mxu0 }
 0x5bc   : > { %1375 = vst.msk [vmem:[#allocation2 + $0x10] sm:$0xff] %vm906_vm1, %v4854_v16 }
 0x5bd   : > { %v1310_v6 = vpop.f32.mrf.mxu0 }
 0x5be   : > { %1373 = vst.msk [vmem:[#allocation2] sm:$0xff] %vm906_vm1, %v1310_v6 }
 0x5bf   : > { %v4855_v0 = vpop.f32.mrf.mxu0 }
 0x5c0   : > { %1376 = vst.msk [vmem:[#allocation2 + $0x18] sm:$0xff] %vm906_vm1, %v4855_v0 }
 0x5c1   : > { %v1313_v5 = vpop.f32.mrf.mxu0 }
 0x5c2   : > { %1374 = vst.msk [vmem:[#allocation2 + $0x8] sm:$0xff] %vm906_vm1, %v1313_v5 }
 0x5f3   : > { %v4858_v25 = vpop.f32.mrf.mxu0 }
 0x5f4   : > { %1379 = vst.msk [vmem:[#allocation2 + $0x30] sm:$0xff] %vm906_vm1, %v4858_v25 }
 0x5f5   : > { %v1326_v45 = vpop.f32.mrf.mxu0 }
 0x5f6   : > { %1377 = vst.msk [vmem:[#allocation2 + $0x20] sm:$0xff] %vm906_vm1, %v1326_v45 }
 0x5f7   : > { %v4859_v9 = vpop.f32.mrf.mxu0 }
 0x5f8   : > { %1380 = vst.msk [vmem:[#allocation2 + $0x38] sm:$0xff] %vm906_vm1, %v4859_v9 }
 0x5f9   : > { %v1329_v14 = vpop.f32.mrf.mxu0 }
 0x5fa   : > { %1378 = vst.msk [vmem:[#allocation2 + $0x28] sm:$0xff] %vm906_vm1, %v1329_v14 }
 0x601   : > { %v4862_v32 = vpop.f32.mrf.mxu0 }
 0x602   : > { %1383 = vst.msk [vmem:[#allocation2 + $0x50] sm:$0xff] %vm906_vm1, %v4862_v32 }
 0x603   : > { %v1342_v15 = vpop.f32.mrf.mxu0 }
 0x604   : > { %1381 = vst.msk [vmem:[#allocation2 + $0x40] sm:$0xff] %vm906_vm1, %v1342_v15 }
 0x605   : > { %v4863_v11 = vpop.f32.mrf.mxu0 }
 0x606   : > { %1384 = vst.msk [vmem:[#allocation2 + $0x58] sm:$0xff] %vm906_vm1, %v4863_v11 }
 0x607   : > { %v1345_v24 = vpop.f32.mrf.mxu0 }
 0x608   : > { %1382 = vst.msk [vmem:[#allocation2 + $0x48] sm:$0xff] %vm906_vm1, %v1345_v24 }
 0x609   : > { %v4866_v26 = vpop.f32.mrf.mxu0 }
 0x60a   : > { %1387 = vst.msk [vmem:[#allocation2 + $0x70] sm:$0xff] %vm906_vm1, %v4866_v26 }
 0x60b   : > { %v1358_v10 = vpop.f32.mrf.mxu0 }
 0x60c   : > { %1385 = vst.msk [vmem:[#allocation2 + $0x60] sm:$0xff] %vm906_vm1, %v1358_v10 }
 0x60d   : > { %v4867_v18 = vpop.f32.mrf.mxu0 }
 0x60e   : > { %1388 = vst.msk [vmem:[#allocation2 + $0x78] sm:$0xff] %vm906_vm1, %v4867_v18 }
 0x60f   : > { %v1361_v23 = vpop.f32.mrf.mxu0 }
 0x610   : > { %1386 = vst.msk [vmem:[#allocation2 + $0x68] sm:$0xff] %vm906_vm1, %v1361_v23 }
 0x611   : > { %v4886_v58 = vpop.f32.mrf.mxu0 }
 0x612   : > { %v1568_v44 = vmul.f32 0.35355338, %v4886_v58 }
 0x613   : > { %v1503_v46 = vpop.f32.mrf.mxu0 }
 0x614   : > { %v6450_v51 = vadd.f32 %v1568_v44, %v6190_v7  ;;  %v1566_v52 = vmul.f32 0.35355338, %v1503_v46 }
 0x615   : > { %v4887_v42 = vpop.f32.mrf.mxu0 }
 0x616   : > { %1602 = vmax.xlane.f32.xlu0 %v6450_v51  ;;  %v6454_v41 = vadd.f32 %v1566_v52, %v6190_v7  ;;  %v1569_v37 = vmul.f32 0.35355338, %v4887_v42 }
 0x617   : > { %v1506_v28 = vpop.f32.mrf.mxu0 }
 0x618   : > { %v1567_v35 = vmul.f32 0.35355338, %v1506_v28  ;;  %v6461_v22 = vadd.f32 %v1569_v37, %v6190_v7 }
 0x619   : > { %v4890_v47 = vpop.f32.mrf.mxu0 }
 0x61a   : > { %v6457_v43 = vadd.f32 %v1567_v35, %v6190_v7  ;;  %1598 = vmax.xlane.f32.xlu0 %v6454_v41  ;;  %v1572_v45 = vmul.f32 0.35355338, %v4890_v47 }
 0x61b   : > { %v1519_v63 = vpop.f32.mrf.mxu0 }
 0x61c   : > { %1600 = vmax.xlane.f32.xlu1 %v6457_v43  ;;  %v6488_v9 = vadd.f32 %v1572_v45, %v6190_v7  ;;  %v1570_v14 = vmul.f32 0.35355338, %v1519_v63 }
 0x61d   : > { %v4891_v29 = vpop.f32.mrf.mxu0 }
 0x61e   : > { %v1573_v21 = vmul.f32 0.35355338, %v4891_v29  ;;  %1604 = vmax.xlane.f32.xlu0 %v6461_v22  ;;  %v6492_v32 = vadd.f32 %v1570_v14, %v6190_v7 }
 0x61f   : > { %v1522_v54 = vpop.f32.mrf.mxu0 }
 0x620   : > { %v6466_v60 = vadd.f32 %v1573_v21, %v6190_v7  ;;  %v1571_v2 = vmul.f32 0.35355338, %v1522_v54  ;;  %v1768_v21 = vpop.permute.xlu1 %1767 }
 0x621   : > { %v4894_v48 = vpop.f32.mrf.mxu0 }
 0x622   : > { %1612 = vmax.xlane.f32.xlu1 %v6466_v60  ;;  %v6470_v57 = vadd.f32 %v1571_v2, %v6190_v7  ;;  %v1576_v15 = vmul.f32 0.35355338, %v4894_v48 }
 0x623   : > { %v1535_v50 = vpop.f32.mrf.mxu0 }
 0x624   : > { %v6496_v24 = vadd.f32 %v1576_v15, %v6190_v7  ;;  %v1574_v26 = vmul.f32 0.35355338, %v1535_v50 }
 0x625   : > { %v4895_v19 = vpop.f32.mrf.mxu0 }
 0x626   : > { %v1577_v16 = vmul.f32 0.35355338, %v4895_v19  ;;  %1608 = vmax.xlane.f32.xlu1 %v6470_v57  ;;  %v6500_v18 = vadd.f32 %v1574_v26, %v6190_v7 }
 0x627   : > { %v1538_v6 = vpop.f32.mrf.mxu0 }
 0x628   : > { %v6474_v0 = vadd.f32 %v1577_v16, %v6190_v7  ;;  %v1575_v5 = vmul.f32 0.35355338, %v1538_v6 }
 0x629   : > { %v4898_v11 = vpop.f32.mrf.mxu0 }
 0x62a   : > { %1620 = vmax.xlane.f32.xlu1 %v6474_v0  ;;  %v6478_v25 = vadd.f32 %v1575_v5, %v6190_v7  ;;  %v1580_v23 = vmul.f32 0.35355338, %v4898_v11 }
 0x62b   : > { %v1551_v10 = vpop.f32.mrf.mxu0 }
 0x62c   : > { %v6504_v44 = vadd.f32 %v1580_v23, %v6190_v7  ;;  %v1578_v46 = vmul.f32 0.35355338, %v1551_v10 }
 0x62d   : > { %v4899_v58 = vpop.f32.mrf.mxu0 }
 0x62e   : > { %1616 = vmax.xlane.f32.xlu1 %v6478_v25  ;;  %v1581_v52 = vmul.f32 0.35355338, %v4899_v58  ;;  %v6508_v28 = vadd.f32 %v1578_v46, %v6190_v7 }
 0x62f   : > { %v1554_v42 = vpop.f32.mrf.mxu0 }
 0x630   : > { %v6511_v37 = vadd.f32 %v1581_v52, %v6190_v7  ;;  %v1579_v35 = vmul.f32 0.35355338, %v1554_v42 }
 0x632   : > { %v6516_v47 = vadd.f32 %v1579_v35, %v6190_v7 }
 0x634   : > { %1769 = vrot.lane.b32.xlu0 %v6135_v20, %s5701_s30  ;;  %s5704_s30 = smov 48  }
 0x63f   : > { %1997 = vrot.lane.b32.xlu1 %v6126_v31, %s5702_s23 }
 0x643   : > { %1993 = vrot.lane.b32.xlu1 %v6138_v38, %s5702_s23 }
 0x653   : > { %1610 = vmax.xlane.f32.xlu0 %v6488_v9 }
 0x657   : > { %1606 = vmax.xlane.f32.xlu0 %v6492_v32 }
 0x65b   : > { %1618 = vmax.xlane.f32.xlu0 %v6496_v24 }
 0x65f   : > { %1614 = vmax.xlane.f32.xlu0 %v6500_v18 }
 0x663   : > { %1626 = vmax.xlane.f32.xlu0 %v6504_v44 }
 0x667   : > { %1622 = vmax.xlane.f32.xlu0 %v6508_v28  ;;  %1628 = vmax.xlane.f32.xlu1 %v6511_v37 }
 0x66b   : > { %1624 = vmax.xlane.f32.xlu1 %v6516_v47 }
 0x67d   : > { %1999 = vrot.lane.b32.xlu0 %v6124_v30, %s5702_s23 }
 0x681   : > { %1995 = vrot.lane.b32.xlu0 %v6132_v34, %s5702_s23 }
 0x685   : > { %1991 = vrot.lane.b32.xlu0 %v6129_v33, %s5702_s23 }
 0x69f   : > { %v1603_v63 = vpop.xlane.xlu0 %1602 }
 0x6a0   : > { %v1632_v29 = vsub.f32 %v6450_v51, %v1603_v63 }
 0x6a2   : > { %v1650_v54 = vmul.f32 1.442695, %v1632_v29 }
 0x6a3   : > { %v1599_v2 = vpop.xlane.xlu0 %1598 }
 0x6a4   : > { %5346 = vpow2.f32 %v1650_v54  ;;  %v1630_v48 = vsub.f32 %v6454_v41, %v1599_v2 }
 0x6a5   : > { %v1601_v50 = vpop.xlane.xlu1 %1600 }
 0x6a6   : > { %v1646_v19 = vmul.f32 1.442695, %v1630_v48  ;;  %v1631_v6 = vsub.f32 %v6457_v43, %v1601_v50 }
 0x6a7   : > { %v1605_v16 = vpop.xlane.xlu0 %1604 }
 0x6a8   : > { %5348 = vpow2.f32 %v1646_v19  ;;  %v1633_v5 = vsub.f32 %v6461_v22, %v1605_v16  ;;  %v1648_v15 = vmul.f32 1.442695, %v1631_v6 }
 0x6aa   : > { %v1652_v45 = vmul.f32 1.442695, %v1633_v5 }
 0x6ab   : > { %v1770_v14 = vpop.permute.xlu0 %1769  ;;  %v1613_v11 = vpop.xlane.xlu1 %1612 }
 0x6ac   : > { %5350 = vpow2.f32 %v1652_v45  ;;  %4912 = vmatprep.subr.bf16.mxu1 %v1770_v14  ;;  %v1637_v42 = vsub.f32 %v6466_v60, %v1613_v11 }
 0x6ad   : > { %4913 = vmatpush3.bf16.msra.mxu1 %v1770_v14  ;;  %5352 = vpow2.f32 %v1648_v15 }
 0x6ae   : > { %4914 = vmatprep.subr.bf16.mxu1 %v1768_v21  ;;  %v1660_v2 = vmul.f32 1.442695, %v1637_v42 }
 0x6af   : > { %v1609_v26 = vpop.xlane.xlu1 %1608 }
 0x6b0   : > { %v1635_v23 = vsub.f32 %v6470_v57, %v1609_v26 }
 0x6b1   : > { %v6529_v51 = vpop.eup %5346  ;;  %4915 = vmatpush3.bf16.msra.mxu1 %v1768_v21 }
 0x6b2   : > { %1682 = vadd.xlane.f32.xlu1 %v6529_v51  ;;  %v1656_v35 = vmul.f32 1.442695, %v1635_v23 }
 0x6b3   : > { %v1621_v10 = vpop.xlane.xlu1 %1620 }
 0x6b5   : > { %v6532_v41 = vpop.eup %5348 }
 0x6b6   : > { %1678 = vadd.xlane.f32.xlu1 %v6532_v41 }
 0x6b7   : > { %v1617_v63 = vpop.xlane.xlu1 %1616 }
 0x6b9   : > { %v6535_v43 = vpop.eup %5350 }
 0x6ba   : > { %1684 = vadd.xlane.f32.xlu1 %v6535_v43  ;;  %v6538_v22 = vpop.eup %5352 }
 0x6bb   : > { %v6548_v57 = vpop.permute.xlu1 %1997 }
 0x6be   : > { %1680 = vadd.xlane.f32.xlu1 %v6538_v22 }
 0x6bf   : > { %v6553_v45 = vpop.permute.xlu1 %1993 }
 0x6cf   : > { %1989 = vrot.lane.b32.xlu1 %v6142_v40, %s5702_s23 }
 0x6dc   : > { %v1611_v58 = vpop.xlane.xlu0 %1610 }
 0x6dd   : > { %v1636_v46 = vsub.f32 %v6488_v9, %v1611_v58  ;;  %v1641_v9 = vsub.f32 %v6474_v0, %v1621_v10 }
 0x6df   : > { %v1658_v52 = vmul.f32 1.442695, %v1636_v46  ;;  %v1668_v5 = vmul.f32 1.442695, %v1641_v9 }
 0x6e0   : > { %v1607_v29 = vpop.xlane.xlu0 %1606 }
 0x6e1   : > { %5354 = vpow2.f32 %v1658_v52  ;;  %v1634_v21 = vsub.f32 %v6492_v32, %v1607_v29  ;;  %v1639_v32 = vsub.f32 %v6478_v25, %v1617_v63 }
 0x6e2   : > { %5356 = vpow2.f32 %v1656_v35 }
 0x6e3   : > { %v1654_v54 = vmul.f32 1.442695, %v1634_v21  ;;  %v1664_v0 = vmul.f32 1.442695, %v1639_v32 }
 0x6e4   : > { %v1619_v48 = vpop.xlane.xlu0 %1618 }
 0x6e5   : > { %5358 = vpow2.f32 %v1654_v54  ;;  %v1640_v50 = vsub.f32 %v6496_v24, %v1619_v48 }
 0x6e6   : > { %5360 = vpow2.f32 %v1660_v2 }
 0x6e7   : > { %v1666_v19 = vmul.f32 1.442695, %v1640_v50 }
 0x6e8   : > { %v1615_v60 = vpop.xlane.xlu0 %1614 }
 0x6e9   : > { %5362 = vpow2.f32 %v1666_v19  ;;  %v1638_v16 = vsub.f32 %v6500_v18, %v1615_v60 }
 0x6eb   : > { %v1662_v6 = vmul.f32 1.442695, %v1638_v16 }
 0x6ec   : > { %v1627_v14 = vpop.xlane.xlu0 %1626 }
 0x6ed   : > { %5364 = vpow2.f32 %v1662_v6  ;;  %v1644_v24 = vsub.f32 %v6504_v44, %v1627_v14 }
 0x6ee   : > { %v6556_v15 = vpop.eup %5354  ;;  %5366 = vpow2.f32 %v1668_v5 }
 0x6ef   : > { %v1674_v11 = vmul.f32 1.442695, %v1644_v24  ;;  %1690 = vadd.xlane.f32.xlu0 %v6556_v15  ;;  %v6559_v18 = vpop.eup %5356 }
 0x6f0   : > { %v1623_v26 = vpop.xlane.xlu0 %1622  ;;  %v1629_v10 = vpop.xlane.xlu1 %1628 }
 0x6f1   : > { %5368 = vpow2.f32 %v1674_v11  ;;  %v1642_v25 = vsub.f32 %v6508_v28, %v1623_v26  ;;  %v1645_v23 = vsub.f32 %v6511_v37, %v1629_v10 }
 0x6f2   : > { %v6563_v58 = vpop.eup %5358  ;;  %5370 = vpow2.f32 %v1664_v0 }
 0x6f3   : > { %v1670_v46 = vmul.f32 1.442695, %v1642_v25  ;;  %1686 = vadd.xlane.f32.xlu0 %v6563_v58  ;;  %1688 = vadd.xlane.f32.xlu1 %v6559_v18  ;;  %v1676_v44 = vmul.f32 1.442695, %v1645_v23  ;;  %v6569_v35 = vpop.eup %5360  ;;  %v2038_v23 = vsel %vm906_vm1, %v6553_v45, 0 }
 0x6f4   : > { %v6567_v52 = vpop.permute.xlu0 %1999  ;;  %v1625_v42 = vpop.xlane.xlu1 %1624 }
 0x6f5   : > { %5372 = vpow2.f32 %v1670_v46  ;;  %v1643_v63 = vsub.f32 %v6516_v47, %v1625_v42  ;;  %5164 = vmatprep.subr.msk.bf16.mxu1 %vm906_vm1, %v6567_v52 }
 0x6f6   : > { %v6574_v28 = vpop.eup %5362  ;;  %5374 = vpow2.f32 %v1676_v44 }
 0x6f7   : > { %v1672_v37 = vmul.f32 1.442695, %v1643_v63  ;;  %1692 = vadd.xlane.f32.xlu0 %v6569_v35  ;;  %1698 = vadd.xlane.f32.xlu1 %v6574_v28 }
 0x6f9   : > { %5376 = vpow2.f32 %v1672_v37 }
 0x6fa   : > { %v6578_v29 = vpop.eup %5364 }
 0x6fb   : > { %1694 = vadd.xlane.f32.xlu1 %v6578_v29  ;;  %v6581_v21 = vpop.eup %5366 }
 0x6fe   : > { %v6583_v54 = vpop.eup %5368 }
 0x6ff   : > { %1706 = vadd.xlane.f32.xlu0 %v6583_v54  ;;  %1700 = vadd.xlane.f32.xlu1 %v6581_v21  ;;  %v6587_v47 = vpop.eup %5370 }
 0x702   : > { %v6589_v2 = vpop.eup %5372 }
 0x703   : > { %1702 = vadd.xlane.f32.xlu0 %v6589_v2  ;;  %1696 = vadd.xlane.f32.xlu1 %v6587_v47  ;;  %v6593_v48 = vpop.eup %5374 }
 0x706   : > { %v6595_v50 = vpop.eup %5376 }
 0x707   : > { %1708 = vadd.xlane.f32.xlu0 %v6593_v48  ;;  %1704 = vadd.xlane.f32.xlu1 %v6595_v50 }
 0x718   : > { %1985 = vrot.lane.b32.xlu1 %v6120_v8, %s5702_s23 }
 0x71c   : > { %1971 = vrot.lane.b32.xlu1 %v6135_v20, %s5703_s24 }
 0x71d   : > { %1987 = vrot.lane.b32.xlu0 %v6135_v20, %s5702_s23  ;;  %s5706_s23 = smov 104  }
 0x720   : > { %1975 = vrot.lane.b32.xlu1 %v6129_v33, %s5703_s24 }
 0x721   : > { %1969 = vrot.lane.b32.xlu0 %v6120_v8, %s5703_s24 }
 0x724   : > { %1979 = vrot.lane.b32.xlu1 %v6132_v34, %s5703_s24 }
 0x725   : > { %1973 = vrot.lane.b32.xlu0 %v6142_v40, %s5703_s24 }
 0x728   : > { %1983 = vrot.lane.b32.xlu1 %v6124_v30, %s5703_s24 }
 0x729   : > { %1977 = vrot.lane.b32.xlu0 %v6138_v38, %s5703_s24 }
 0x72c   : > { %2359 = vrot.lane.b32.xlu1 %v6126_v31, %s5704_s30 }
 0x72d   : > { %1981 = vrot.lane.b32.xlu0 %v6126_v31, %s5703_s24  ;;  %s5707_s24 = smov 40  }
 0x730   : > { %2351 = vrot.lane.b32.xlu1 %v6142_v40, %s5704_s30 }
 0x731   : > { %2361 = vrot.lane.b32.xlu0 %v6124_v30, %s5704_s30 }
 0x734   : > { %2347 = vrot.lane.b32.xlu1 %v6120_v8, %s5704_s30 }
 0x735   : > { %2357 = vrot.lane.b32.xlu0 %v6132_v34, %s5704_s30 }
 0x739   : > { %2355 = vrot.lane.b32.xlu0 %v6138_v38, %s5704_s30 }
 0x73b   : > { %v1683_v19 = vpop.xlane.xlu1 %1682 }
 0x73c   : > { %5378 = vrcp.f32 %v1683_v19 }
 0x73d   : > { %2353 = vrot.lane.b32.xlu0 %v6129_v33, %s5704_s30 }
 0x73f   : > { %v1679_v9 = vpop.xlane.xlu1 %1678 }
 0x740   : > { %5380 = vrcp.f32 %v1679_v9 }
 0x743   : > { %v1685_v60 = vpop.xlane.xlu1 %1684 }
 0x744   : > { %5382 = vrcp.f32 %v1685_v60 }
 0x747   : > { %v1681_v16 = vpop.xlane.xlu1 %1680 }
 0x748   : > { %5384 = vrcp.f32 %v1681_v16 }
 0x749   : > { %v5379_v6 = vpop.eup %5378 }
 0x74a   : > { %v1728_v5 = vmul.f32 %v5379_v6, %v6529_v51  ;;  %v2047_v51 = vsel %vm906_vm1, %v6567_v52, 0 }
 0x74b   : > { %v1990_v44 = vpop.permute.xlu1 %1989 }
 0x74c   : > { %4507 = vst [vmem:[%s6372_s22 + $0x90] sm:$0xff] %v1728_v5 }
 0x74d   : > { %v5381_v32 = vpop.eup %5380 }
 0x74e   : > { %v1726_v14 = vmul.f32 %v5381_v32, %v6532_v41  ;;  %v2044_v41 = vsel %vm906_vm1, %v6548_v57, 0 }
 0x750   : > { %4505 = vst [vmem:[%s6372_s22 + $0x80] sm:$0xff] %v1726_v14 }
 0x751   : > { %v5383_v24 = vpop.eup %5382 }
 0x752   : > { %v1729_v11 = vmul.f32 %v5383_v24, %v6535_v43  ;;  %v1996_v43 = vpop.permute.xlu0 %1995 }
 0x754   : > { %4508 = vst [vmem:[%s6372_s22 + $0x98] sm:$0xff] %v1729_v11  ;;  %v1760_v25 = vpack.c.bf16 %v1729_v11, %v1728_v5 }
 0x755   : > { %v5385_v0 = vpop.eup %5384 }
 0x756   : > { %v1727_v26 = vmul.f32 %v5385_v0, %v6538_v22  ;;  %v2041_v22 = vsel %vm906_vm1, %v1996_v43, 0  ;;  %v1992_v46 = vpop.permute.xlu0 %1991 }
 0x758   : > { %4506 = vst [vmem:[%s6372_s22 + $0x88] sm:$0xff] %v1727_v26  ;;  %v1759_v10 = vpack.c.bf16 %v1727_v26, %v1726_v14 }
 0x75a   : > { %4916 = vmatprep.mubr.bf16.mxu1 %v1759_v10 }
 0x75b   : > { %4917 = vmatmul.mubr.bf16.vlgmr.msra.gmra.mxu1 %v1760_v25 }
 0x75c   : > { %4933 = vmatpush3.bf16.xpose.msra.mxu1 %v2047_v51 }
 0x75d   : > { %5165 = vmatprep.subr.msk.bf16.mxu1 %vm906_vm1, %v6548_v57  ;;  %v2035_v57 = vsel %vm906_vm1, %v1992_v46, 0 }
 0x764   : > { %4935 = vmatpush3.bf16.xpose.msra.mxu1 %v2044_v41 }
 0x765   : > { %5166 = vmatprep.subr.msk.bf16.mxu1 %vm906_vm1, %v1996_v43 }
 0x76c   : > { %4937 = vmatpush3.bf16.xpose.msra.mxu1 %v2041_v22 }
 0x76d   : > { %5167 = vmatprep.subr.msk.bf16.mxu1 %vm906_vm1, %v6553_v45  ;;  %v2032_v45 = vsel %vm906_vm1, %v1990_v44, 0 }
 0x774   : > { %4939 = vmatpush3.bf16.xpose.msra.mxu1 %v2038_v23 }
 0x775   : > { %5168 = vmatprep.subr.msk.bf16.mxu1 %vm906_vm1, %v1992_v46 }
 0x778   : > { %v1691_v52 = vpop.xlane.xlu0 %1690 }
 0x779   : > { %5386 = vrcp.f32 %v1691_v52 }
 0x77c   : > { %4941 = vmatpush3.bf16.xpose.msra.mxu1 %v2035_v57  ;;  %v1687_v42 = vpop.xlane.xlu0 %1686  ;;  %v1689_v63 = vpop.xlane.xlu1 %1688 }
 0x77d   : > { %5388 = vrcp.f32 %v1687_v42  ;;  %5169 = vmatprep.subr.msk.bf16.mxu1 %vm906_vm1, %v1990_v44 }
 0x77e   : > { %5390 = vrcp.f32 %v1689_v63 }
 0x780   : > { %v1693_v37 = vpop.xlane.xlu0 %1692  ;;  %v1699_v19 = vpop.xlane.xlu1 %1698 }
 0x781   : > { %5392 = vrcp.f32 %v1693_v37 }
 0x782   : > { %5394 = vrcp.f32 %v1699_v19 }
 0x784   : > { %4943 = vmatpush3.bf16.xpose.msra.mxu1 %v2032_v45  ;;  %v1695_v9 = vpop.xlane.xlu1 %1694 }
 0x785   : > { %5396 = vrcp.f32 %v1695_v9 }
 0x786   : > { %v5387_v60 = vpop.eup %5386 }
 0x787   : > { %v1732_v16 = vmul.f32 %v5387_v60, %v6556_v15 }
 0x788   : > { %v1707_v6 = vpop.xlane.xlu0 %1706  ;;  %v1701_v5 = vpop.xlane.xlu1 %1700 }
 0x789   : > { %5398 = vrcp.f32 %v1707_v6  ;;  %4511 = vst [vmem:[%s6372_s22 + $0xb0] sm:$0xff] %v1732_v16 }
 0x78a   : > { %v5389_v32 = vpop.eup %5388  ;;  %5400 = vrcp.f32 %v1701_v5 }
 0x78b   : > { %v5391_v14 = vpop.eup %5390  ;;  %v1730_v24 = vmul.f32 %v5389_v32, %v6563_v58 }
 0x78c   : > { %v1703_v11 = vpop.xlane.xlu0 %1702  ;;  %v1697_v0 = vpop.xlane.xlu1 %1696  ;;  %v1731_v26 = vmul.f32 %v5391_v14, %v6559_v18 }
 0x78d   : > { %5402 = vrcp.f32 %v1703_v11  ;;  %4509 = vst [vmem:[%s6372_s22 + $0xa0] sm:$0xff] %v1730_v24 }
 0x78e   : > { %v5393_v10 = vpop.eup %5392  ;;  %5404 = vrcp.f32 %v1697_v0  ;;  %4510 = vst [vmem:[%s6372_s22 + $0xa8] sm:$0xff] %v1731_v26  ;;  %v1761_v15 = vpack.c.bf16 %v1731_v26, %v1730_v24 }
 0x78f   : > { %v5395_v25 = vpop.eup %5394  ;;  %v1733_v51 = vmul.f32 %v5393_v10, %v6569_v35 }
 0x790   : > { %4920 = vmatprep.mubr.bf16.mxu1 %v1761_v15  ;;  %v1709_v41 = vpop.xlane.xlu0 %1708  ;;  %v1705_v43 = vpop.xlane.xlu1 %1704  ;;  %v1736_v58 = vmul.f32 %v5395_v25, %v6574_v28 }
 0x791   : > { %5406 = vrcp.f32 %v1709_v41  ;;  %4512 = vst [vmem:[%s6372_s22 + $0xb8] sm:$0xff] %v1733_v51  ;;  %v1762_v22 = vpack.c.bf16 %v1733_v51, %v1732_v16 }
 0x792   : > { %v5397_v18 = vpop.eup %5396  ;;  %5408 = vrcp.f32 %v1705_v43  ;;  %4515 = vst [vmem:[%s6372_s22 + $0xd0] sm:$0xff] %v1736_v58 }
 0x793   : > { %4921 = vmatmul.mubr.bf16.gmra.mxu1 %v1762_v22  ;;  %v1734_v23 = vmul.f32 %v5397_v18, %v6578_v29 }
 0x794   : > { %v1988_v46 = vpop.permute.xlu0 %1987  ;;  %v1986_v44 = vpop.permute.xlu1 %1985 }
 0x795   : > { %5170 = vmatprep.subr.msk.bf16.mxu1 %vm906_vm1, %v1988_v46  ;;  %v2029_v35 = vsel %vm906_vm1, %v1988_v46, 0  ;;  %4513 = vst [vmem:[%s6372_s22 + $0xc0] sm:$0xff] %v1734_v23  ;;  %v2026_v6 = vsel %vm906_vm1, %v1986_v44, 0 }
 0x796   : > { %v5399_v52 = vpop.eup %5398  ;;  %4945 = vmatpush3.bf16.xpose.msra.mxu1 %v2029_v35 }
 0x797   : > { %v5401_v28 = vpop.eup %5400  ;;  %5171 = vmatprep.subr.msk.bf16.mxu1 %vm906_vm1, %v1986_v44  ;;  %v1740_v57 = vmul.f32 %v5399_v52, %v6583_v54 }
 0x798   : > { %v1970_v42 = vpop.permute.xlu0 %1969  ;;  %v1972_v63 = vpop.permute.xlu1 %1971  ;;  %v1737_v29 = vmul.f32 %v5401_v28, %v6581_v21 }
 0x799   : > { %4519 = vst [vmem:[%s6372_s22 + $0xf0] sm:$0xff] %v1740_v57 }
 0x79a   : > { %v5403_v37 = vpop.eup %5402  ;;  %4516 = vst [vmem:[%s6372_s22 + $0xd8] sm:$0xff] %v1737_v29  ;;  %v1764_v32 = vpack.c.bf16 %v1737_v29, %v1736_v58 }
 0x79b   : > { %v5405_v19 = vpop.eup %5404  ;;  %v1738_v45 = vmul.f32 %v5403_v37, %v6589_v2 }
 0x79c   : > { %v1974_v9 = vpop.permute.xlu0 %1973  ;;  %v1976_v60 = vpop.permute.xlu1 %1975  ;;  %v1735_v16 = vmul.f32 %v5405_v19, %v6587_v47 }
 0x79d   : > { %4517 = vst [vmem:[%s6372_s22 + $0xe0] sm:$0xff] %v1738_v45 }
 0x79e   : > { %v5407_v54 = vpop.eup %5406  ;;  %4947 = vmatpush3.bf16.xpose.msra.mxu1 %v2026_v6  ;;  %4514 = vst [vmem:[%s6372_s22 + $0xc8] sm:$0xff] %v1735_v16  ;;  %v1763_v5 = vpack.c.bf16 %v1735_v16, %v1734_v23 }
 0x79f   : > { %v5409_v21 = vpop.eup %5408  ;;  %v1741_v14 = vmul.f32 %v5407_v54, %v6593_v48 }
 0x7a0   : > { %4924 = vmatprep.mubr.bf16.mxu1 %v1763_v5  ;;  %v1978_v24 = vpop.permute.xlu0 %1977  ;;  %v1980_v2 = vpop.permute.xlu1 %1979  ;;  %v1739_v11 = vmul.f32 %v5409_v21, %v6595_v50 }
 0x7a1   : > { %4925 = vmatmul.mubr.bf16.gmra.mxu1 %v1764_v32  ;;  %4520 = vst [vmem:[%s6372_s22 + $0xf8] sm:$0xff] %v1741_v14  ;;  %v1766_v10 = vpack.c.bf16 %v1741_v14, %v1740_v57 }
 0x7a2   : > { %4518 = vst [vmem:[%s6372_s22 + $0xe8] sm:$0xff] %v1739_v11  ;;  %v1765_v47 = vpack.c.bf16 %v1739_v11, %v1738_v45 }
 0x7a4   : > { %4928 = vmatprep.mubr.bf16.mxu1 %v1765_v47  ;;  %v1982_v0 = vpop.permute.xlu0 %1981  ;;  %v1984_v26 = vpop.permute.xlu1 %1983 }
 0x7a8   : > { %v2362_v15 = vpop.permute.xlu0 %2361  ;;  %v2360_v25 = vpop.permute.xlu1 %2359 }
 0x7a9   : > { %4929 = vmatmul.mubr.bf16.gmra.mxu1 %v1766_v10  ;;  %4964 = vmatprep.subr.bf16.mxu0 %v2362_v15 }
 0x7aa   : > { %4948 = vmatprep.mubr.msk.bf16.mxu1 %vm906_vm1, %v1970_v42  ;;  %4965 = vmatpush3.bf16.msra.mxu0 %v2362_v15 }
 0x7ab   : > { %4966 = vmatprep.subr.bf16.mxu0 %v2360_v25 }
 0x7ac   : > { %v2358_v48 = vpop.permute.xlu0 %2357  ;;  %v2352_v41 = vpop.permute.xlu1 %2351 }
 0x7ae   : > { %4967 = vmatpush3.bf16.msra.mxu0 %v2360_v25 }
 0x7af   : > { %4968 = vmatprep.subr.bf16.mxu0 %v2358_v48 }
 0x7b0   : > { %v2356_v50 = vpop.permute.xlu0 %2355 }
 0x7b1   : > { %4949 = vmatmul.mubr.msk.bf16.vlgmr.msra.gmra.mxu1 %vm906_vm1, %v1972_v63 }
 0x7b2   : > { %4952 = vmatprep.mubr.msk.bf16.mxu1 %vm906_vm1, %v1974_v9  ;;  %4969 = vmatpush3.bf16.msra.mxu0 %v2358_v48 }
 0x7b3   : > { %4970 = vmatprep.subr.bf16.mxu0 %v2356_v50 }
 0x7b4   : > { %v2354_v51 = vpop.permute.xlu0 %2353 }
 0x7b6   : > { %4971 = vmatpush3.bf16.msra.mxu0 %v2356_v50 }
 0x7b7   : > { %4972 = vmatprep.subr.bf16.mxu0 %v2354_v51 }
 0x7b9   : > { %4953 = vmatmul.mubr.msk.bf16.gmra.mxu1 %vm906_vm1, %v1976_v60 }
 0x7ba   : > { %4956 = vmatprep.mubr.msk.bf16.mxu1 %vm906_vm1, %v1978_v24  ;;  %4973 = vmatpush3.bf16.msra.mxu0 %v2354_v51 }
 0x7bb   : > { %4974 = vmatprep.subr.bf16.mxu0 %v2352_v41 }
 0x7be   : > { %4975 = vmatpush3.bf16.msra.mxu0 %v2352_v41 }
 0x7c1   : > { %4957 = vmatmul.mubr.msk.bf16.gmra.mxu1 %vm906_vm1, %v1980_v2 }
 0x7c2   : > { %4960 = vmatprep.mubr.msk.bf16.mxu1 %vm906_vm1, %v1982_v0 }
 0x7c9   : > { %4961 = vmatmul.mubr.msk.bf16.gmra.mxu1 %vm906_vm1, %v1984_v26 }
 0x81b   : > { %v6685_v43 = vpop.f32.mrf.mxu1 }
 0x81d   : > { %v6687_v58 = vpop.f32.mrf.mxu1 }
 0x81f   : > { %v6689_v22 = vpop.f32.mrf.mxu1 }
 0x821   : > { %v6691_v18 = vpop.f32.mrf.mxu1 }
 0x853   : > { %v6693_v23 = vpop.f32.mrf.mxu1 }
 0x855   : > { %v6695_v46 = vpop.f32.mrf.mxu1 }
 0x857   : > { %v6697_v44 = vpop.f32.mrf.mxu1 }
 0x859   : > { %v6699_v35 = vpop.f32.mrf.mxu1 }
 0x861   : > { %v6701_v52 = vpop.f32.mrf.mxu1 }
 0x863   : > { %v6703_v28 = vpop.f32.mrf.mxu1 }
 0x865   : > { %v6705_v57 = vpop.f32.mrf.mxu1 }
 0x867   : > { %v6707_v42 = vpop.f32.mrf.mxu1 }
 0x869   : > { %v6709_v63 = vpop.f32.mrf.mxu1 }
 0x86b   : > { %v6711_v29 = vpop.f32.mrf.mxu1 }
 0x86d   : > { %v6713_v37 = vpop.f32.mrf.mxu1 }
 0x86f   : > { %v6715_v19 = vpop.f32.mrf.mxu1 }
 0x871   : > { %v4950_v45 = vpop.f32.mrf.mxu1 }
 0x872   : > { %v2148_v9 = vmul.f32 0.35355338, %v4950_v45 }
 0x873   : > { %v2083_v60 = vpop.f32.mrf.mxu1 }
 0x874   : > { %v6718_v16 = vadd.f32 %v2148_v9, %v6190_v7  ;;  %v2146_v6 = vmul.f32 0.35355338, %v2083_v60 }
 0x875   : > { %v4951_v54 = vpop.f32.mrf.mxu1 }
 0x876   : > { %2182 = vmax.xlane.f32.xlu0 %v6718_v16  ;;  %v6722_v21 = vadd.f32 %v2146_v6, %v6190_v7  ;;  %v2149_v32 = vmul.f32 0.35355338, %v4951_v54 }
 0x877   : > { %v2086_v5 = vpop.f32.mrf.mxu1 }
 0x878   : > { %v2147_v14 = vmul.f32 0.35355338, %v2086_v5  ;;  %v6729_v47 = vadd.f32 %v2149_v32, %v6190_v7 }
 0x879   : > { %v4954_v24 = vpop.f32.mrf.mxu1 }
 0x87a   : > { %v6725_v2 = vadd.f32 %v2147_v14, %v6190_v7  ;;  %2178 = vmax.xlane.f32.xlu0 %v6722_v21  ;;  %v2152_v5 = vmul.f32 0.35355338, %v4954_v24 }
 0x87b   : > { %v2099_v11 = vpop.f32.mrf.mxu1 }
 0x87c   : > { %2180 = vmax.xlane.f32.xlu1 %v6725_v2  ;;  %v6756_v32 = vadd.f32 %v2152_v5, %v6190_v7  ;;  %v2150_v14 = vmul.f32 0.35355338, %v2099_v11 }
 0x87d   : > { %v4955_v0 = vpop.f32.mrf.mxu1 }
 0x87e   : > { %v2153_v26 = vmul.f32 0.35355338, %v4955_v0  ;;  %2184 = vmax.xlane.f32.xlu0 %v6729_v47  ;;  %v6760_v0 = vadd.f32 %v2150_v14, %v6190_v7 }
 0x87f   : > { %v2102_v10 = vpop.f32.mrf.mxu1 }
 0x880   : > { %v6734_v15 = vadd.f32 %v2153_v26, %v6190_v7  ;;  %v2151_v25 = vmul.f32 0.35355338, %v2102_v10 }
 0x881   : > { %v4958_v48 = vpop.f32.mrf.mxu1 }
 0x882   : > { %2192 = vmax.xlane.f32.xlu1 %v6734_v15  ;;  %v6738_v51 = vadd.f32 %v2151_v25, %v6190_v7  ;;  %v2156_v26 = vmul.f32 0.35355338, %v4958_v48 }
 0x883   : > { %v2115_v50 = vpop.f32.mrf.mxu1 }
 0x884   : > { %v6764_v25 = vadd.f32 %v2156_v26, %v6190_v7 }
 0x885   : > { %v4959_v41 = vpop.f32.mrf.mxu1 }
 0x886   : > { %v2157_v45 = vmul.f32 0.35355338, %v4959_v41  ;;  %2188 = vmax.xlane.f32.xlu1 %v6738_v51  ;;  %v2154_v41 = vmul.f32 0.35355338, %v2115_v50 }
 0x887   : > { %v2118_v9 = vpop.f32.mrf.mxu1 }
 0x888   : > { %v6742_v60 = vadd.f32 %v2157_v45, %v6190_v7  ;;  %v2155_v6 = vmul.f32 0.35355338, %v2118_v9  ;;  %v6768_v24 = vadd.f32 %v2154_v41, %v6190_v7 }
 0x889   : > { %v4962_v10 = vpop.f32.mrf.mxu1 }
 0x88a   : > { %2200 = vmax.xlane.f32.xlu1 %v6742_v60  ;;  %v6746_v54 = vadd.f32 %v2155_v6, %v6190_v7  ;;  %v2160_v11 = vmul.f32 0.35355338, %v4962_v10 }
 0x88b   : > { %v2131_v45 = vpop.f32.mrf.mxu1 }
 0x88c   : > { %v6772_v6 = vadd.f32 %v2160_v11, %v6190_v7  ;;  %v2158_v48 = vmul.f32 0.35355338, %v2131_v45 }
 0x88d   : > { %v4963_v9 = vpop.f32.mrf.mxu1 }
 0x88e   : > { %2196 = vmax.xlane.f32.xlu1 %v6746_v54  ;;  %v2161_v5 = vmul.f32 0.35355338, %v4963_v9  ;;  %v6776_v50 = vadd.f32 %v2158_v48, %v6190_v7  ;;  %v2348_v9 = vpop.permute.xlu1 %2347 }
 0x88f   : > { %v2134_v14 = vpop.f32.mrf.mxu1 }
 0x890   : > { %v6779_v26 = vadd.f32 %v2161_v5, %v6190_v7  ;;  %v2159_v41 = vmul.f32 0.35355338, %v2134_v14 }
 0x892   : > { %v6784_v10 = vadd.f32 %v2159_v41, %v6190_v7 }
 0x894   : > { %2349 = vrot.lane.b32.xlu0 %v6135_v20, %s5704_s30  ;;  %s8049_s30 = smov 8  }
 0x89f   : > { %2577 = vrot.lane.b32.xlu1 %v6126_v31, %s5705_s16 }
 0x8a3   : > { %2573 = vrot.lane.b32.xlu1 %v6138_v38, %s5705_s16 }
 0x8b3   : > { %2190 = vmax.xlane.f32.xlu0 %v6756_v32 }
 0x8b7   : > { %2186 = vmax.xlane.f32.xlu0 %v6760_v0 }
 0x8bb   : > { %2198 = vmax.xlane.f32.xlu0 %v6764_v25 }
 0x8bf   : > { %2194 = vmax.xlane.f32.xlu0 %v6768_v24 }
 0x8c3   : > { %2206 = vmax.xlane.f32.xlu0 %v6772_v6 }
 0x8c7   : > { %2202 = vmax.xlane.f32.xlu0 %v6776_v50  ;;  %2208 = vmax.xlane.f32.xlu1 %v6779_v26 }
 0x8cb   : > { %2204 = vmax.xlane.f32.xlu1 %v6784_v10 }
 0x8dd   : > { %2579 = vrot.lane.b32.xlu0 %v6124_v30, %s5705_s16 }
 0x8e1   : > { %2575 = vrot.lane.b32.xlu0 %v6132_v34, %s5705_s16 }
 0x8e5   : > { %2571 = vrot.lane.b32.xlu0 %v6129_v33, %s5705_s16 }
 0x8ff   : > { %v2183_v45 = vpop.xlane.xlu0 %2182 }
 0x900   : > { %v2212_v11 = vsub.f32 %v6718_v16, %v2183_v45 }
 0x902   : > { %v2230_v48 = vmul.f32 1.442695, %v2212_v11 }
 0x903   : > { %v2179_v5 = vpop.xlane.xlu0 %2178 }
 0x904   : > { %5410 = vpow2.f32 %v2230_v48  ;;  %v2210_v14 = vsub.f32 %v6722_v21, %v2179_v5 }
 0x905   : > { %v2181_v41 = vpop.xlane.xlu1 %2180 }
 0x906   : > { %v2226_v4 = vmul.f32 1.442695, %v2210_v14  ;;  %v2211_v3 = vsub.f32 %v6725_v2, %v2181_v41 }
 0x907   : > { %v2185_v62 = vpop.xlane.xlu0 %2184 }
 0x908   : > { %5412 = vpow2.f32 %v2226_v4  ;;  %v2213_v61 = vsub.f32 %v6729_v47, %v2185_v62  ;;  %v2228_v49 = vmul.f32 1.442695, %v2211_v3 }
 0x90a   : > { %v2232_v17 = vmul.f32 1.442695, %v2213_v61 }
 0x90b   : > { %v2350_v56 = vpop.permute.xlu0 %2349 }
 0x90c   : > { %5414 = vpow2.f32 %v2232_v17  ;;  %4976 = vmatprep.subr.bf16.mxu0 %v2350_v56 }
 0x90d   : > { %4977 = vmatpush3.bf16.msra.mxu0 %v2350_v56  ;;  %5416 = vpow2.f32 %v2228_v49  ;;  %v2193_v56 = vpop.xlane.xlu1 %2192 }
 0x90e   : > { %4978 = vmatprep.subr.bf16.mxu0 %v2348_v9  ;;  %v2217_v45 = vsub.f32 %v6734_v15, %v2193_v56 }
 0x910   : > { %v2240_v41 = vmul.f32 1.442695, %v2217_v45 }
 0x911   : > { %v6797_v16 = vpop.eup %5410  ;;  %4979 = vmatpush3.bf16.msra.mxu0 %v2348_v9  ;;  %v2189_v49 = vpop.xlane.xlu1 %2188 }
 0x912   : > { %2262 = vadd.xlane.f32.xlu1 %v6797_v16  ;;  %v2215_v62 = vsub.f32 %v6738_v51, %v2189_v49 }
 0x914   : > { %v2236_v11 = vmul.f32 1.442695, %v2215_v62 }
 0x915   : > { %v6800_v21 = vpop.eup %5412  ;;  %v2201_v17 = vpop.xlane.xlu1 %2200 }
 0x916   : > { %2258 = vadd.xlane.f32.xlu1 %v6800_v21 }
 0x919   : > { %v6803_v4 = vpop.eup %5414  ;;  %v2197_v9 = vpop.xlane.xlu1 %2196 }
 0x91a   : > { %2264 = vadd.xlane.f32.xlu1 %v6803_v4  ;;  %v6806_v61 = vpop.eup %5416 }
 0x91d   : > { %v6816_v51 = vpop.permute.xlu1 %2577 }
 0x91e   : > { %2260 = vadd.xlane.f32.xlu1 %v6806_v61 }
 0x92f   : > { %2569 = vrot.lane.b32.xlu1 %v6142_v40, %s5705_s16 }
 0x93c   : > { %v2191_v3 = vpop.xlane.xlu0 %2190 }
 0x93d   : > { %v2216_v2 = vsub.f32 %v6756_v32, %v2191_v3  ;;  %v2221_v32 = vsub.f32 %v6742_v60, %v2201_v17 }
 0x93f   : > { %v2238_v47 = vmul.f32 1.442695, %v2216_v2  ;;  %v2248_v3 = vmul.f32 1.442695, %v2221_v32  ;;  %v6821_v2 = vpop.permute.xlu1 %2573 }
 0x940   : > { %v2187_v48 = vpop.xlane.xlu0 %2186 }
 0x941   : > { %5418 = vpow2.f32 %v2238_v47  ;;  %v2214_v5 = vsub.f32 %v6760_v0, %v2187_v48  ;;  %v2219_v0 = vsub.f32 %v6746_v54, %v2197_v9 }
 0x942   : > { %5420 = vpow2.f32 %v2236_v11 }
 0x943   : > { %v2234_v14 = vmul.f32 1.442695, %v2214_v5  ;;  %v2244_v60 = vmul.f32 1.442695, %v2219_v0 }
 0x944   : > { %v2199_v36 = vpop.xlane.xlu0 %2198 }
 0x945   : > { %5422 = vpow2.f32 %v2234_v14  ;;  %v2220_v1 = vsub.f32 %v6764_v25, %v2199_v36 }
 0x946   : > { %5424 = vpow2.f32 %v2240_v41 }
 0x947   : > { %v2246_v49 = vmul.f32 1.442695, %v2220_v1 }
 0x948   : > { %v2195_v15 = vpop.xlane.xlu0 %2194 }
 0x949   : > { %5426 = vpow2.f32 %v2246_v49  ;;  %v2218_v56 = vsub.f32 %v6768_v24, %v2195_v15 }
 0x94b   : > { %v2242_v62 = vmul.f32 1.442695, %v2218_v56 }
 0x94c   : > { %v2207_v47 = vpop.xlane.xlu0 %2206 }
 0x94d   : > { %5428 = vpow2.f32 %v2242_v62  ;;  %v2224_v36 = vsub.f32 %v6772_v6, %v2207_v47 }
 0x94e   : > { %v6824_v25 = vpop.eup %5418  ;;  %5430 = vpow2.f32 %v2248_v3 }
 0x94f   : > { %v2254_v1 = vmul.f32 1.442695, %v2224_v36  ;;  %2270 = vadd.xlane.f32.xlu0 %v6824_v25  ;;  %v6827_v24 = vpop.eup %5420 }
 0x950   : > { %v2203_v17 = vpop.xlane.xlu0 %2202  ;;  %v2209_v45 = vpop.xlane.xlu1 %2208 }
 0x951   : > { %5432 = vpow2.f32 %v2254_v1  ;;  %v2222_v54 = vsub.f32 %v6776_v50, %v2203_v17  ;;  %v2225_v11 = vsub.f32 %v6779_v26, %v2209_v45 }
 0x952   : > { %v6831_v9 = vpop.eup %5422  ;;  %5434 = vpow2.f32 %v2244_v60 }
 0x953   : > { %v2250_v48 = vmul.f32 1.442695, %v2222_v54  ;;  %2266 = vadd.xlane.f32.xlu0 %v6831_v9  ;;  %2268 = vadd.xlane.f32.xlu1 %v6827_v24  ;;  %v2256_v6 = vmul.f32 1.442695, %v2225_v11  ;;  %v6837_v41 = vpop.eup %5424 }
 0x954   : > { %v6835_v5 = vpop.permute.xlu0 %2579  ;;  %v2205_v14 = vpop.xlane.xlu1 %2204 }
 0x955   : > { %5436 = vpow2.f32 %v2250_v48  ;;  %v2223_v49 = vsub.f32 %v6784_v10, %v2205_v14  ;;  %5172 = vmatprep.subr.msk.bf16.mxu0 %vm906_vm1, %v6835_v5 }
 0x956   : > { %v6842_v50 = vpop.eup %5426  ;;  %5438 = vpow2.f32 %v2256_v6 }
 0x957   : > { %v2252_v26 = vmul.f32 1.442695, %v2223_v49  ;;  %2272 = vadd.xlane.f32.xlu0 %v6837_v41  ;;  %2278 = vadd.xlane.f32.xlu1 %v6842_v50 }
 0x959   : > { %5440 = vpow2.f32 %v2252_v26 }
 0x95a   : > { %v6846_v32 = vpop.eup %5428 }
 0x95b   : > { %2274 = vadd.xlane.f32.xlu1 %v6846_v32  ;;  %v6849_v15 = vpop.eup %5430 }
 0x95e   : > { %v6851_v56 = vpop.eup %5432 }
 0x95f   : > { %2286 = vadd.xlane.f32.xlu0 %v6851_v56  ;;  %2280 = vadd.xlane.f32.xlu1 %v6849_v15  ;;  %v6855_v10 = vpop.eup %5434 }
 0x962   : > { %v6857_v62 = vpop.eup %5436 }
 0x963   : > { %2282 = vadd.xlane.f32.xlu0 %v6857_v62  ;;  %2276 = vadd.xlane.f32.xlu1 %v6855_v10  ;;  %v6861_v3 = vpop.eup %5438 }
 0x966   : > { %v6863_v0 = vpop.eup %5440 }
 0x967   : > { %2288 = vadd.xlane.f32.xlu0 %v6861_v3  ;;  %2284 = vadd.xlane.f32.xlu1 %v6863_v0 }
 0x978   : > { %2565 = vrot.lane.b32.xlu1 %v6120_v8, %s5705_s16 }
 0x97c   : > { %2551 = vrot.lane.b32.xlu1 %v6135_v20, %s5706_s23 }
 0x97d   : > { %2567 = vrot.lane.b32.xlu0 %v6135_v20, %s5705_s16  ;;  %s5709_s16 = smov 16  }
 0x980   : > { %2555 = vrot.lane.b32.xlu1 %v6129_v33, %s5706_s23 }
 0x981   : > { %2549 = vrot.lane.b32.xlu0 %v6120_v8, %s5706_s23 }
 0x984   : > { %2559 = vrot.lane.b32.xlu1 %v6132_v34, %s5706_s23 }
 0x985   : > { %2553 = vrot.lane.b32.xlu0 %v6142_v40, %s5706_s23 }
 0x988   : > { %2563 = vrot.lane.b32.xlu1 %v6124_v30, %s5706_s23 }
 0x989   : > { %2557 = vrot.lane.b32.xlu0 %v6138_v38, %s5706_s23 }
 0x98c   : > { %2939 = vrot.lane.b32.xlu1 %v6126_v31, %s5707_s24 }
 0x98d   : > { %2561 = vrot.lane.b32.xlu0 %v6126_v31, %s5706_s23  ;;  %s7919_s23 = scalar_lea.sflag [#allocation4], %s8105_s1 }
 0x991   : > { %2941 = vrot.lane.b32.xlu0 %v6124_v30, %s5707_s24 }
 0x995   : > { %2937 = vrot.lane.b32.xlu0 %v6132_v34, %s5707_s24 }
 0x99b   : > { %v2263_v47 = vpop.xlane.xlu1 %2262 }
 0x99c   : > { %5442 = vrcp.f32 %v2263_v47 }
 0x99f   : > { %v2259_v36 = vpop.xlane.xlu1 %2258 }
 0x9a0   : > { %5444 = vrcp.f32 %v2259_v36 }
 0x9a3   : > { %v2265_v1 = vpop.xlane.xlu1 %2264 }
 0x9a4   : > { %5446 = vrcp.f32 %v2265_v1 }
 0x9a7   : > { %v2261_v60 = vpop.xlane.xlu1 %2260 }
 0x9a8   : > { %5448 = vrcp.f32 %v2261_v60 }
 0x9a9   : > { %v5443_v17 = vpop.eup %5442 }
 0x9aa   : > { %v2308_v31 = vmul.f32 %v5443_v17, %v6797_v16  ;;  %v2627_v16 = vsel %vm906_vm1, %v6835_v5, 0  ;;  %v2618_v5 = vsel %vm906_vm1, %v6821_v2, 0 }
 0x9ab   : > { %v2570_v26 = vpop.permute.xlu1 %2569 }
 0x9ac   : > { %4531 = vst [vmem:[%s6372_s22 + $0x110] sm:$0xff] %v2308_v31 }
 0x9ad   : > { %v5445_v45 = vpop.eup %5444 }
 0x9ae   : > { %v2306_v30 = vmul.f32 %v5445_v45, %v6800_v21  ;;  %v2624_v21 = vsel %vm906_vm1, %v6816_v51, 0 }
 0x9b0   : > { %4529 = vst [vmem:[%s6372_s22 + $0x100] sm:$0xff] %v2306_v30 }
 0x9b1   : > { %v5447_v54 = vpop.eup %5446 }
 0x9b2   : > { %v2309_v34 = vmul.f32 %v5447_v54, %v6803_v4  ;;  %v2576_v4 = vpop.permute.xlu0 %2575 }
 0x9b4   : > { %4532 = vst [vmem:[%s6372_s22 + $0x118] sm:$0xff] %v2309_v34  ;;  %v2340_v14 = vpack.c.bf16 %v2309_v34, %v2308_v31 }
 0x9b5   : > { %v5449_v11 = vpop.eup %5448 }
 0x9b6   : > { %v2307_v48 = vmul.f32 %v5449_v11, %v6806_v61  ;;  %v2621_v61 = vsel %vm906_vm1, %v2576_v4, 0  ;;  %v2572_v49 = vpop.permute.xlu0 %2571 }
 0x9b8   : > { %4530 = vst [vmem:[%s6372_s22 + $0x108] sm:$0xff] %v2307_v48  ;;  %v2339_v6 = vpack.c.bf16 %v2307_v48, %v2306_v30 }
 0x9ba   : > { %4980 = vmatprep.mubr.bf16.mxu0 %v2339_v6 }
 0x9bb   : > { %4981 = vmatmul.mubr.bf16.vlgmr.msra.gmra.mxu0 %v2340_v14 }
 0x9bc   : > { %4997 = vmatpush3.bf16.xpose.msra.mxu0 %v2627_v16 }
 0x9bd   : > { %5173 = vmatprep.subr.msk.bf16.mxu0 %vm906_vm1, %v6816_v51  ;;  %v2615_v51 = vsel %vm906_vm1, %v2572_v49, 0 }
 0x9c4   : > { %4999 = vmatpush3.bf16.xpose.msra.mxu0 %v2624_v21 }
 0x9c5   : > { %5174 = vmatprep.subr.msk.bf16.mxu0 %vm906_vm1, %v2576_v4 }
 0x9cc   : > { %5001 = vmatpush3.bf16.xpose.msra.mxu0 %v2621_v61 }
 0x9cd   : > { %5175 = vmatprep.subr.msk.bf16.mxu0 %vm906_vm1, %v6821_v2  ;;  %v2612_v2 = vsel %vm906_vm1, %v2570_v26, 0 }
 0x9d4   : > { %5003 = vmatpush3.bf16.xpose.msra.mxu0 %v2618_v5 }
 0x9d5   : > { %5176 = vmatprep.subr.msk.bf16.mxu0 %vm906_vm1, %v2572_v49 }
 0x9d8   : > { %v2271_v47 = vpop.xlane.xlu0 %2270 }
 0x9d9   : > { %5450 = vrcp.f32 %v2271_v47 }
 0x9dc   : > { %5005 = vmatpush3.bf16.xpose.msra.mxu0 %v2615_v51  ;;  %v2267_v36 = vpop.xlane.xlu0 %2266  ;;  %v2269_v1 = vpop.xlane.xlu1 %2268 }
 0x9dd   : > { %5452 = vrcp.f32 %v2267_v36  ;;  %5177 = vmatprep.subr.msk.bf16.mxu0 %vm906_vm1, %v2570_v26 }
 0x9de   : > { %5454 = vrcp.f32 %v2269_v1 }
 0x9e0   : > { %v2273_v60 = vpop.xlane.xlu0 %2272  ;;  %v2279_v17 = vpop.xlane.xlu1 %2278 }
 0x9e1   : > { %5456 = vrcp.f32 %v2273_v60 }
 0x9e2   : > { %5458 = vrcp.f32 %v2279_v17 }
 0x9e4   : > { %5007 = vmatpush3.bf16.xpose.msra.mxu0 %v2612_v2  ;;  %v2275_v31 = vpop.xlane.xlu1 %2274 }
 0x9e5   : > { %5460 = vrcp.f32 %v2275_v31 }
 0x9e6   : > { %v5451_v45 = vpop.eup %5450 }
 0x9e7   : > { %v2312_v30 = vmul.f32 %v5451_v45, %v6824_v25 }
 0x9e8   : > { %v2287_v54 = vpop.xlane.xlu0 %2286  ;;  %v2281_v34 = vpop.xlane.xlu1 %2280 }
 0x9e9   : > { %5462 = vrcp.f32 %v2287_v54  ;;  %4535 = vst [vmem:[%s6372_s22 + $0x130] sm:$0xff] %v2312_v30 }
 0x9ea   : > { %v5453_v11 = vpop.eup %5452  ;;  %5464 = vrcp.f32 %v2281_v34 }
 0x9eb   : > { %v5455_v48 = vpop.eup %5454  ;;  %v2310_v6 = vmul.f32 %v5453_v11, %v6831_v9 }
 0x9ec   : > { %v2283_v14 = vpop.xlane.xlu0 %2282  ;;  %v2277_v16 = vpop.xlane.xlu1 %2276  ;;  %v2311_v21 = vmul.f32 %v5455_v48, %v6827_v24 }
 0x9ed   : > { %5466 = vrcp.f32 %v2283_v14  ;;  %4533 = vst [vmem:[%s6372_s22 + $0x120] sm:$0xff] %v2310_v6 }
 0x9ee   : > { %v5457_v4 = vpop.eup %5456  ;;  %5468 = vrcp.f32 %v2277_v16  ;;  %4534 = vst [vmem:[%s6372_s22 + $0x128] sm:$0xff] %v2311_v21  ;;  %v2341_v25 = vpack.c.bf16 %v2311_v21, %v2310_v6 }
 0x9ef   : > { %v5459_v61 = vpop.eup %5458  ;;  %v2313_v5 = vmul.f32 %v5457_v4, %v6837_v41 }
 0x9f0   : > { %4984 = vmatprep.mubr.bf16.mxu0 %v2341_v25  ;;  %v2289_v49 = vpop.xlane.xlu0 %2288  ;;  %v2285_v26 = vpop.xlane.xlu1 %2284  ;;  %v2316_v9 = vmul.f32 %v5459_v61, %v6842_v50 }
 0x9f1   : > { %5470 = vrcp.f32 %v2289_v49  ;;  %4536 = vst [vmem:[%s6372_s22 + $0x138] sm:$0xff] %v2313_v5  ;;  %v2342_v47 = vpack.c.bf16 %v2313_v5, %v2312_v30 }
 0x9f2   : > { %v5461_v24 = vpop.eup %5460  ;;  %5472 = vrcp.f32 %v2285_v26  ;;  %4539 = vst [vmem:[%s6372_s22 + $0x150] sm:$0xff] %v2316_v9 }
 0x9f3   : > { %4985 = vmatmul.mubr.bf16.gmra.mxu0 %v2342_v47  ;;  %v2314_v51 = vmul.f32 %v5461_v24, %v6846_v32 }
 0x9f4   : > { %v2568_v36 = vpop.permute.xlu0 %2567  ;;  %v2566_v1 = vpop.permute.xlu1 %2565 }
 0x9f5   : > { %5178 = vmatprep.subr.msk.bf16.mxu0 %vm906_vm1, %v2568_v36  ;;  %v2609_v41 = vsel %vm906_vm1, %v2568_v36, 0  ;;  %4537 = vst [vmem:[%s6372_s22 + $0x140] sm:$0xff] %v2314_v51  ;;  %v2606_v6 = vsel %vm906_vm1, %v2566_v1, 0 }
 0x9f6   : > { %v5463_v60 = vpop.eup %5462  ;;  %5009 = vmatpush3.bf16.xpose.msra.mxu0 %v2609_v41 }
 0x9f7   : > { %v5465_v50 = vpop.eup %5464  ;;  %5179 = vmatprep.subr.msk.bf16.mxu0 %vm906_vm1, %v2566_v1  ;;  %v2320_v17 = vmul.f32 %v5463_v60, %v6851_v56 }
 0x9f8   : > { %v2550_v2 = vpop.permute.xlu0 %2549  ;;  %v2552_v31 = vpop.permute.xlu1 %2551  ;;  %v2317_v32 = vmul.f32 %v5465_v50, %v6849_v15 }
 0x9f9   : > { %4543 = vst [vmem:[%s6372_s22 + $0x170] sm:$0xff] %v2320_v17 }
 0x9fa   : > { %v5467_v45 = vpop.eup %5466  ;;  %4540 = vst [vmem:[%s6372_s22 + $0x158] sm:$0xff] %v2317_v32  ;;  %v2344_v16 = vpack.c.bf16 %v2317_v32, %v2316_v9 }
 0x9fb   : > { %v5469_v30 = vpop.eup %5468  ;;  %v2318_v54 = vmul.f32 %v5467_v45, %v6857_v62 }
 0x9fc   : > { %v2554_v34 = vpop.permute.xlu0 %2553  ;;  %v2556_v11 = vpop.permute.xlu1 %2555  ;;  %v2315_v48 = vmul.f32 %v5469_v30, %v6855_v10 }
 0x9fd   : > { %4541 = vst [vmem:[%s6372_s22 + $0x160] sm:$0xff] %v2318_v54 }
 0x9fe   : > { %v5471_v56 = vpop.eup %5470  ;;  %5011 = vmatpush3.bf16.xpose.msra.mxu0 %v2606_v6  ;;  %4538 = vst [vmem:[%s6372_s22 + $0x148] sm:$0xff] %v2315_v48  ;;  %v2343_v14 = vpack.c.bf16 %v2315_v48, %v2314_v51 }
 0x9ff   : > { %v5473_v15 = vpop.eup %5472  ;;  %v2321_v21 = vmul.f32 %v5471_v56, %v6861_v3 }
 0xa00   : > { %4988 = vmatprep.mubr.bf16.mxu0 %v2343_v14  ;;  %v2558_v4 = vpop.permute.xlu0 %2557  ;;  %v2560_v62 = vpop.permute.xlu1 %2559  ;;  %v2319_v25 = vmul.f32 %v5473_v15, %v6863_v0 }
 0xa01   : > { %4989 = vmatmul.mubr.bf16.gmra.mxu0 %v2344_v16  ;;  %4544 = vst [vmem:[%s6372_s22 + $0x178] sm:$0xff] %v2321_v21  ;;  %v2346_v49 = vpack.c.bf16 %v2321_v21, %v2320_v17 }
 0xa02   : > { %4542 = vst [vmem:[%s6372_s22 + $0x168] sm:$0xff] %v2319_v25  ;;  %v2345_v10 = vpack.c.bf16 %v2319_v25, %v2318_v54 }
 0xa04   : > { %4992 = vmatprep.mubr.bf16.mxu0 %v2345_v10  ;;  %v2562_v61 = vpop.permute.xlu0 %2561  ;;  %v2564_v5 = vpop.permute.xlu1 %2563 }
 0xa08   : > { %v2942_v26 = vpop.permute.xlu0 %2941  ;;  %v2940_v3 = vpop.permute.xlu1 %2939 }
 0xa09   : > { %4993 = vmatmul.mubr.bf16.gmra.mxu0 %v2346_v49  ;;  %5028 = vmatprep.subr.bf16.mxu0 %v2942_v26 }
 0xa0a   : > { %5012 = vmatprep.mubr.msk.bf16.mxu0 %vm906_vm1, %v2550_v2  ;;  %5132 = vmatprep.subr.bf16.mxu1 %v2942_v26 }
 0xa0b   : > { %5140 = vmatpush3.bf16.msra.mxu1 %v2942_v26 }
 0xa0c   : > { %5133 = vmatprep.subr.bf16.mxu1 %v2940_v3  ;;  %v2938_v9 = vpop.permute.xlu0 %2937 }
 0xa0f   : > { %5141 = vmatpush3.bf16.msra.mxu1 %v2940_v3 }
 0xa10   : > { %5134 = vmatprep.subr.bf16.mxu1 %v2938_v9 }
 0xa11   : > { %5013 = vmatmul.mubr.msk.bf16.vlgmr.msra.gmra.mxu0 %vm906_vm1, %v2552_v31 }
 0xa12   : > { %5029 = vmatpush3.bf16.msra.mxu0 %v2942_v26  ;;  %5016 = vmatprep.mubr.msk.bf16.mxu0 %vm906_vm1, %v2554_v34 }
 0xa13   : > { %5030 = vmatprep.subr.bf16.mxu0 %v2940_v3  ;;  %5142 = vmatpush3.bf16.msra.mxu1 %v2938_v9 }
 0xa16   : > { %5031 = vmatpush3.bf16.msra.mxu0 %v2940_v3 }
 0xa17   : > { %5032 = vmatprep.subr.bf16.mxu0 %v2938_v9 }
 0xa19   : > { %5017 = vmatmul.mubr.msk.bf16.gmra.mxu0 %vm906_vm1, %v2556_v11 }
 0xa1a   : > { %5033 = vmatpush3.bf16.msra.mxu0 %v2938_v9  ;;  %5020 = vmatprep.mubr.msk.bf16.mxu0 %vm906_vm1, %v2558_v4 }
 0xa21   : > { %5021 = vmatmul.mubr.msk.bf16.gmra.mxu0 %vm906_vm1, %v2560_v62 }
 0xa22   : > { %5024 = vmatprep.mubr.msk.bf16.mxu0 %vm906_vm1, %v2562_v61 }
 0xa29   : > { %5025 = vmatmul.mubr.msk.bf16.gmra.mxu0 %vm906_vm1, %v2564_v5 }
 0xa7b   : > { %v6945_v0 = vpop.f32.mrf.mxu0 }
 0xa7d   : > { %v6947_v47 = vpop.f32.mrf.mxu0 }
 0xa7f   : > { %v6949_v24 = vpop.f32.mrf.mxu0 }
 0xa81   : > { %v6951_v51 = vpop.f32.mrf.mxu0 }
 0xab3   : > { %v6953_v36 = vpop.f32.mrf.mxu0 }
 0xab5   : > { %v6955_v1 = vpop.f32.mrf.mxu0 }
 0xab7   : > { %v6957_v41 = vpop.f32.mrf.mxu0 }
 0xab9   : > { %v6959_v60 = vpop.f32.mrf.mxu0 }
 0xac1   : > { %v6961_v50 = vpop.f32.mrf.mxu0 }
 0xac3   : > { %v6963_v17 = vpop.f32.mrf.mxu0 }
 0xac5   : > { %v6965_v2 = vpop.f32.mrf.mxu0 }
 0xac7   : > { %v6967_v31 = vpop.f32.mrf.mxu0 }
 0xac9   : > { %v6969_v32 = vpop.f32.mrf.mxu0 }
 0xacb   : > { %v6971_v45 = vpop.f32.mrf.mxu0 }
 0xacd   : > { %v6973_v30 = vpop.f32.mrf.mxu0 }
 0xacf   : > { %v6975_v54 = vpop.f32.mrf.mxu0 }
 0xad1   : > { %v5014_v34 = vpop.f32.mrf.mxu0 }
 0xad2   : > { %v2728_v11 = vmul.f32 0.35355338, %v5014_v34 }
 0xad3   : > { %v2663_v48 = vpop.f32.mrf.mxu0 }
 0xad4   : > { %v6978_v6 = vadd.f32 %v2728_v11, %v6190_v7  ;;  %v2726_v56 = vmul.f32 0.35355338, %v2663_v48 }
 0xad5   : > { %v5015_v14 = vpop.f32.mrf.mxu0 }
 0xad6   : > { %2762 = vmax.xlane.f32.xlu0 %v6978_v6  ;;  %v6982_v16 = vadd.f32 %v2726_v56, %v6190_v7  ;;  %v2729_v21 = vmul.f32 0.35355338, %v5015_v14 }
 0xad7   : > { %v2666_v15 = vpop.f32.mrf.mxu0 }
 0xad8   : > { %v2727_v4 = vmul.f32 0.35355338, %v2666_v15  ;;  %v6989_v61 = vadd.f32 %v2729_v21, %v6190_v7 }
 0xad9   : > { %v5018_v62 = vpop.f32.mrf.mxu0 }
 0xada   : > { %v6985_v25 = vadd.f32 %v2727_v4, %v6190_v7  ;;  %2758 = vmax.xlane.f32.xlu0 %v6982_v16  ;;  %v2732_v5 = vmul.f32 0.35355338, %v5018_v62 }
 0xadb   : > { %v2679_v10 = vpop.f32.mrf.mxu0 }
 0xadc   : > { %2760 = vmax.xlane.f32.xlu1 %v6985_v25  ;;  %v6994_v9 = vadd.f32 %v2732_v5, %v6190_v7  ;;  %v2730_v34 = vmul.f32 0.35355338, %v2679_v10 }
 0xadd   : > { %v5019_v49 = vpop.f32.mrf.mxu0 }
 0xade   : > { %v2733_v26 = vmul.f32 0.35355338, %v5019_v49  ;;  %2764 = vmax.xlane.f32.xlu0 %v6989_v61  ;;  %v7002_v15 = vadd.f32 %v2730_v34, %v6190_v7 }
 0xadf   : > { %v2682_v3 = vpop.f32.mrf.mxu0 }
 0xae0   : > { %v6997_v11 = vadd.f32 %v2733_v26, %v6190_v7  ;;  %v2731_v48 = vmul.f32 0.35355338, %v2682_v3 }
 0xae1   : > { %v5022_v56 = vpop.f32.mrf.mxu0 }
 0xae2   : > { %2770 = vmax.xlane.f32.xlu0 %v6994_v9  ;;  %2772 = vmax.xlane.f32.xlu1 %v6997_v11  ;;  %v7005_v21 = vadd.f32 %v2731_v48, %v6190_v7  ;;  %v2736_v4 = vmul.f32 0.35355338, %v5022_v56 }
 0xae3   : > { %v2695_v14 = vpop.f32.mrf.mxu0 }
 0xae4   : > { %v7010_v49 = vadd.f32 %v2736_v4, %v6190_v7  ;;  %v2734_v26 = vmul.f32 0.35355338, %v2695_v14 }
 0xae5   : > { %v5023_v62 = vpop.f32.mrf.mxu0 }
 0xae6   : > { %v2737_v5 = vmul.f32 0.35355338, %v5023_v62  ;;  %2766 = vmax.xlane.f32.xlu0 %v7002_v15  ;;  %2768 = vmax.xlane.f32.xlu1 %v7005_v21  ;;  %v7018_v48 = vadd.f32 %v2734_v26, %v6190_v7 }
 0xae7   : > { %v2698_v10 = vpop.f32.mrf.mxu0 }
 0xae8   : > { %v7013_v3 = vadd.f32 %v2737_v5, %v6190_v7  ;;  %v2735_v34 = vmul.f32 0.35355338, %v2698_v10 }
 0xae9   : > { %v5026_v39 = vpop.f32.mrf.mxu0 }
 0xaea   : > { %2778 = vmax.xlane.f32.xlu0 %v7010_v49  ;;  %2780 = vmax.xlane.f32.xlu1 %v7013_v3  ;;  %v7021_v56 = vadd.f32 %v2735_v34, %v6190_v7  ;;  %v2740_v62 = vmul.f32 0.35355338, %v5026_v39 }
 0xaeb   : > { %v2711_v27 = vpop.f32.mrf.mxu0 }
 0xaec   : > { %v7026_v14 = vadd.f32 %v2740_v62, %v6190_v7  ;;  %v2738_v4 = vmul.f32 0.35355338, %v2711_v27 }
 0xaed   : > { %v5027_v39 = vpop.f32.mrf.mxu0 }
 0xaee   : > { %2774 = vmax.xlane.f32.xlu0 %v7018_v48  ;;  %2776 = vmax.xlane.f32.xlu1 %v7021_v56  ;;  %v7030_v5 = vadd.f32 %v2738_v4, %v6190_v7  ;;  %v2741_v10 = vmul.f32 0.35355338, %v5027_v39 }
 0xaef   : > { %v2714_v26 = vpop.f32.mrf.mxu0 }
 0xaf0   : > { %v7038_v34 = vadd.f32 %v2741_v10, %v6190_v7  ;;  %v2739_v27 = vmul.f32 0.35355338, %v2714_v26 }
 0xaf2   : > { %2786 = vmax.xlane.f32.xlu0 %v7026_v14  ;;  %v7042_v62 = vadd.f32 %v2739_v27, %v6190_v7 }
 0xaf6   : > { %2782 = vmax.xlane.f32.xlu0 %v7030_v5 }
 0xaff   : > { %2933 = vrot.lane.b32.xlu1 %v6129_v33, %s5707_s24 }
 0xb0c   : > { %2935 = vrot.lane.b32.xlu0 %v6138_v38, %s5707_s24 }
 0xb23   : > { %2788 = vmax.xlane.f32.xlu1 %v7038_v34 }
 0xb27   : > { %2784 = vmax.xlane.f32.xlu1 %v7042_v62 }
 0xb38   : > { %2931 = vrot.lane.b32.xlu1 %v6142_v40, %s5707_s24 }
 0xb5f   : > { %v2763_v33 = vpop.xlane.xlu0 %2762 }
 0xb60   : > { %v2792_v38 = vsub.f32 %v6978_v6, %v2763_v33 }
 0xb62   : > { %v2810_v4 = vmul.f32 1.442695, %v2792_v38 }
 0xb63   : > { %v2759_v39 = vpop.xlane.xlu0 %2758 }
 0xb64   : > { %5474 = vpow2.f32 %v2810_v4  ;;  %v2790_v10 = vsub.f32 %v6982_v16, %v2759_v39 }
 0xb65   : > { %v2761_v55 = vpop.xlane.xlu1 %2760 }
 0xb66   : > { %v2806_v26 = vmul.f32 1.442695, %v2790_v10  ;;  %v2791_v13 = vsub.f32 %v6985_v25, %v2761_v55 }
 0xb67   : > { %v2765_v59 = vpop.xlane.xlu0 %2764 }
 0xb68   : > { %5476 = vpow2.f32 %v2806_v26  ;;  %v2793_v7 = vsub.f32 %v6989_v61, %v2765_v59  ;;  %v2808_v12 = vmul.f32 1.442695, %v2791_v13 }
 0xb6a   : > { %v2812_v27 = vmul.f32 1.442695, %v2793_v7 }
 0xb6b   : > { %v2771_v53 = vpop.xlane.xlu0 %2770  ;;  %v2773_v40 = vpop.xlane.xlu1 %2772 }
 0xb6c   : > { %5478 = vpow2.f32 %v2812_v27  ;;  %v2796_v6 = vsub.f32 %v6994_v9, %v2771_v53  ;;  %v2797_v16 = vsub.f32 %v6997_v11, %v2773_v40 }
 0xb6d   : > { %5480 = vpow2.f32 %v2808_v12 }
 0xb6e   : > { %v2818_v33 = vmul.f32 1.442695, %v2796_v6  ;;  %v2820_v53 = vmul.f32 1.442695, %v2797_v16 }
 0xb6f   : > { %v2767_v38 = vpop.xlane.xlu0 %2766  ;;  %v2769_v4 = vpop.xlane.xlu1 %2768 }
 0xb70   : > { %5482 = vpow2.f32 %v2818_v33  ;;  %v2794_v55 = vsub.f32 %v7002_v15, %v2767_v38  ;;  %v2795_v25 = vsub.f32 %v7005_v21, %v2769_v4 }
 0xb71   : > { %v7055_v39 = vpop.eup %5474 }
 0xb72   : > { %v2814_v59 = vmul.f32 1.442695, %v2794_v55  ;;  %v2816_v13 = vmul.f32 1.442695, %v2795_v25  ;;  %2842 = vadd.xlane.f32.xlu1 %v7055_v39 }
 0xb73   : > { %v2779_v61 = vpop.xlane.xlu0 %2778  ;;  %v2781_v10 = vpop.xlane.xlu1 %2780 }
 0xb74   : > { %5484 = vpow2.f32 %v2814_v59  ;;  %v2800_v12 = vsub.f32 %v7010_v49, %v2779_v61  ;;  %v2801_v15 = vsub.f32 %v7013_v3, %v2781_v10 }
 0xb75   : > { %v7059_v9 = vpop.eup %5476  ;;  %5486 = vpow2.f32 %v2816_v13 }
 0xb76   : > { %2838 = vadd.xlane.f32.xlu1 %v7059_v9  ;;  %v2826_v11 = vmul.f32 1.442695, %v2800_v12  ;;  %5488 = vpow2.f32 %v2820_v53  ;;  %v2828_v49 = vmul.f32 1.442695, %v2801_v15 }
 0xb77   : > { %v2775_v21 = vpop.xlane.xlu0 %2774  ;;  %v2777_v7 = vpop.xlane.xlu1 %2776 }
 0xb78   : > { %v2798_v26 = vsub.f32 %v7018_v48, %v2775_v21  ;;  %5490 = vpow2.f32 %v2826_v11  ;;  %v2799_v6 = vsub.f32 %v7021_v56, %v2777_v7 }
 0xb79   : > { %v7064_v27 = vpop.eup %5478 }
 0xb7a   : > { %v2822_v40 = vmul.f32 1.442695, %v2798_v26  ;;  %2844 = vadd.xlane.f32.xlu1 %v7064_v27  ;;  %v7068_v38 = vpop.eup %5480  ;;  %v2824_v48 = vmul.f32 1.442695, %v2799_v6 }
 0xb7b   : > { %v2787_v33 = vpop.xlane.xlu0 %2786  ;;  %v2934_v10 = vpop.permute.xlu1 %2933 }
 0xb7c   : > { %5492 = vpow2.f32 %v2822_v40  ;;  %v2804_v3 = vsub.f32 %v7026_v14, %v2787_v33 }
 0xb7d   : > { %v7071_v4 = vpop.eup %5482  ;;  %5494 = vpow2.f32 %v2828_v49 }
 0xb7e   : > { %v2834_v16 = vmul.f32 1.442695, %v2804_v3  ;;  %2850 = vadd.xlane.f32.xlu0 %v7071_v4  ;;  %2840 = vadd.xlane.f32.xlu1 %v7068_v38 }
 0xb7f   : > { %v2783_v55 = vpop.xlane.xlu0 %2782 }
 0xb80   : > { %5496 = vpow2.f32 %v2834_v16  ;;  %v2802_v25 = vsub.f32 %v7030_v5, %v2783_v55 }
 0xb81   : > { %v7076_v56 = vpop.eup %5484  ;;  %5498 = vpow2.f32 %v2824_v48 }
 0xb82   : > { %v7078_v59 = vpop.eup %5486  ;;  %v2830_v13 = vmul.f32 1.442695, %v2802_v25  ;;  %2846 = vadd.xlane.f32.xlu0 %v7076_v56 }
 0xb83   : > { %2848 = vadd.xlane.f32.xlu1 %v7078_v59  ;;  %v2936_v14 = vpop.permute.xlu0 %2935  ;;  %v7082_v61 = vpop.eup %5488 }
 0xb84   : > { %5500 = vpow2.f32 %v2830_v13  ;;  %5034 = vmatprep.subr.bf16.mxu0 %v2936_v14  ;;  %5135 = vmatprep.subr.bf16.mxu1 %v2936_v14 }
 0xb85   : > { %5035 = vmatpush3.bf16.msra.mxu0 %v2936_v14  ;;  %5143 = vmatpush3.bf16.msra.mxu1 %v2936_v14  ;;  %v7085_v5 = vpop.eup %5490 }
 0xb86   : > { %2852 = vadd.xlane.f32.xlu0 %v7082_v61  ;;  %5036 = vmatprep.subr.bf16.mxu0 %v2934_v10 }
 0xb87   : > { %5136 = vmatprep.subr.bf16.mxu1 %v2934_v10 }
 0xb89   : > { %v7087_v53 = vpop.eup %5492  ;;  %5037 = vmatpush3.bf16.msra.mxu0 %v2934_v10  ;;  %5144 = vmatpush3.bf16.msra.mxu1 %v2934_v10 }
 0xb8a   : > { %2858 = vadd.xlane.f32.xlu0 %v7085_v5  ;;  %2854 = vadd.xlane.f32.xlu1 %v7087_v53  ;;  %v7091_v12 = vpop.eup %5494 }
 0xb8d   : > { %v7093_v11 = vpop.eup %5496 }
 0xb8e   : > { %2866 = vadd.xlane.f32.xlu1 %v7093_v11  ;;  %2860 = vadd.xlane.f32.xlu0 %v7091_v12  ;;  %v7097_v15 = vpop.eup %5498 }
 0xb91   : > { %v7099_v21 = vpop.eup %5500 }
 0xb92   : > { %2862 = vadd.xlane.f32.xlu1 %v7099_v21  ;;  %2856 = vadd.xlane.f32.xlu0 %v7097_v15 }
 0xba3   : > { %2927 = vrot.lane.b32.xlu1 %v6120_v8, %s5707_s24 }
 0xba7   : > { %1906 = vrot.lane.b32.xlu1 %v6691_v18, %s8049_s30 }
 0xba8   : > { %2929 = vrot.lane.b32.xlu0 %v6135_v20, %s5707_s24  ;;  %s5634_s24 = scalar_lea.vmem %s7915_s0, 8192 }
 0xba9   : > { %p5635_p11 = scmp.ne.s32.totalorder %s7915_s0, %s5634_s24 }
 0xbab   : > { %1908 = vrot.lane.b32.xlu1 %v6685_v43, %s8049_s30  ;;  %p5636_p12 = pnand %p5635_p11, %p5822_p5 }
 0xbac   : > { %v2789_v26 = vpop.xlane.xlu1 %2788 }
 0xbad   : > { %v2805_v18 = vsub.f32 %v7038_v34, %v2789_v26  ;;  %p5637_p13 = pneg %p5636_p12 }
 0xbaf   : > { %1910 = vrot.lane.b32.xlu1 %v6689_v22, %s8049_s30  ;;  %v2836_v20 = vmul.f32 1.442695, %v2805_v18 }
 0xbb0   : > { %v2785_v7 = vpop.xlane.xlu1 %2784 }
 0xbb1   : > { %v2803_v40 = vsub.f32 %v7042_v62, %v2785_v7 }
 0xbb3   : > { %2486 = vrot.lane.b32.xlu1 %v6951_v51, %s5709_s16  ;;  %v2832_v49 = vmul.f32 1.442695, %v2803_v40 }
 0xbb4   : > { %v2932_v8 = vpop.permute.xlu1 %2931 }
 0xbb5   : > { %5038 = vmatprep.subr.bf16.mxu0 %v2932_v8  ;;  %5137 = vmatprep.subr.bf16.mxu1 %v2932_v8  ;;  %5502 = vpow2.f32 %v2832_v49 }
 0xbb6   : > { %5039 = vmatpush3.bf16.msra.mxu0 %v2932_v8  ;;  %5145 = vmatpush3.bf16.msra.mxu1 %v2932_v8  ;;  %5504 = vpow2.f32 %v2836_v20 }
 0xbb7   : > { %2490 = vrot.lane.b32.xlu1 %v6949_v24, %s5709_s16 }
 0xbbb   : > { %1914 = vrot.lane.b32.xlu1 %v6699_v35, %s8049_s30 }
 0xbbf   : > { %1918 = vrot.lane.b32.xlu1 %v6697_v44, %s8049_s30 }
 0xbc2   : > { %v7125_v43 = vpop.eup %5502 }
 0xbc3   : > { %2494 = vrot.lane.b32.xlu1 %v6959_v60, %s5709_s16  ;;  %v7130_v22 = vpop.eup %5504 }
 0xbc7   : > { %2498 = vrot.lane.b32.xlu1 %v6957_v41, %s5709_s16  ;;  %2864 = vadd.xlane.f32.xlu0 %v7125_v43 }
 0xbcb   : > { %1922 = vrot.lane.b32.xlu1 %v6707_v42, %s8049_s30  ;;  %2868 = vadd.xlane.f32.xlu0 %v7130_v22 }
 0xbcf   : > { %1926 = vrot.lane.b32.xlu1 %v6705_v57, %s8049_s30 }
 0xbd3   : > { %2502 = vrot.lane.b32.xlu1 %v6967_v31, %s5709_s16 }
 0xbd7   : > { %2506 = vrot.lane.b32.xlu1 %v6965_v2, %s5709_s16 }
 0xbdb   : > { %1930 = vrot.lane.b32.xlu1 %v6715_v19, %s8049_s30 }
 0xbdf   : > { %1934 = vrot.lane.b32.xlu1 %v6713_v37, %s8049_s30 }
 0xbe1   : > { %1904 = vrot.lane.b32.xlu0 %v6687_v58, %s8049_s30 }
 0xbe3   : > { %2510 = vrot.lane.b32.xlu1 %v6975_v54, %s5709_s16 }
 0xbe5   : > { %2484 = vrot.lane.b32.xlu0 %v6947_v47, %s5709_s16 }
 0xbe9   : > { %2488 = vrot.lane.b32.xlu0 %v6945_v0, %s5709_s16 }
 0xbed   : > { %1912 = vrot.lane.b32.xlu0 %v6695_v46, %s8049_s30 }
 0xbf1   : > { %1916 = vrot.lane.b32.xlu0 %v6693_v23, %s8049_s30 }
 0xbf5   : > { %2492 = vrot.lane.b32.xlu0 %v6955_v1, %s5709_s16 }
 0xbf9   : > { %2496 = vrot.lane.b32.xlu0 %v6953_v36, %s5709_s16 }
 0xbfb   : > { %v2843_v58 = vpop.xlane.xlu1 %2842 }
 0xbfc   : > { %5506 = vrcp.f32 %v2843_v58 }
 0xbfd   : > { %1920 = vrot.lane.b32.xlu0 %v6703_v28, %s8049_s30 }
 0xbff   : > { %v2839_v44 = vpop.xlane.xlu1 %2838 }
 0xc00   : > { %5508 = vrcp.f32 %v2839_v44 }
 0xc01   : > { %1924 = vrot.lane.b32.xlu0 %v6701_v52, %s8049_s30 }
 0xc03   : > { %v2845_v46 = vpop.xlane.xlu1 %2844 }
 0xc04   : > { %5510 = vrcp.f32 %v2845_v46 }
 0xc05   : > { %2500 = vrot.lane.b32.xlu0 %v6963_v17, %s5709_s16 }
 0xc07   : > { %v2851_v23 = vpop.xlane.xlu0 %2850  ;;  %v2841_v35 = vpop.xlane.xlu1 %2840 }
 0xc08   : > { %5512 = vrcp.f32 %v2851_v23 }
 0xc09   : > { %v5507_v57 = vpop.eup %5506  ;;  %5514 = vrcp.f32 %v2841_v35  ;;  %2504 = vrot.lane.b32.xlu0 %v6961_v50, %s5709_s16 }
 0xc0a   : > { %v7170_v28 = vmul.f32 %v5507_v57, %v7055_v39 }
 0xc0b   : > { %v2847_v42 = vpop.xlane.xlu0 %2846 }
 0xc0c   : > { %5516 = vrcp.f32 %v2847_v42  ;;  %v2849_v52 = vpop.xlane.xlu1 %2848  ;;  %4555 = vst [vmem:[%s6372_s22 + $0x190] sm:$0xff] %v7170_v28 }
 0xc0d   : > { %v5509_v37 = vpop.eup %5508  ;;  %5518 = vrcp.f32 %v2849_v52  ;;  %1928 = vrot.lane.b32.xlu0 %v6711_v29, %s8049_s30 }
 0xc0e   : > { %v2886_v19 = vmul.f32 %v5509_v37, %v7059_v9 }
 0xc0f   : > { %v2853_v0 = vpop.xlane.xlu0 %2852 }
 0xc10   : > { %5520 = vrcp.f32 %v2853_v0  ;;  %4553 = vst [vmem:[%s6372_s22 + $0x180] sm:$0xff] %v2886_v19 }
 0xc11   : > { %v5511_v47 = vpop.eup %5510  ;;  %1932 = vrot.lane.b32.xlu0 %v6709_v63, %s8049_s30 }
 0xc12   : > { %v2889_v24 = vmul.f32 %v5511_v47, %v7064_v27 }
 0xc13   : > { %v2859_v51 = vpop.xlane.xlu0 %2858  ;;  %v2855_v36 = vpop.xlane.xlu1 %2854 }
 0xc14   : > { %5522 = vrcp.f32 %v2859_v51  ;;  %4556 = vst [vmem:[%s6372_s22 + $0x198] sm:$0xff] %v2889_v24 }
 0xc15   : > { %v5513_v1 = vpop.eup %5512  ;;  %5524 = vrcp.f32 %v2855_v36  ;;  %2508 = vrot.lane.b32.xlu0 %v6971_v45, %s5709_s16 }
 0xc16   : > { %v5515_v29 = vpop.eup %5514  ;;  %v2892_v41 = vmul.f32 %v5513_v1, %v7071_v4 }
 0xc17   : > { %v2861_v60 = vpop.xlane.xlu0 %2860  ;;  %v2867_v50 = vpop.xlane.xlu1 %2866  ;;  %v2887_v63 = vmul.f32 %v5515_v29, %v7068_v38 }
 0xc18   : > { %5526 = vrcp.f32 %v2861_v60  ;;  %4559 = vst [vmem:[%s6372_s22 + $0x1b0] sm:$0xff] %v2892_v41 }
 0xc19   : > { %v5517_v17 = vpop.eup %5516  ;;  %5528 = vrcp.f32 %v2867_v50  ;;  %4554 = vst [vmem:[%s6372_s22 + $0x188] sm:$0xff] %v2887_v63  ;;  %v2919_v2 = vpack.c.bf16 %v2887_v63, %v2886_v19 }
 0xc1a   : > { %v5519_v31 = vpop.eup %5518  ;;  %v2890_v54 = vmul.f32 %v5517_v17, %v7076_v56  ;;  %v2920_v56 = vpack.c.bf16 %v2889_v24, %v7170_v28 }
 0xc1b   : > { %5044 = vmatprep.mubr.bf16.mxu0 %v2919_v2  ;;  %v2857_v45 = vpop.xlane.xlu0 %2856  ;;  %v2863_v34 = vpop.xlane.xlu1 %2862  ;;  %v2891_v62 = vmul.f32 %v5519_v31, %v7078_v59 }
 0xc1c   : > { %5530 = vrcp.f32 %v2857_v45  ;;  %4557 = vst [vmem:[%s6372_s22 + $0x1a0] sm:$0xff] %v2890_v54  ;;  %v5238_v45 = vld [vmem:[%s8022_s4 + $0x8] sm:$0xff]  }
 0xc1d   : > { %v5521_v39 = vpop.eup %5520  ;;  %5532 = vrcp.f32 %v2863_v34  ;;  %4558 = vst [vmem:[%s6372_s22 + $0x1a8] sm:$0xff] %v2891_v62  ;;  %v2921_v9 = vpack.c.bf16 %v2891_v62, %v2890_v54 }
 0xc1e   : > { %v2893_v27 = vmul.f32 %v5521_v39, %v7082_v61  ;;  %v5239_v39 = vld [vmem:[%s8022_s4] sm:$0xff]  }
 0xc1f   : > { %5048 = vmatprep.mubr.bf16.mxu1 %v2921_v9  ;;  %v2930_v6 = vpop.permute.xlu0 %2929  ;;  %v2928_v33 = vpop.permute.xlu1 %2927 }
 0xc20   : > { %5040 = vmatprep.subr.bf16.mxu0 %v2930_v6  ;;  %5138 = vmatprep.subr.bf16.mxu1 %v2930_v6  ;;  %4560 = vst [vmem:[%s6372_s22 + $0x1b8] sm:$0xff] %v2893_v27  ;;  %v2922_v59 = vpack.c.bf16 %v2893_v27, %v2892_v41 }
 0xc21   : > { %v5523_v38 = vpop.eup %5522  ;;  %5041 = vmatpush3.bf16.msra.mxu0 %v2930_v6  ;;  %5146 = vmatpush3.bf16.msra.mxu1 %v2930_v6 }
 0xc22   : > { %v5525_v3 = vpop.eup %5524  ;;  %5042 = vmatprep.subr.bf16.mxu0 %v2928_v33  ;;  %5139 = vmatprep.subr.bf16.mxu1 %v2928_v33  ;;  %v2896_v4 = vmul.f32 %v5523_v38, %v7085_v5 }
 0xc23   : > { %v1907_v16 = vpop.permute.xlu1 %1906  ;;  %v2894_v48 = vmul.f32 %v5525_v3, %v7087_v53 }
 0xc24   : > { %1954 = vst.msk [vmem:[#allocation2 + $0x8] sm:$0xff] %vm1952_vm3, %v1907_v16  ;;  %4563 = vst [vmem:[%s6372_s22 + $0x1d0] sm:$0xff] %v2896_v4 }
 0xc25   : > { %v5527_v55 = vpop.eup %5526  ;;  %5043 = vmatpush3.bf16.msra.mxu0 %v2928_v33  ;;  %5147 = vmatpush3.bf16.msra.mxu1 %v2928_v33  ;;  %4561 = vst [vmem:[%s6372_s22 + $0x1c0] sm:$0xff] %v2894_v48 }
 0xc26   : > { %v5529_v25 = vpop.eup %5528  ;;  %v2897_v13 = vmul.f32 %v5527_v55, %v7091_v12  ;;  %5060 = vmatprep.subr.bf16.mxu1 %v5238_v45 }
 0xc27   : > { %v1909_v14 = vpop.permute.xlu1 %1908  ;;  %v7202_v61 = vmul.f32 %v5529_v25, %v7093_v11 }
 0xc28   : > { %1955 = vst.msk [vmem:[#allocation2 + $0x10] sm:$0xff] %vm1952_vm3, %v1909_v14  ;;  %5045 = vmatmul.mubr.bf16.vlgmr.msra.gmra.mxu0 %v2920_v56  ;;  %5049 = vmatmul.mubr.bf16.vlgmr.msra.gmra.mxu1 %v2922_v59  ;;  %4564 = vst [vmem:[%s6372_s22 + $0x1d8] sm:$0xff] %v2897_v13  ;;  %v2924_v11 = vpack.c.bf16 %v2897_v13, %v2896_v4 }
 0xc29   : > { %v5531_v10 = vpop.eup %5530  ;;  %4567 = vst [vmem:[%s6372_s22 + $0x1f0] sm:$0xff] %v7202_v61  ;;  %5061 = vmatpush3.bf16.msra.mxu1 %v5238_v45 }
 0xc2a   : > { %v5533_v5 = vpop.eup %5532  ;;  %v2895_v53 = vmul.f32 %v5531_v10, %v7097_v15  ;;  %5062 = vmatprep.subr.bf16.mxu1 %v5239_v39 }
 0xc2b   : > { %v1911_v26 = vpop.permute.xlu1 %1910  ;;  %v2898_v7 = vmul.f32 %v5533_v5, %v7099_v21 }
 0xc2c   : > { %1956 = vst.msk [vmem:[#allocation2 + $0x18] sm:$0xff] %vm1952_vm3, %v1911_v26  ;;  %4562 = vst [vmem:[%s6372_s22 + $0x1c8] sm:$0xff] %v2895_v53  ;;  %v2923_v12 = vpack.c.bf16 %v2895_v53, %v2894_v48 }
 0xc2d   : > { %4565 = vst [vmem:[%s6372_s22 + $0x1e0] sm:$0xff] %v2898_v7  ;;  %5063 = vmatpush3.bf16.msra.mxu1 %v5239_v39 }
 0xc2e   : > { %5052 = vmatprep.mubr.bf16.mxu1 %v2923_v12 }
 0xc2f   : > { %v2487_v40 = vpop.permute.xlu1 %2486 }
 0xc30   : > { %2534 = vst.msk [vmem:[#allocation2 + $0x8] sm:$0xff] %vm2532_vm4, %v2487_v40  ;;  %5053 = vmatmul.mubr.bf16.gmra.mxu1 %v2924_v11 }
 0xc33   : > { %v2491_v8 = vpop.permute.xlu1 %2490 }
 0xc34   : > { %2536 = vst.msk [vmem:[#allocation2 + $0x18] sm:$0xff] %vm2532_vm4, %v2491_v8 }
 0xc37   : > { %v1915_v18 = vpop.permute.xlu1 %1914 }
 0xc38   : > { %1958 = vst.msk [vmem:[#allocation2 + $0x28] sm:$0xff] %vm1952_vm3, %v1915_v18 }
 0xc3b   : > { %v1919_v15 = vpop.permute.xlu1 %1918 }
 0xc3c   : > { %1960 = vst.msk [vmem:[#allocation2 + $0x38] sm:$0xff] %vm1952_vm3, %v1919_v15 }
 0xc3f   : > { %v2495_v21 = vpop.permute.xlu1 %2494 }
 0xc40   : > { %2538 = vst.msk [vmem:[#allocation2 + $0x28] sm:$0xff] %vm2532_vm4, %v2495_v21 }
 0xc43   : > { %v2499_v49 = vpop.permute.xlu1 %2498 }
 0xc44   : > { %2540 = vst.msk [vmem:[#allocation2 + $0x38] sm:$0xff] %vm2532_vm4, %v2499_v49 }
 0xc47   : > { %v1923_v20 = vpop.permute.xlu1 %1922 }
 0xc48   : > { %1962 = vst.msk [vmem:[#allocation2 + $0x48] sm:$0xff] %vm1952_vm3, %v1923_v20 }
 0xc4b   : > { %v1927_v58 = vpop.permute.xlu1 %1926 }
 0xc4c   : > { %1964 = vst.msk [vmem:[#allocation2 + $0x58] sm:$0xff] %vm1952_vm3, %v1927_v58 }
 0xc4f   : > { %v2503_v44 = vpop.permute.xlu1 %2502 }
 0xc50   : > { %2542 = vst.msk [vmem:[#allocation2 + $0x48] sm:$0xff] %vm2532_vm4, %v2503_v44  ;;  %v2865_v46 = vpop.xlane.xlu0 %2864 }
 0xc51   : > { %5534 = vrcp.f32 %v2865_v46 }
 0xc53   : > { %v2507_v23 = vpop.permute.xlu1 %2506 }
 0xc54   : > { %2544 = vst.msk [vmem:[#allocation2 + $0x58] sm:$0xff] %vm2532_vm4, %v2507_v23  ;;  %v2869_v35 = vpop.xlane.xlu0 %2868 }
 0xc55   : > { %5536 = vrcp.f32 %v2869_v35 }
 0xc57   : > { %v1931_v57 = vpop.permute.xlu1 %1930 }
 0xc58   : > { %1966 = vst.msk [vmem:[#allocation2 + $0x68] sm:$0xff] %vm1952_vm3, %v1931_v57  ;;  %v1905_v28 = vpop.permute.xlu0 %1904 }
 0xc59   : > { %1953 = vst.msk [vmem:[#allocation2] sm:$0xff] %vm1952_vm3, %v1905_v28 }
 0xc5b   : > { %v1935_v42 = vpop.permute.xlu1 %1934 }
 0xc5c   : > { %1968 = vst.msk [vmem:[#allocation2 + $0x78] sm:$0xff] %vm1952_vm3, %v1935_v42  ;;  %v2485_v52 = vpop.permute.xlu0 %2484 }
 0xc5d   : > { %2533 = vst.msk [vmem:[#allocation2] sm:$0xff] %vm2532_vm4, %v2485_v52 }
 0xc5e   : > { %v5535_v37 = vpop.eup %5534 }
 0xc5f   : > { %v2511_v19 = vpop.permute.xlu1 %2510  ;;  %v2899_v0 = vmul.f32 %v5535_v37, %v7125_v43 }
 0xc60   : > { %2546 = vst.msk [vmem:[#allocation2 + $0x68] sm:$0xff] %vm2532_vm4, %v2511_v19  ;;  %v2489_v47 = vpop.permute.xlu0 %2488 }
 0xc61   : > { %2535 = vst.msk [vmem:[#allocation2 + $0x10] sm:$0xff] %vm2532_vm4, %v2489_v47  ;;  %4566 = vst [vmem:[%s6372_s22 + $0x1e8] sm:$0xff] %v2899_v0  ;;  %v2925_v24 = vpack.c.bf16 %v2899_v0, %v2898_v7 }
 0xc62   : > { %v5537_v51 = vpop.eup %5536 }
 0xc63   : > { %5056 = vmatprep.mubr.bf16.mxu1 %v2925_v24  ;;  %v2901_v36 = vmul.f32 %v5537_v51, %v7130_v22 }
 0xc64   : > { %v1913_v1 = vpop.permute.xlu0 %1912 }
 0xc65   : > { %1957 = vst.msk [vmem:[#allocation2 + $0x20] sm:$0xff] %vm1952_vm3, %v1913_v1  ;;  %4568 = vst [vmem:[%s6372_s22 + $0x1f8] sm:$0xff] %v2901_v36  ;;  %v2926_v29 = vpack.c.bf16 %v2901_v36, %v7202_v61 }
 0xc67   : > { %5057 = vmatmul.mubr.bf16.gmra.mxu1 %v2926_v29 }
 0xc68   : > { %v1917_v41 = vpop.permute.xlu0 %1916 }
 0xc69   : > { %1959 = vst.msk [vmem:[#allocation2 + $0x30] sm:$0xff] %vm1952_vm3, %v1917_v41 }
 0xc6c   : > { %v2493_v43 = vpop.permute.xlu0 %2492 }
 0xc6d   : > { %2537 = vst.msk [vmem:[#allocation2 + $0x20] sm:$0xff] %vm2532_vm4, %v2493_v43 }
 0xc70   : > { %v2497_v60 = vpop.permute.xlu0 %2496 }
 0xc71   : > { %2539 = vst.msk [vmem:[#allocation2 + $0x30] sm:$0xff] %vm2532_vm4, %v2497_v60 }
 0xc74   : > { %v1921_v50 = vpop.permute.xlu0 %1920 }
 0xc75   : > { %1961 = vst.msk [vmem:[#allocation2 + $0x40] sm:$0xff] %vm1952_vm3, %v1921_v50 }
 0xc78   : > { %v1925_v22 = vpop.permute.xlu0 %1924 }
 0xc79   : > { %1963 = vst.msk [vmem:[#allocation2 + $0x50] sm:$0xff] %vm1952_vm3, %v1925_v22 }
 0xc7c   : > { %v2501_v63 = vpop.permute.xlu0 %2500 }
 0xc7d   : > { %2541 = vst.msk [vmem:[#allocation2 + $0x40] sm:$0xff] %vm2532_vm4, %v2501_v63 }
 0xc80   : > { %v2505_v17 = vpop.permute.xlu0 %2504 }
 0xc81   : > { %2543 = vst.msk [vmem:[#allocation2 + $0x50] sm:$0xff] %vm2532_vm4, %v2505_v17 }
 0xc84   : > { %v1929_v2 = vpop.permute.xlu0 %1928 }
 0xc85   : > { %1965 = vst.msk [vmem:[#allocation2 + $0x60] sm:$0xff] %vm1952_vm3, %v1929_v2  ;;  %v7300_v2 = vld [vmem:[%s8023_s5] ss:$0 sm:$0xff] }
 0xc88   : > { %v1933_v31 = vpop.permute.xlu0 %1932 }
 0xc89   : > { %1967 = vst.msk [vmem:[#allocation2 + $0x70] sm:$0xff] %vm1952_vm3, %v1933_v31 }
 0xc8c   : > { %v2509_v54 = vpop.permute.xlu0 %2508 }
 0xc8d   : > { %2545 = vst.msk [vmem:[#allocation2 + $0x60] sm:$0xff] %vm2532_vm4, %v2509_v54 }
 0xce8   : > { %v5046_v34 = vpop.f32.mrf.mxu0  ;;  %v5050_v62 = vpop.f32.mrf.mxu1 }
 0xce9   : > { %3068 = vrot.lane.b32.xlu0 %v5046_v34, %s5710_s15 }
 0xcea   : > { %v2985_v9 = vpop.f32.mrf.mxu0  ;;  %v3001_v27 = vpop.f32.mrf.mxu1 }
 0xcec   : > { %v5047_v6 = vpop.f32.mrf.mxu0  ;;  %v5051_v33 = vpop.f32.mrf.mxu1 }
 0xced   : > { %3064 = vrot.lane.b32.xlu0 %v2985_v9, %s5710_s15  ;;  %3070 = vrot.lane.b32.xlu1 %v5047_v6, %s5710_s15 }
 0xcee   : > { %v2988_v38 = vpop.f32.mrf.mxu0  ;;  %v3004_v3 = vpop.f32.mrf.mxu1 }
 0xcf0   : > { %v5054_v4 = vpop.f32.mrf.mxu1 }
 0xcf1   : > { %3076 = vrot.lane.b32.xlu0 %v5050_v62, %s5710_s15  ;;  %3066 = vrot.lane.b32.xlu1 %v2988_v38, %s5710_s15  ;;  %v8083_v62 = vld [vmem:[#allocation6_spill] sm:$0xff] }
 0xcf2   : > { %v3017_v16 = vpop.f32.mrf.mxu1 }
 0xcf4   : > { %v5055_v48 = vpop.f32.mrf.mxu1 }
 0xcf5   : > { %3072 = vrot.lane.b32.xlu0 %v3001_v27, %s5710_s15  ;;  %3078 = vrot.lane.b32.xlu1 %v5051_v33, %s5710_s15  ;;  %v8084_v27 = vld [vmem:[#allocation8_spill] sm:$0xff] }
 0xcf6   : > { %v3020_v55 = vpop.f32.mrf.mxu1 }
 0xcf9   : > { %3084 = vrot.lane.b32.xlu0 %v5054_v4, %s5710_s15  ;;  %3074 = vrot.lane.b32.xlu1 %v3004_v3, %s5710_s15 }
 0xcfd   : > { %3080 = vrot.lane.b32.xlu0 %v3017_v16, %s5710_s15  ;;  %3086 = vrot.lane.b32.xlu1 %v5055_v48, %s5710_s15  ;;  %v8085_v16 = vld [vmem:[#allocation7_spill] sm:$0xff] }
 0xd01   : > { %2512 = vrot.lane.b32.xlu0 %v6969_v32, %s5709_s16  ;;  %3082 = vrot.lane.b32.xlu1 %v3020_v55, %s5710_s15 }
 0xd05   : > { %2514 = vrot.lane.b32.xlu1 %v6973_v30, %s5709_s16  ;;  %s7912_s16 = scalar_lea.hbm %s8031_s13, %s4609_s21 }
 0xd27   : > { %v5058_v25 = vpop.f32.mrf.mxu1 }
 0xd29   : > { %v3033_v56 = vpop.f32.mrf.mxu1 }
 0xd2a   : > { %3088 = vrot.lane.b32.xlu0 %v3033_v56, %s5710_s15 }
 0xd2b   : > { %v5059_v59 = vpop.f32.mrf.mxu1 }
 0xd2d   : > { %v3036_v13 = vpop.f32.mrf.mxu1 }
 0xd2e   : > { %3092 = vrot.lane.b32.xlu0 %v5058_v25, %s5710_s15  ;;  %3090 = vrot.lane.b32.xlu1 %v3036_v13, %s5710_s15  ;;  %v8086_v25 = vld [vmem:[#allocation9_spill] sm:$0xff] }
 0xd32   : > { %3094 = vrot.lane.b32.xlu1 %v5059_v59, %s5710_s15  ;;  %s5640_s15 = scalar_lea.vmem %s5639_s2, 16384 }
 0xd33   : > { %p5642_p1 = scmp.lt.s32.totalorder %s5640_s15, %s5634_s24 }
 0xd35   : > { %p5643_p2 = por %p5642_p1, %p5641_p0 }
 0xd37   : > { %p5644_p3 = pnand %p5643_p2, %p5637_p13 }
 0xd5b   : > { %v3069_v14 = vpop.permute.xlu0 %3068 }
 0xd5c   : > { %3115 = vst.msk [vmem:[#allocation2 + $0x10] sm:$0xff] %vm3112_vm5, %v3069_v14 }
 0xd5f   : > { %v3065_v32 = vpop.permute.xlu0 %3064  ;;  %v3071_v61 = vpop.permute.xlu1 %3070 }
 0xd60   : > { %3113 = vst.msk [vmem:[#allocation2] sm:$0xff] %vm3112_vm5, %v3065_v32  ;;  %3116 = vst.msk [vmem:[#allocation2 + $0x18] sm:$0xff] %vm3112_vm5, %v3071_v61 }
 0xd63   : > { %v3077_v30 = vpop.permute.xlu0 %3076  ;;  %v3067_v10 = vpop.permute.xlu1 %3066  ;;  %v3131_v18 = vld [vmem:[#allocation2 + $0x10] sm:$0xff] }
 0xd64   : > { %3119 = vst.msk [vmem:[#allocation2 + $0x30] sm:$0xff] %vm3112_vm5, %v3077_v30  ;;  %3114 = vst.msk [vmem:[#allocation2 + $0x8] sm:$0xff] %vm3112_vm5, %v3067_v10  ;;  %v8087_v10 = vld [vmem:[#allocation10_spill] sm:$0xff] }
 0xd67   : > { %v3073_v5 = vpop.permute.xlu0 %3072  ;;  %v3079_v53 = vpop.permute.xlu1 %3078  ;;  %v3132_v26 = vld [vmem:[#allocation2 + $0x18] sm:$0xff]  ;;  %v3129_v11 = vld [vmem:[#allocation2] sm:$0xff] }
 0xd68   : > { %3117 = vst.msk [vmem:[#allocation2 + $0x20] sm:$0xff] %vm3112_vm5, %v3073_v5  ;;  %3120 = vst.msk [vmem:[#allocation2 + $0x38] sm:$0xff] %vm3112_vm5, %v3079_v53  ;;  %v3146_v15 = vpack.c.bf16 %v3132_v26, %v3131_v18 }
 0xd6b   : > { %v3085_v7 = vpop.permute.xlu0 %3084  ;;  %v3075_v12 = vpop.permute.xlu1 %3074  ;;  %v3130_v40 = vld [vmem:[#allocation2 + $0x8] sm:$0xff]  ;;  %v3135_v57 = vld [vmem:[#allocation2 + $0x30] sm:$0xff] }
 0xd6c   : > { %3123 = vst.msk [vmem:[#allocation2 + $0x50] sm:$0xff] %vm3112_vm5, %v3085_v7  ;;  %3118 = vst.msk [vmem:[#allocation2 + $0x28] sm:$0xff] %vm3112_vm5, %v3075_v12  ;;  %v3145_v8 = vpack.c.bf16 %v3130_v40, %v3129_v11  ;;  %v8088_v11 = vld [vmem:[#allocation11_spill] sm:$0xff] }
 0xd6e   : > { %5064 = vmatprep.mubr.msk.bf16.mxu1 %vm471_vm0, %v3145_v8  ;;  %v8089_v8 = vld [vmem:[#allocation12_spill] sm:$0xff] }
 0xd6f   : > { %v3081_v21 = vpop.permute.xlu0 %3080  ;;  %5065 = vmatmul.mubr.msk.bf16.vlgmr.msra.gmra.mxu1 %vm471_vm0, %v3146_v15  ;;  %v3087_v49 = vpop.permute.xlu1 %3086  ;;  %v3136_v20 = vld [vmem:[#allocation2 + $0x38] sm:$0xff]  ;;  %v3133_v46 = vld [vmem:[#allocation2 + $0x20] sm:$0xff] }
 0xd70   : > { %3121 = vst.msk [vmem:[#allocation2 + $0x40] sm:$0xff] %vm3112_vm5, %v3081_v21  ;;  %3124 = vst.msk [vmem:[#allocation2 + $0x58] sm:$0xff] %vm3112_vm5, %v3087_v49  ;;  %v3148_v28 = vpack.c.bf16 %v3136_v20, %v3135_v57  ;;  %v8090_v21 = vld [vmem:[#allocation13_spill] sm:$0xff] }
 0xd73   : > { %v2513_v58 = vpop.permute.xlu0 %2512  ;;  %v3083_v44 = vpop.permute.xlu1 %3082  ;;  %v3134_v23 = vld [vmem:[#allocation2 + $0x28] sm:$0xff]  ;;  %v3139_v47 = vld [vmem:[#allocation2 + $0x50] sm:$0xff] }
 0xd74   : > { %2547 = vst.msk [vmem:[#allocation2 + $0x70] sm:$0xff] %vm2532_vm4, %v2513_v58  ;;  %v3147_v35 = vpack.c.bf16 %v3134_v23, %v3133_v46 }
 0xd75   : > { %3122 = vst.msk [vmem:[#allocation2 + $0x48] sm:$0xff] %vm3112_vm5, %v3083_v44 }
 0xd76   : > { %5068 = vmatprep.mubr.msk.bf16.mxu1 %vm471_vm0, %v3147_v35 }
 0xd77   : > { %5069 = vmatmul.mubr.msk.bf16.gmra.mxu1 %vm471_vm0, %v3148_v28  ;;  %v2515_v42 = vpop.permute.xlu1 %2514  ;;  %v3140_v52 = vld [vmem:[#allocation2 + $0x58] sm:$0xff]  ;;  %v3137_v37 = vld [vmem:[#allocation2 + $0x40] sm:$0xff] }
 0xd78   : > { %2548 = vst.msk [vmem:[#allocation2 + $0x78] sm:$0xff] %vm2532_vm4, %v2515_v42  ;;  %v3150_v24 = vpack.c.bf16 %v3140_v52, %v3139_v47  ;;  %v8091_v28 = vld [vmem:[#allocation14_spill] sm:$0xff] }
 0xd7c   : > { %v3138_v19 = vld [vmem:[#allocation2 + $0x48] sm:$0xff] }
 0xd7d   : > { %v3149_v0 = vpack.c.bf16 %v3138_v19, %v3137_v37 }
 0xd7f   : > { %5072 = vmatprep.mubr.msk.bf16.mxu1 %vm471_vm0, %v3149_v0  ;;  %v8092_v0 = vld [vmem:[#allocation15_spill] sm:$0xff] }
 0xd80   : > { %5073 = vmatmul.mubr.msk.bf16.gmra.mxu1 %vm471_vm0, %v3150_v24  ;;  %v8094_v24 = vld [vmem:[#allocation16_spill] sm:$0xff] }
 0xd9c   : > { %v3089_v51 = vpop.permute.xlu0 %3088 }
 0xd9d   : > { %3125 = vst.msk [vmem:[#allocation2 + $0x60] sm:$0xff] %vm3112_vm5, %v3089_v51 }
 0xda0   : > { %v3093_v36 = vpop.permute.xlu0 %3092  ;;  %v3091_v1 = vpop.permute.xlu1 %3090 }
 0xda1   : > { %3127 = vst.msk [vmem:[#allocation2 + $0x70] sm:$0xff] %vm3112_vm5, %v3093_v36  ;;  %3126 = vst.msk [vmem:[#allocation2 + $0x68] sm:$0xff] %vm3112_vm5, %v3091_v1  ;;  %v8095_v36 = vld [vmem:[#allocation17_spill] sm:$0xff] }
 0xda4   : > { %v3095_v29 = vpop.permute.xlu1 %3094  ;;  %v3141_v41 = vld [vmem:[#allocation2 + $0x60] sm:$0xff] }
 0xda5   : > { %3128 = vst.msk [vmem:[#allocation2 + $0x78] sm:$0xff] %vm3112_vm5, %v3095_v29 }
 0xda8   : > { %v3142_v43 = vld [vmem:[#allocation2 + $0x68] sm:$0xff]  ;;  %v3143_v50 = vld [vmem:[#allocation2 + $0x70] sm:$0xff] }
 0xda9   : > { %v3151_v60 = vpack.c.bf16 %v3142_v43, %v3141_v41 }
 0xdab   : > { %5076 = vmatprep.mubr.msk.bf16.mxu1 %vm471_vm0, %v3151_v60 }
 0xdac   : > { %v3144_v22 = vld [vmem:[#allocation2 + $0x78] sm:$0xff] }
 0xdad   : > { %v3152_v63 = vpack.c.bf16 %v3144_v22, %v3143_v50 }
 0xdaf   : > { %5077 = vmatmul.mubr.msk.bf16.gmra.mxu1 %vm471_vm0, %v3152_v63 }
 0xe2f   : > { %v5066_v17 = vpop.f32.mrf.mxu1 }
 0xe30   : > { %v3243_v54 = vadd.f32 %v5066_v17, %v7300_v2 }
 0xe31   : > { %v3234_v31 = vpop.f32.mrf.mxu1 }
 0xe32   : > { %v3235_v45 = vadd.f32 %v7300_v2, %v3234_v31  ;;  %v7308_v6 = vadd.f32 %v3243_v54, %v8084_v27  ;;  %v8097_v54 = vld [vmem:[#allocation18_spill] sm:$0xff] }
 0xe33   : > { %v5067_v34 = vpop.f32.mrf.mxu1 }
 0xe34   : > { %v7305_v39 = vadd.f32 %v3235_v45, %v8083_v62  ;;  %v3246_v33 = vadd.f32 %v5067_v34, %v7300_v2  ;;  %v3321_v14 = vsel %vm471_vm0, %v7308_v6, 0.0  ;;  %v8099_v62 = vld [vmem:[#allocation20_spill] sm:$0xff] }
 0xe35   : > { %v3237_v9 = vpop.f32.mrf.mxu1 }
 0xe36   : > { %v3238_v38 = vadd.f32 %v7300_v2, %v3237_v9  ;;  %v3315_v3 = vsel %vm471_vm0, %v7305_v39, 0.0  ;;  %v7318_v56 = vadd.f32 %v3246_v33, %v8086_v25 }
 0xe37   : > { %3316 = vadd.xlane.f32.xlu0 %v3315_v3  ;;  %v5070_v4 = vpop.f32.mrf.mxu1  ;;  %v8101_v3 = vld [vmem:[#allocation19_spill] sm:$0xff] }
 0xe38   : > { %v7315_v48 = vadd.f32 %v3238_v38, %v8085_v16  ;;  %v3259_v61 = vadd.f32 %v5070_v4, %v7300_v2  ;;  %v3324_v7 = vsel %vm471_vm0, %v7318_v56, 0.0  ;;  %v8103_v16 = vld [vmem:[#allocation21_spill] sm:$0xff] }
 0xe39   : > { %v3250_v55 = vpop.f32.mrf.mxu1 }
 0xe3a   : > { %v3251_v59 = vadd.f32 %v7300_v2, %v3250_v55  ;;  %v3318_v13 = vsel %vm471_vm0, %v7315_v48, 0.0  ;;  %v7337_v18 = vadd.f32 %v3259_v61, %v8089_v8 }
 0xe3b   : > { %3319 = vadd.xlane.f32.xlu1 %v3318_v13  ;;  %3322 = vadd.xlane.f32.xlu0 %v3321_v14  ;;  %v5071_v32 = vpop.f32.mrf.mxu1 }
 0xe3c   : > { %v7327_v5 = vadd.f32 %v3251_v59, %v8087_v10  ;;  %v3262_v53 = vadd.f32 %v5071_v32, %v7300_v2  ;;  %v3333_v57 = vsel %vm471_vm0, %v7337_v18, 0.0 }
 0xe3d   : > { %v3253_v30 = vpop.f32.mrf.mxu1 }
 0xe3e   : > { %v3254_v26 = vadd.f32 %v7300_v2, %v3253_v30  ;;  %v7340_v49 = vadd.f32 %v3262_v53, %v8090_v21  ;;  %v3327_v44 = vsel %vm471_vm0, %v7327_v5, 0.0 }
 0xe3f   : > { %3325 = vadd.xlane.f32.xlu0 %v3324_v7 }
 0xe40   : > { %v5074_v12 = vpop.f32.mrf.mxu1  ;;  %v7334_v40 = vadd.f32 %v3254_v26, %v8088_v11  ;;  %v3336_v19 = vsel %vm471_vm0, %v7340_v49, 0.0 }
 0xe41   : > { %v3275_v23 = vadd.f32 %v5074_v12, %v7300_v2 }
 0xe42   : > { %v3266_v15 = vpop.f32.mrf.mxu1  ;;  %v3330_v58 = vsel %vm471_vm0, %v7334_v40, 0.0 }
 0xe43   : > { %v3267_v20 = vadd.f32 %v7300_v2, %v3266_v15  ;;  %3331 = vadd.xlane.f32.xlu1 %v3330_v58  ;;  %3328 = vadd.xlane.f32.xlu0 %v3327_v44  ;;  %v7361_v51 = vadd.f32 %v3275_v23, %v8094_v24 }
 0xe44   : > { %v5075_v46 = vpop.f32.mrf.mxu1 }
 0xe45   : > { %v7351_v42 = vadd.f32 %v3267_v20, %v8091_v28  ;;  %v3278_v52 = vadd.f32 %v5075_v46, %v7300_v2  ;;  %v3345_v60 = vsel %vm471_vm0, %v7361_v51, 0.0 }
 0xe46   : > { %v3269_v35 = vpop.f32.mrf.mxu1 }
 0xe47   : > { %v3270_v37 = vadd.f32 %v7300_v2, %v3269_v35  ;;  %3337 = vadd.xlane.f32.xlu1 %v3336_v19  ;;  %3334 = vadd.xlane.f32.xlu0 %v3333_v57  ;;  %v7364_v1 = vadd.f32 %v3278_v52, %v8095_v36  ;;  %v3339_v41 = vsel %vm471_vm0, %v7351_v42, 0.0 }
 0xe49   : > { %v7358_v47 = vadd.f32 %v3270_v37, %v8092_v0  ;;  %8096 = vst [vmem:[#allocation8_spill] sm:$0xff] %v7364_v1  ;;  %v3348_v43 = vsel %vm471_vm0, %v7364_v1, 0.0 }
 0xe4b   : > { %8093 = vst [vmem:[#allocation6_spill] sm:$0xff] %v7358_v47  ;;  %v3342_v29 = vsel %vm471_vm0, %v7358_v47, 0.0  ;;  %3340 = vadd.xlane.f32.xlu0 %v3339_v41 }
 0xe4c   : > { %3343 = vadd.xlane.f32.xlu1 %v3342_v29 }
 0xe4f   : > { %3346 = vadd.xlane.f32.xlu0 %v3345_v60 }
 0xe50   : > { %3349 = vadd.xlane.f32.xlu1 %v3348_v43 }
 0xe6f   : > { %v5078_v50 = vpop.f32.mrf.mxu1 }
 0xe70   : > { %v3291_v63 = vadd.f32 %v5078_v50, %v7300_v2 }
 0xe71   : > { %v3282_v22 = vpop.f32.mrf.mxu1 }
 0xe72   : > { %v3283_v17 = vadd.f32 %v7300_v2, %v3282_v22  ;;  %v7380_v9 = vadd.f32 %v3291_v63, %v8099_v62 }
 0xe73   : > { %v5079_v31 = vpop.f32.mrf.mxu1 }
 0xe74   : > { %v7377_v45 = vadd.f32 %v3283_v17, %v8097_v54  ;;  %8100 = vst [vmem:[#allocation9_spill] sm:$0xff] %v7380_v9  ;;  %v3294_v27 = vadd.f32 %v5079_v31, %v7300_v2  ;;  %v3357_v59 = vsel %vm471_vm0, %v7380_v9, 0.0 }
 0xe75   : > { %v3285_v34 = vpop.f32.mrf.mxu1 }
 0xe76   : > { %8098 = vst [vmem:[#allocation7_spill] sm:$0xff] %v7377_v45  ;;  %v3286_v33 = vadd.f32 %v7300_v2, %v3285_v34  ;;  %v3351_v38 = vsel %vm471_vm0, %v7377_v45, 0.0  ;;  %v7390_v55 = vadd.f32 %v3294_v27, %v8103_v16 }
 0xe77   : > { %3352 = vadd.xlane.f32.xlu0 %v3351_v38 }
 0xe78   : > { %v7387_v4 = vadd.f32 %v3286_v33, %v8101_v3  ;;  %8104 = vst [vmem:[#allocation11_spill] sm:$0xff] %v7390_v55  ;;  %v3360_v2 = vsel %vm471_vm0, %v7390_v55, 0.0 }
 0xe7a   : > { %8102 = vst [vmem:[#allocation10_spill] sm:$0xff] %v7387_v4  ;;  %v3354_v25 = vsel %vm471_vm0, %v7387_v4, 0.0 }
 0xe7b   : > { %3355 = vadd.xlane.f32.xlu1 %v3354_v25  ;;  %3358 = vadd.xlane.f32.xlu0 %v3357_v59 }
 0xe7f   : > { %3361 = vadd.xlane.f32.xlu1 %v3360_v2 }
 0xec0   : > { %v3317_v13 = vpop.xlane.xlu0 %3316 }
 0xec1   : > { %v3363_v14 = vmul.f32 0.03125, %v3317_v13 }
 0xec3   : > { %v7399_v32 = vsub.f32 %v7305_v39, %v3363_v14 }
 0xec4   : > { %v3323_v61 = vpop.xlane.xlu0 %3322  ;;  %v3320_v30 = vpop.xlane.xlu1 %3319 }
 0xec5   : > { %v3365_v10 = vmul.f32 0.03125, %v3323_v61  ;;  %v3364_v53 = vmul.f32 0.03125, %v3320_v30  ;;  %v3395_v26 = vmul.f32 %v7399_v32, %v7399_v32 }
 0xec7   : > { %v7404_v7 = vsub.f32 %v7308_v6, %v3365_v10  ;;  %v7407_v12 = vsub.f32 %v7315_v48, %v3364_v53  ;;  %v3411_v11 = vsel %vm471_vm0, %v3395_v26, 0.0 }
 0xec8   : > { %v3326_v8 = vpop.xlane.xlu0 %3325  ;;  %3412 = vadd.xlane.f32.xlu0 %v3411_v11 }
 0xec9   : > { %v3366_v15 = vmul.f32 0.03125, %v3326_v8  ;;  %v3397_v21 = vmul.f32 %v7404_v7, %v7404_v7  ;;  %v3396_v20 = vmul.f32 %v7407_v12, %v7407_v12 }
 0xecb   : > { %v7415_v58 = vsub.f32 %v7318_v56, %v3366_v15  ;;  %v3417_v44 = vsel %vm471_vm0, %v3397_v21, 0.0  ;;  %v3414_v46 = vsel %vm471_vm0, %v3396_v20, 0.0 }
 0xecc   : > { %v3329_v23 = vpop.xlane.xlu0 %3328  ;;  %3418 = vadd.xlane.f32.xlu0 %v3417_v44  ;;  %3415 = vadd.xlane.f32.xlu1 %v3414_v46  ;;  %v3332_v35 = vpop.xlane.xlu1 %3331  ;;  %v5240_v44 = vld [vmem:[%s8026_s8 + $0x8] sm:$0xff]   ;;  %v5241_v46 = vld [vmem:[%s8026_s8] sm:$0xff]  }
 0xecd   : > { %v3367_v57 = vmul.f32 0.03125, %v3329_v23  ;;  %v3368_v28 = vmul.f32 0.03125, %v3332_v35  ;;  %v3398_v52 = vmul.f32 %v7415_v58, %v7415_v58  ;;  %5080 = vmatprep.subr.bf16.mxu0 %v5240_v44 }
 0xece   : > { %5081 = vmatpush3.bf16.msra.mxu0 %v5240_v44 }
 0xecf   : > { %v7422_v37 = vsub.f32 %v7327_v5, %v3367_v57  ;;  %v7425_v19 = vsub.f32 %v7334_v40, %v3368_v28  ;;  %v3420_v0 = vsel %vm471_vm0, %v3398_v52, 0.0  ;;  %5082 = vmatprep.subr.bf16.mxu0 %v5241_v46 }
 0xed0   : > { %v3335_v24 = vpop.xlane.xlu0 %3334  ;;  %3421 = vadd.xlane.f32.xlu1 %v3420_v0  ;;  %v3338_v36 = vpop.xlane.xlu1 %3337 }
 0xed1   : > { %v3369_v29 = vmul.f32 0.03125, %v3335_v24  ;;  %v3370_v41 = vmul.f32 0.03125, %v3338_v36  ;;  %v3399_v43 = vmul.f32 %v7422_v37, %v7422_v37  ;;  %v3400_v60 = vmul.f32 %v7425_v19, %v7425_v19 }
 0xed2   : > { %5083 = vmatpush3.bf16.msra.mxu0 %v5241_v46 }
 0xed3   : > { %v7433_v50 = vsub.f32 %v7337_v18, %v3369_v29  ;;  %v7436_v22 = vsub.f32 %v7340_v49, %v3370_v41  ;;  %v3423_v63 = vsel %vm471_vm0, %v3399_v43, 0.0  ;;  %v3426_v17 = vsel %vm471_vm0, %v3400_v60, 0.0 }
 0xed4   : > { %v3341_v31 = vpop.xlane.xlu0 %3340  ;;  %3424 = vadd.xlane.f32.xlu0 %v3423_v63  ;;  %3427 = vadd.xlane.f32.xlu1 %v3426_v17 }
 0xed5   : > { %v3344_v54 = vpop.xlane.xlu1 %3343  ;;  %v3371_v34 = vmul.f32 0.03125, %v3341_v31  ;;  %v3401_v27 = vmul.f32 %v7433_v50, %v7433_v50  ;;  %v3402_v33 = vmul.f32 %v7436_v22, %v7436_v22 }
 0xed6   : > { %v3372_v62 = vmul.f32 0.03125, %v3344_v54 }
 0xed7   : > { %v7445_v38 = vsub.f32 %v7351_v42, %v3371_v34  ;;  %v3429_v16 = vsel %vm471_vm0, %v3401_v27, 0.0  ;;  %v3432_v25 = vsel %vm471_vm0, %v3402_v33, 0.0 }
 0xed8   : > { %v7448_v3 = vsub.f32 %v7358_v47, %v3372_v62  ;;  %v3347_v59 = vpop.xlane.xlu0 %3346  ;;  %3430 = vadd.xlane.f32.xlu0 %v3429_v16  ;;  %3433 = vadd.xlane.f32.xlu1 %v3432_v25 }
 0xed9   : > { %v3350_v2 = vpop.xlane.xlu1 %3349  ;;  %v3373_v13 = vmul.f32 0.03125, %v3347_v59  ;;  %v3403_v61 = vmul.f32 %v7445_v38, %v7445_v38 }
 0xeda   : > { %v3374_v14 = vmul.f32 0.03125, %v3350_v2  ;;  %v3404_v30 = vmul.f32 %v7448_v3, %v7448_v3 }
 0xedb   : > { %v7457_v10 = vsub.f32 %v7361_v51, %v3373_v13  ;;  %v3435_v26 = vsel %vm471_vm0, %v3403_v61, 0.0 }
 0xedc   : > { %v7460_v53 = vsub.f32 %v7364_v1, %v3374_v14  ;;  %v3438_v11 = vsel %vm471_vm0, %v3404_v30, 0.0  ;;  %3436 = vadd.xlane.f32.xlu0 %v3435_v26 }
 0xedd   : > { %3439 = vadd.xlane.f32.xlu1 %v3438_v11  ;;  %v3405_v8 = vmul.f32 %v7457_v10, %v7457_v10 }
 0xede   : > { %v3406_v15 = vmul.f32 %v7460_v53, %v7460_v53 }
 0xedf   : > { %v3441_v21 = vsel %vm471_vm0, %v3405_v8, 0.0 }
 0xee0   : > { %v3444_v20 = vsel %vm471_vm0, %v3406_v15, 0.0  ;;  %3442 = vadd.xlane.f32.xlu0 %v3441_v21 }
 0xee1   : > { %3445 = vadd.xlane.f32.xlu1 %v3444_v20 }
 0xf00   : > { %v3353_v23 = vpop.xlane.xlu0 %3352 }
 0xf01   : > { %v3375_v35 = vmul.f32 0.03125, %v3353_v23 }
 0xf03   : > { %v7477_v57 = vsub.f32 %v7377_v45, %v3375_v35 }
 0xf04   : > { %v3359_v28 = vpop.xlane.xlu0 %3358  ;;  %v3356_v52 = vpop.xlane.xlu1 %3355 }
 0xf05   : > { %v3377_v0 = vmul.f32 0.03125, %v3359_v28  ;;  %v3376_v24 = vmul.f32 0.03125, %v3356_v52  ;;  %v3407_v36 = vmul.f32 %v7477_v57, %v7477_v57 }
 0xf07   : > { %v7482_v29 = vsub.f32 %v7380_v9, %v3377_v0  ;;  %v7485_v41 = vsub.f32 %v7387_v4, %v3376_v24  ;;  %v3447_v43 = vsel %vm471_vm0, %v3407_v36, 0.0 }
 0xf08   : > { %3448 = vadd.xlane.f32.xlu0 %v3447_v43  ;;  %v3362_v60 = vpop.xlane.xlu1 %3361 }
 0xf09   : > { %v3378_v63 = vmul.f32 0.03125, %v3362_v60  ;;  %v3409_v17 = vmul.f32 %v7482_v29, %v7482_v29  ;;  %v3408_v31 = vmul.f32 %v7485_v41, %v7485_v41 }
 0xf0b   : > { %v7493_v54 = vsub.f32 %v7390_v55, %v3378_v63  ;;  %v3453_v34 = vsel %vm471_vm0, %v3409_v17, 0.0  ;;  %v3450_v62 = vsel %vm471_vm0, %v3408_v31, 0.0 }
 0xf0c   : > { %3454 = vadd.xlane.f32.xlu0 %v3453_v34  ;;  %3451 = vadd.xlane.f32.xlu1 %v3450_v62 }
 0xf0d   : > { %v3410_v27 = vmul.f32 %v7493_v54, %v7493_v54 }
 0xf0f   : > { %v3456_v33 = vsel %vm471_vm0, %v3410_v27, 0.0  ;;  %v7504_v27 = vld [vmem:[%s8024_s6] ss:$0 sm:$0xff] }
 0xf10   : > { %3457 = vadd.xlane.f32.xlu1 %v3456_v33 }
 0xf51   : > { %v3413_v16 = vpop.xlane.xlu0 %3412 }
 0xf52   : > { %v3459_v25 = vmul.f32 0.03125, %v3413_v16 }
 0xf54   : > { %v3475_v59 = vadd.f32 1e-05, %v3459_v25 }
 0xf55   : > { %v3419_v2 = vpop.xlane.xlu0 %3418  ;;  %v3416_v13 = vpop.xlane.xlu1 %3415 }
 0xf56   : > { %5538 = vrsqrt.f32 %v3475_v59  ;;  %v3461_v14 = vmul.f32 0.03125, %v3419_v2  ;;  %v3460_v61 = vmul.f32 0.03125, %v3416_v13 }
 0xf58   : > { %v3477_v30 = vadd.f32 1e-05, %v3461_v14  ;;  %v3476_v26 = vadd.f32 1e-05, %v3460_v61 }
 0xf59   : > { %v3422_v11 = vpop.xlane.xlu1 %3421 }
 0xf5a   : > { %5540 = vrsqrt.f32 %v3477_v30  ;;  %v3462_v8 = vmul.f32 0.03125, %v3422_v11  ;;  %v7512_v11 = vld [vmem:[%s8025_s7] ss:$0 sm:$0xff] }
 0xf5b   : > { %5542 = vrsqrt.f32 %v3476_v26 }
 0xf5c   : > { %v3478_v15 = vadd.f32 1e-05, %v3462_v8 }
 0xf5d   : > { %v3425_v21 = vpop.xlane.xlu0 %3424  ;;  %v3428_v20 = vpop.xlane.xlu1 %3427 }
 0xf5e   : > { %5544 = vrsqrt.f32 %v3478_v15  ;;  %v3463_v44 = vmul.f32 0.03125, %v3425_v21  ;;  %v3464_v46 = vmul.f32 0.03125, %v3428_v20 }
 0xf60   : > { %v3479_v23 = vadd.f32 1e-05, %v3463_v44  ;;  %v3480_v35 = vadd.f32 1e-05, %v3464_v46 }
 0xf61   : > { %v3431_v28 = vpop.xlane.xlu0 %3430  ;;  %v3434_v52 = vpop.xlane.xlu1 %3433 }
 0xf62   : > { %5546 = vrsqrt.f32 %v3479_v23  ;;  %v3465_v0 = vmul.f32 0.03125, %v3431_v28  ;;  %v3466_v24 = vmul.f32 0.03125, %v3434_v52 }
 0xf63   : > { %v5539_v36 = vpop.eup %5538  ;;  %5548 = vrsqrt.f32 %v3480_v35 }
 0xf64   : > { %v3481_v43 = vadd.f32 1e-05, %v3465_v0  ;;  %v3482_v60 = vadd.f32 1e-05, %v3466_v24  ;;  %v3507_v31 = vmul.f32 %v5539_v36, %v7399_v32 }
 0xf65   : > { %v3437_v63 = vpop.xlane.xlu0 %3436 }
 0xf66   : > { %v3440_v17 = vpop.xlane.xlu1 %3439  ;;  %5550 = vrsqrt.f32 %v3481_v43  ;;  %v3467_v34 = vmul.f32 0.03125, %v3437_v63  ;;  %v3529_v32 = vmul.f32 %v7504_v27, %v3507_v31 }
 0xf67   : > { %v3468_v62 = vmul.f32 0.03125, %v3440_v17  ;;  %v5541_v33 = vpop.eup %5540  ;;  %5552 = vrsqrt.f32 %v3482_v60 }
 0xf68   : > { %v5543_v16 = vpop.eup %5542  ;;  %v3509_v25 = vmul.f32 %v5541_v33, %v7404_v7  ;;  %v3483_v59 = vadd.f32 1e-05, %v3467_v34  ;;  %v3551_v44 = vadd.f32 %v7512_v11, %v3529_v32 }
 0xf69   : > { %v3484_v2 = vadd.f32 1e-05, %v3468_v62  ;;  %v3443_v13 = vpop.xlane.xlu0 %3442  ;;  %v3508_v61 = vmul.f32 %v5543_v16, %v7407_v12 }
 0xf6a   : > { %v3446_v14 = vpop.xlane.xlu1 %3445  ;;  %5554 = vrsqrt.f32 %v3483_v59  ;;  %v3469_v30 = vmul.f32 0.03125, %v3443_v13  ;;  %v3531_v12 = vmul.f32 %v7504_v27, %v3509_v25 }
 0xf6b   : > { %v3470_v26 = vmul.f32 0.03125, %v3446_v14  ;;  %v5545_v8 = vpop.eup %5544  ;;  %5556 = vrsqrt.f32 %v3484_v2  ;;  %v3530_v7 = vmul.f32 %v7504_v27, %v3508_v61 }
 0xf6c   : > { %v3510_v15 = vmul.f32 %v5545_v8, %v7415_v58  ;;  %v3485_v21 = vadd.f32 1e-05, %v3469_v30  ;;  %v3553_v0 = vadd.f32 %v7512_v11, %v3531_v12 }
 0xf6d   : > { %v3486_v20 = vadd.f32 1e-05, %v3470_v26  ;;  %v3552_v46 = vadd.f32 %v7512_v11, %v3530_v7 }
 0xf6e   : > { %5558 = vrsqrt.f32 %v3485_v21  ;;  %v3532_v23 = vmul.f32 %v7504_v27, %v3510_v15 }
 0xf6f   : > { %v5547_v35 = vpop.eup %5546  ;;  %5560 = vrsqrt.f32 %v3486_v20  ;;  %v3567_v28 = vpack.c.bf16 %v3552_v46, %v3551_v44 }
 0xf70   : > { %v5549_v52 = vpop.eup %5548  ;;  %v3554_v24 = vadd.f32 %v7512_v11, %v3532_v23  ;;  %v3511_v58 = vmul.f32 %v5547_v35, %v7422_v37 }
 0xf71   : > { %5084 = vmatprep.mubr.msk.bf16.mxu0 %vm471_vm0, %v3567_v28  ;;  %v3512_v36 = vmul.f32 %v5549_v52, %v7425_v19 }
 0xf72   : > { %v3568_v43 = vpack.c.bf16 %v3554_v24, %v3553_v0  ;;  %v3533_v60 = vmul.f32 %v7504_v27, %v3511_v58 }
 0xf73   : > { %v5551_v63 = vpop.eup %5550  ;;  %v3534_v17 = vmul.f32 %v7504_v27, %v3512_v36 }
 0xf74   : > { %v5553_v31 = vpop.eup %5552  ;;  %5085 = vmatmul.mubr.msk.bf16.vlgmr.msra.gmra.mxu0 %vm471_vm0, %v3568_v43  ;;  %v3555_v34 = vadd.f32 %v7512_v11, %v3533_v60  ;;  %v3513_v62 = vmul.f32 %v5551_v63, %v7433_v50 }
 0xf75   : > { %v3556_v33 = vadd.f32 %v7512_v11, %v3534_v17  ;;  %v3514_v37 = vmul.f32 %v5553_v31, %v7436_v22 }
 0xf76   : > { %v3535_v16 = vmul.f32 %v7504_v27, %v3513_v62 }
 0xf77   : > { %v5555_v19 = vpop.eup %5554  ;;  %v3569_v25 = vpack.c.bf16 %v3556_v33, %v3555_v34  ;;  %v3536_v59 = vmul.f32 %v7504_v27, %v3514_v37 }
 0xf78   : > { %v5557_v2 = vpop.eup %5556  ;;  %v3557_v13 = vadd.f32 %v7512_v11, %v3535_v16  ;;  %v3515_v14 = vmul.f32 %v5555_v19, %v7445_v38 }
 0xf79   : > { %5088 = vmatprep.mubr.msk.bf16.mxu0 %vm471_vm0, %v3569_v25  ;;  %v3558_v61 = vadd.f32 %v7512_v11, %v3536_v59  ;;  %v3516_v50 = vmul.f32 %v5557_v2, %v7448_v3 }
 0xf7a   : > { %v3537_v32 = vmul.f32 %v7504_v27, %v3515_v14 }
 0xf7b   : > { %v5559_v22 = vpop.eup %5558  ;;  %v3570_v30 = vpack.c.bf16 %v3558_v61, %v3557_v13  ;;  %v3538_v26 = vmul.f32 %v7504_v27, %v3516_v50 }
 0xf7c   : > { %v5561_v8 = vpop.eup %5560  ;;  %v3559_v7 = vadd.f32 %v7512_v11, %v3537_v32  ;;  %v3517_v15 = vmul.f32 %v5559_v22, %v7457_v10  ;;  %v5245_v32 = vld [vmem:[%s8028_s10 + $0x20] sm:$0xff]   ;;  %v5246_v22 = vld [vmem:[%s8028_s10 + $0x18] sm:$0xff]  }
 0xf7d   : > { %5089 = vmatmul.mubr.msk.bf16.gmra.mxu0 %vm471_vm0, %v3570_v30  ;;  %v3560_v38 = vadd.f32 %v7512_v11, %v3538_v26  ;;  %v3518_v21 = vmul.f32 %v5561_v8, %v7460_v53  ;;  %v5247_v30 = vld [vmem:[%s8028_s10 + $0x10] sm:$0xff]   ;;  %v5248_v26 = vld [vmem:[%s8028_s10 + $0x8] sm:$0xff]   ;;  %v5249_v8 = vld [vmem:[%s8028_s10] sm:$0xff]  }
 0xf7e   : > { %v3539_v20 = vmul.f32 %v7504_v27, %v3517_v15 }
 0xf7f   : > { %v3571_v3 = vpack.c.bf16 %v3560_v38, %v3559_v7  ;;  %v3540_v12 = vmul.f32 %v7504_v27, %v3518_v21  ;;  %v7593_v7 = vld [vmem:[%s8027_s9] ss:$0 sm:$0xff] }
 0xf80   : > { %v3561_v44 = vadd.f32 %v7512_v11, %v3539_v20 }
 0xf81   : > { %5092 = vmatprep.mubr.msk.bf16.mxu0 %vm471_vm0, %v3571_v3  ;;  %v3562_v46 = vadd.f32 %v7512_v11, %v3540_v12 }
 0xf83   : > { %v3572_v23 = vpack.c.bf16 %v3562_v46, %v3561_v44 }
 0xf85   : > { %5093 = vmatmul.mubr.msk.bf16.gmra.mxu0 %vm471_vm0, %v3572_v23 }
 0xf91   : > { %v3449_v10 = vpop.xlane.xlu0 %3448 }
 0xf92   : > { %v3471_v35 = vmul.f32 0.03125, %v3449_v10 }
 0xf94   : > { %v3487_v28 = vadd.f32 1e-05, %v3471_v35 }
 0xf95   : > { %v3455_v52 = vpop.xlane.xlu0 %3454  ;;  %v3452_v0 = vpop.xlane.xlu1 %3451 }
 0xf96   : > { %5562 = vrsqrt.f32 %v3487_v28  ;;  %v3473_v53 = vmul.f32 0.03125, %v3455_v52  ;;  %v3472_v24 = vmul.f32 0.03125, %v3452_v0 }
 0xf98   : > { %v3489_v58 = vadd.f32 1e-05, %v3473_v53  ;;  %v3488_v36 = vadd.f32 1e-05, %v3472_v24 }
 0xf99   : > { %v3458_v43 = vpop.xlane.xlu1 %3457 }
 0xf9a   : > { %5564 = vrsqrt.f32 %v3489_v58  ;;  %v3474_v60 = vmul.f32 0.03125, %v3458_v43 }
 0xf9b   : > { %5566 = vrsqrt.f32 %v3488_v36 }
 0xf9c   : > { %v3490_v63 = vadd.f32 1e-05, %v3474_v60 }
 0xf9e   : > { %5568 = vrsqrt.f32 %v3490_v63 }
 0xfa3   : > { %v5563_v17 = vpop.eup %5562 }
 0xfa4   : > { %v3519_v31 = vmul.f32 %v5563_v17, %v7477_v57 }
 0xfa6   : > { %v3541_v16 = vmul.f32 %v7504_v27, %v3519_v31 }
 0xfa7   : > { %v5565_v34 = vpop.eup %5564 }
 0xfa8   : > { %v5567_v62 = vpop.eup %5566  ;;  %v3521_v33 = vmul.f32 %v5565_v34, %v7482_v29  ;;  %v3563_v13 = vadd.f32 %v7512_v11, %v3541_v16 }
 0xfa9   : > { %v3520_v37 = vmul.f32 %v5567_v62, %v7485_v41 }
 0xfaa   : > { %v3543_v2 = vmul.f32 %v7504_v27, %v3521_v33 }
 0xfab   : > { %v5569_v19 = vpop.eup %5568  ;;  %v3542_v25 = vmul.f32 %v7504_v27, %v3520_v37 }
 0xfac   : > { %v3522_v59 = vmul.f32 %v5569_v19, %v7493_v54  ;;  %v3565_v29 = vadd.f32 %v7512_v11, %v3543_v2  ;;  %v5242_v54 = vld [vmem:[%s8028_s10 + $0x38] sm:$0xff]  }
 0xfad   : > { %v3564_v14 = vadd.f32 %v7512_v11, %v3542_v25  ;;  %5100 = vmatprep.subr.bf16.mxu1 %v5242_v54 }
 0xfae   : > { %v3544_v57 = vmul.f32 %v7504_v27, %v3522_v59  ;;  %5101 = vmatpush3.bf16.msra.mxu1 %v5242_v54  ;;  %v5243_v27 = vld [vmem:[%s8028_s10 + $0x30] sm:$0xff]  }
 0xfaf   : > { %v3573_v61 = vpack.c.bf16 %v3564_v14, %v3563_v13  ;;  %5102 = vmatprep.subr.bf16.mxu1 %v5243_v27 }
 0xfb0   : > { %v3566_v41 = vadd.f32 %v7512_v11, %v3544_v57  ;;  %v5244_v11 = vld [vmem:[%s8028_s10 + $0x28] sm:$0xff]  }
 0xfb1   : > { %5096 = vmatprep.mubr.msk.bf16.mxu0 %vm471_vm0, %v3573_v61 }
 0xfb2   : > { %v3574_v50 = vpack.c.bf16 %v3566_v41, %v3565_v29  ;;  %5103 = vmatpush3.bf16.msra.mxu1 %v5243_v27 }
 0xfb3   : > { %5104 = vmatprep.subr.bf16.mxu1 %v5244_v11 }
 0xfb4   : > { %5097 = vmatmul.mubr.msk.bf16.gmra.mxu0 %vm471_vm0, %v3574_v50 }
 0xfb6   : > { %5105 = vmatpush3.bf16.msra.mxu1 %v5244_v11 }
 0xfb7   : > { %5106 = vmatprep.subr.bf16.mxu1 %v5245_v32 }
 0xfba   : > { %5107 = vmatpush3.bf16.msra.mxu1 %v5245_v32 }
 0xfbb   : > { %5108 = vmatprep.subr.bf16.mxu1 %v5246_v22 }
 0xfbe   : > { %5109 = vmatpush3.bf16.msra.mxu1 %v5246_v22 }
 0xfbf   : > { %5110 = vmatprep.subr.bf16.mxu1 %v5247_v30 }
 0xfc2   : > { %5111 = vmatpush3.bf16.msra.mxu1 %v5247_v30 }
 0xfc3   : > { %5112 = vmatprep.subr.bf16.mxu1 %v5248_v26 }
 0xfc6   : > { %5113 = vmatpush3.bf16.msra.mxu1 %v5248_v26 }
 0xfc7   : > { %5114 = vmatprep.subr.bf16.mxu1 %v5249_v8 }
 0xfca   : > { %5115 = vmatpush3.bf16.msra.mxu1 %v5249_v8 }
0x1034   : > { %v5086_v15 = vpop.f32.mrf.mxu0 }
0x1035   : > { %v3665_v38 = vadd.f32 %v5086_v15, %v7593_v7 }
0x1036   : > { %v3656_v21 = vpop.f32.mrf.mxu0 }
0x1037   : > { %v7596_v20 = vmul.f32 0.70710677, %v3665_v38  ;;  %v7599_v3 = vadd.f32 %v7593_v7, %v3656_v21 }
0x1038   : > { %v5087_v12 = vpop.f32.mrf.mxu0 }
0x1039   : > { %v3785_v44 = vand.u32 2147483647, %v7596_v20  ;;  %v7603_v46 = vmul.f32 0.70710677, %v7599_v3  ;;  %v7606_v23 = vadd.f32 %v5087_v12, %v7593_v7  ;;  %vm3753_vm6 = vcmp.lt.f32.partialorder %v7596_v20, 0.0 }
0x103a   : > { %v3659_v10 = vpop.f32.mrf.mxu0 }
0x103b   : > { %v3801_v35 = vmul.f32 0.3275911, %v3785_v44  ;;  %v3783_v28 = vand.u32 2147483647, %v7603_v46  ;;  %v7610_v52 = vmul.f32 0.70710677, %v7606_v23  ;;  %v7613_v0 = vadd.f32 %v7593_v7, %v3659_v10 }
0x103c   : > { %v4009_v19 = vsub.f32 0.0, %v3785_v44  ;;  %vm3751_vm7 = vcmp.lt.f32.partialorder %v7603_v46, 0.0 }
0x103d   : > { %v3817_v53 = vadd.f32 1.0, %v3801_v35  ;;  %v3799_v24 = vmul.f32 0.3275911, %v3783_v28  ;;  %v5090_v58 = vpop.f32.mrf.mxu0  ;;  %v3786_v36 = vand.u32 2147483647, %v7610_v52  ;;  %v4007_v50 = vsub.f32 0.0, %v3783_v28 }
0x103e   : > { %v7617_v43 = vmul.f32 0.70710677, %v7613_v0  ;;  %v7621_v62 = vadd.f32 %v5090_v58, %v7593_v7  ;;  %v4025_v61 = vmul.f32 %v4009_v19, %v3785_v44  ;;  %vm3754_vm8 = vcmp.lt.f32.partialorder %v7610_v52, 0.0 }
0x103f   : > { %5570 = vrcp.f32 %v3817_v53  ;;  %v3815_v60 = vadd.f32 1.0, %v3799_v24  ;;  %v3672_v63 = vpop.f32.mrf.mxu0  ;;  %v3802_v17 = vmul.f32 0.3275911, %v3786_v36  ;;  %v4010_v54 = vsub.f32 0.0, %v3786_v36 }
0x1040   : > { %v3784_v31 = vand.u32 2147483647, %v7617_v43  ;;  %v7624_v16 = vadd.f32 %v7593_v7, %v3672_v63  ;;  %v7627_v25 = vmul.f32 0.70710677, %v7621_v62  ;;  %v4043_v21 = vmul.f32 1.442695, %v4025_v61 }
0x1041   : > { %5572 = vrcp.f32 %v3815_v60  ;;  %v3818_v34 = vadd.f32 1.0, %v3802_v17  ;;  %v5091_v33 = vpop.f32.mrf.mxu0  ;;  %v4023_v10 = vmul.f32 %v4007_v50, %v3783_v28  ;;  %v4026_v35 = vmul.f32 %v4010_v54, %v3786_v36 }
0x1042   : > { %v3800_v37 = vmul.f32 0.3275911, %v3784_v31  ;;  %v7630_v2 = vmul.f32 0.70710677, %v7624_v16  ;;  %v3789_v13 = vand.u32 2147483647, %v7627_v25  ;;  %v7634_v14 = vadd.f32 %v5091_v33, %v7593_v7 }
0x1043   : > { %5574 = vrcp.f32 %v3818_v34  ;;  %v3675_v57 = vpop.f32.mrf.mxu0  ;;  %v4008_v30 = vsub.f32 0.0, %v3784_v31  ;;  %v7650_v24 = vmul.f32 0.5, %v3665_v38  ;;  %v4039_v38 = vmul.f32 1.442695, %v4023_v10 }
0x1044   : > { %v3816_v59 = vadd.f32 1.0, %v3800_v37  ;;  %v3805_v29 = vmul.f32 0.3275911, %v3789_v13  ;;  %v3787_v41 = vand.u32 2147483647, %v7630_v2  ;;  %v7641_v11 = vadd.f32 %v7593_v7, %v3675_v57 }
0x1045   : > { %v7638_v27 = vmul.f32 0.70710677, %v7634_v14  ;;  %v4024_v17 = vmul.f32 %v4008_v30, %v3784_v31  ;;  %v5094_v33 = vpop.f32.mrf.mxu0  ;;  %v4013_v19 = vsub.f32 0.0, %v3789_v13  ;;  %v4045_v36 = vmul.f32 1.442695, %v4026_v35 }
0x1046   : > { %5576 = vrcp.f32 %v3816_v59  ;;  %v3821_v32 = vadd.f32 1.0, %v3805_v29  ;;  %v3803_v22 = vmul.f32 0.3275911, %v3787_v41  ;;  %v7645_v8 = vmul.f32 0.70710677, %v7641_v11 }
0x1047   : > { %v3790_v26 = vand.u32 2147483647, %v7638_v27  ;;  %v7661_v31 = vadd.f32 %v5094_v33, %v7593_v7  ;;  %v7672_v33 = vmul.f32 0.5, %v7599_v3  ;;  %vm3752_vm9 = vcmp.lt.f32.partialorder %v7617_v43, 0.0 }
0x1048   : > { %5578 = vrcp.f32 %v3821_v32  ;;  %v3819_v12 = vadd.f32 1.0, %v3803_v22  ;;  %v3788_v58 = vand.u32 2147483647, %v7645_v8  ;;  %v4041_v32 = vmul.f32 1.442695, %v4024_v17 }
0x1049   : > { %v3806_v53 = vmul.f32 0.3275911, %v3790_v26  ;;  %v4011_v22 = vsub.f32 0.0, %v3787_v41  ;;  %v4014_v30 = vsub.f32 0.0, %v3790_v26  ;;  %vm3757_vm10 = vcmp.lt.f32.partialorder %v7627_v25, 0.0 }
0x104a   : > { %5580 = vrcp.f32 %v3819_v12  ;;  %v3804_v59 = vmul.f32 0.3275911, %v3788_v58  ;;  %v3722_v43 = vmul.f32 0.5, %v7606_v23  ;;  %vm3755_vm11 = vcmp.lt.f32.partialorder %v7630_v2, 0.0 }
0x104b   : > { %v3822_v34 = vadd.f32 1.0, %v3806_v53  ;;  %5582 = vpow2.f32 %v4043_v21  ;;  %v4029_v53 = vmul.f32 %v4013_v19, %v3789_v13  ;;  %v4030_v13 = vmul.f32 %v4014_v30, %v3790_v26 }
0x104c   : > { %v7647_v15 = vpop.eup %5570  ;;  %v3820_v50 = vadd.f32 1.0, %v3804_v59  ;;  %vm3756_vm12 = vcmp.lt.f32.partialorder %v7645_v8, 0.0  ;;  %vm3758_vm13 = vcmp.lt.f32.partialorder %v7638_v27, 0.0 }
0x104d   : > { %v3865_v44 = vmul.f32 1.0614054, %v7647_v15  ;;  %5584 = vrcp.f32 %v3822_v34  ;;  %v7669_v34 = vmul.f32 0.70710677, %v7661_v31 }
0x104e   : > { %v7653_v60 = vpop.eup %5572  ;;  %5586 = vrcp.f32 %v3820_v50 }
0x104f   : > { %v3881_v63 = vadd.f32 -1.4531521, %v3865_v44  ;;  %v3863_v37 = vmul.f32 1.0614054, %v7653_v60  ;;  %5588 = vpow2.f32 %v4039_v38  ;;  %v7677_v50 = vand.u32 2147483647, %v7669_v34 }
0x1050   : > { %v7656_v57 = vpop.eup %5574  ;;  %5590 = vpow2.f32 %v4045_v36  ;;  %vm3761_vm14 = vcmp.lt.f32.partialorder %v7669_v34, 0.0 }
0x1051   : > { %v3897_v28 = vmul.f32 %v7647_v15, %v3881_v63  ;;  %v3879_v61 = vadd.f32 -1.4531521, %v3863_v37  ;;  %v3866_v29 = vmul.f32 1.0614054, %v7656_v57  ;;  %v4012_v63 = vsub.f32 0.0, %v3788_v58 }
0x1052   : > { %5592 = vpow2.f32 %v4041_v32  ;;  %v3809_v26 = vmul.f32 0.3275911, %v7677_v50 }
0x1053   : > { %v3913_v54 = vadd.f32 1.4214138, %v3897_v28  ;;  %v7663_v21 = vpop.eup %5576  ;;  %v3895_v12 = vmul.f32 %v7653_v60, %v3879_v61  ;;  %v3882_v44 = vadd.f32 -1.4531521, %v3866_v29  ;;  %v4027_v28 = vmul.f32 %v4011_v22, %v3787_v41  ;;  %v3688_v22 = vpop.f32.mrf.mxu0 }
0x1054   : > { %v3864_v35 = vmul.f32 1.0614054, %v7663_v21  ;;  %v4028_v38 = vmul.f32 %v4012_v63, %v3788_v58  ;;  %v3825_v55 = vadd.f32 1.0, %v3809_v26 }
0x1055   : > { %v3929_v10 = vmul.f32 %v7647_v15, %v3913_v54  ;;  %v3911_v17 = vadd.f32 1.4214138, %v3895_v12  ;;  %v3898_v37 = vmul.f32 %v7656_v57, %v3882_v44  ;;  %v7679_v54 = vpop.eup %5578  ;;  %v4051_v12 = vmul.f32 1.442695, %v4029_v53 }
0x1056   : > { %v3880_v59 = vadd.f32 -1.4531521, %v3864_v35  ;;  %v3869_v41 = vmul.f32 1.0614054, %v7679_v54  ;;  %v4047_v44 = vmul.f32 1.442695, %v4027_v28 }
0x1057   : > { %v3945_v19 = vadd.f32 -0.28449672, %v3929_v10  ;;  %v3927_v61 = vmul.f32 %v7653_v60, %v3911_v17  ;;  %v3914_v29 = vadd.f32 1.4214138, %v3898_v37  ;;  %v4053_v10 = vmul.f32 1.442695, %v4030_v13  ;;  %v7685_v35 = vpop.eup %5580 }
0x1058   : > { %v3896_v3 = vmul.f32 %v7663_v21, %v3880_v59  ;;  %v3885_v53 = vadd.f32 -1.4531521, %v3869_v41  ;;  %v5583_v58 = vpop.eup %5582  ;;  %v3867_v59 = vmul.f32 1.0614054, %v7685_v35  ;;  %5594 = vpow2.f32 %v4051_v12 }
0x1059   : > { %v3943_v4 = vadd.f32 -0.28449672, %v3927_v61  ;;  %v3930_v36 = vmul.f32 %v7656_v57, %v3914_v29  ;;  %v3961_v17 = vmul.f32 %v7647_v15, %v3945_v19  ;;  %v4049_v61 = vmul.f32 1.442695, %v4028_v38 }
0x105a   : > { %v3912_v30 = vadd.f32 1.4214138, %v3896_v3  ;;  %v7692_v29 = vadd.f32 %v7593_v7, %v3688_v22  ;;  %v7694_v3 = vpop.eup %5584  ;;  %v3901_v19 = vmul.f32 %v7679_v54, %v3885_v53  ;;  %5596 = vpow2.f32 %v4047_v44 }
0x105b   : > { %v3959_v37 = vmul.f32 %v7653_v60, %v3943_v4  ;;  %v3946_v32 = vadd.f32 -0.28449672, %v3930_v36  ;;  %v3883_v36 = vadd.f32 -1.4531521, %v3867_v59  ;;  %v3870_v41 = vmul.f32 1.0614054, %v7694_v3  ;;  %v7700_v22 = vpop.eup %5586 }
0x105c   : > { %v3928_v63 = vmul.f32 %v7663_v21, %v3912_v30  ;;  %v3977_v30 = vadd.f32 0.2548296, %v3961_v17  ;;  %v3917_v45 = vadd.f32 1.4214138, %v3901_v19  ;;  %v7705_v26 = vmul.f32 0.70710677, %v7692_v29  ;;  %v5589_v17 = vpop.eup %5588 }
0x105d   : > { %v3975_v28 = vadd.f32 0.2548296, %v3959_v37  ;;  %v3962_v13 = vmul.f32 %v7656_v57, %v3946_v32  ;;  %v3899_v32 = vmul.f32 %v7685_v35, %v3883_v36  ;;  %v3886_v9 = vadd.f32 -1.4531521, %v3870_v41 }
0x105e   : > { %v3944_v4 = vadd.f32 -0.28449672, %v3928_v63  ;;  %v3933_v12 = vmul.f32 %v7679_v54, %v3917_v45  ;;  %v3868_v63 = vmul.f32 1.0614054, %v7700_v22  ;;  %5598 = vrcp.f32 %v3825_v55 }
0x105f   : > { %v3978_v38 = vadd.f32 0.2548296, %v3962_v13  ;;  %v3991_v44 = vmul.f32 %v7653_v60, %v3975_v28  ;;  %v3915_v13 = vadd.f32 1.4214138, %v3899_v32  ;;  %v3902_v19 = vmul.f32 %v7694_v3, %v3886_v9 }
0x1060   : > { %v3960_v37 = vmul.f32 %v7663_v21, %v3944_v4  ;;  %v5591_v4 = vpop.eup %5590  ;;  %v3993_v36 = vmul.f32 %v7647_v15, %v3977_v30  ;;  %5600 = vpow2.f32 %v4053_v10  ;;  %v3884_v41 = vadd.f32 -1.4531521, %v3868_v63 }
0x1061   : > { %v3994_v53 = vmul.f32 %v7656_v57, %v3978_v38  ;;  %v3949_v45 = vadd.f32 -0.28449672, %v3933_v12  ;;  %v3931_v38 = vmul.f32 %v7685_v35, %v3915_v13  ;;  %v3918_v55 = vadd.f32 1.4214138, %v3902_v19  ;;  %v5593_v47 = vpop.eup %5592 }
0x1062   : > { %v3976_v59 = vadd.f32 0.2548296, %v3960_v37  ;;  %v3900_v60 = vmul.f32 %v7700_v22, %v3884_v41  ;;  %5602 = vpow2.f32 %v4049_v61  ;;  %v7718_v9 = vand.u32 2147483647, %v7705_v26 }
0x1063   : > { %v4074_v1 = vmul.f32 %v5591_v4, %v3994_v53  ;;  %v4071_v28 = vmul.f32 %v5589_v17, %v3991_v44  ;;  %v3947_v30 = vadd.f32 -0.28449672, %v3931_v38  ;;  %v3934_v10 = vmul.f32 %v7694_v3, %v3918_v55 }
0x1064   : > { %v3992_v57 = vmul.f32 %v7663_v21, %v3976_v59  ;;  %v4073_v37 = vmul.f32 %v5583_v58, %v3993_v36  ;;  %v3916_v21 = vadd.f32 1.4214138, %v3900_v60  ;;  %v3965_v53 = vmul.f32 %v7679_v54, %v3949_v45 }
0x1065   : > { %v3963_v12 = vmul.f32 %v7685_v35, %v3947_v30  ;;  %v3950_v61 = vadd.f32 -0.28449672, %v3934_v10  ;;  %v5711_v63 = vmov 1.0   ;;  %v4090_v17 = vsub.f32 1.0, %v4074_v1  ;;  %v5595_v36 = vpop.eup %5594 }
0x1066   : > { %v4072_v15 = vmul.f32 %v5593_v47, %v3992_v57  ;;  %v3769_v47 = vsel %vm3753_vm6, -1.0, %v5711_v63  ;;  %v3767_v58 = vsel %vm3751_vm7, -1.0, %v5711_v63  ;;  %v3932_v44 = vmul.f32 %v7700_v22, %v3916_v21 }
0x1067   : > { %v4087_v59 = vsub.f32 1.0, %v4071_v28  ;;  %v3979_v13 = vadd.f32 0.2548296, %v3963_v12  ;;  %v3966_v19 = vmul.f32 %v7694_v3, %v3950_v61  ;;  %v3807_v4 = vmul.f32 0.3275911, %v7718_v9  ;;  %v5597_v1 = vpop.eup %5596  ;;  %v5095_v28 = vpop.f32.mrf.mxu0 }
0x1068   : > { %v4088_v32 = vsub.f32 1.0, %v4072_v15  ;;  %v4089_v41 = vsub.f32 1.0, %v4073_v37  ;;  %v3770_v20 = vsel %vm3754_vm8, -1.0, %v5711_v63  ;;  %v3768_v46 = vsel %vm3752_vm9, -1.0, %v5711_v63 }
0x1069   : > { %v3948_v57 = vadd.f32 -0.28449672, %v3932_v44  ;;  %v3981_v38 = vadd.f32 0.2548296, %v3965_v53  ;;  %v3982_v55 = vadd.f32 0.2548296, %v3966_v19  ;;  %v4106_v15 = vmul.f32 %v4090_v17, %v3770_v20  ;;  %v3691_v23 = vpop.f32.mrf.mxu0 }
0x106a   : > { %v4104_v45 = vmul.f32 %v4088_v32, %v3768_v46  ;;  %v3823_v60 = vadd.f32 1.0, %v3807_v4  ;;  %v3995_v30 = vmul.f32 %v7685_v35, %v3979_v13  ;;  %v4103_v37 = vmul.f32 %v4087_v59, %v3767_v58 }
0x106b   : > { %v3964_v10 = vmul.f32 %v7700_v22, %v3948_v57  ;;  %v7743_v52 = vpop.eup %5598  ;;  %v3720_v21 = vmul.f32 0.5, %v7613_v0  ;;  %v4105_v32 = vmul.f32 %v4089_v41, %v3769_v47  ;;  %v7748_v53 = vmul.f32 0.5, %v7624_v16 }
0x106c   : > { %5604 = vrcp.f32 %v3823_v60  ;;  %v3998_v12 = vmul.f32 %v7694_v3, %v3982_v55  ;;  %v4120_v17 = vadd.f32 1.0, %v4104_v45  ;;  %v3773_v35 = vsel %vm3757_vm10, -1.0, %v5711_v63 }
0x106d   : > { %v3980_v61 = vadd.f32 0.2548296, %v3964_v10  ;;  %v5601_v25 = vpop.eup %5600  ;;  %v3997_v44 = vmul.f32 %v7679_v54, %v3981_v38  ;;  %v7754_v58 = vadd.f32 %v5095_v28, %v7593_v7  ;;  %v4122_v59 = vadd.f32 1.0, %v4106_v15 }
0x106e   : > { %v4075_v0 = vmul.f32 %v5597_v1, %v3995_v30  ;;  %v3873_v16 = vmul.f32 1.0614054, %v7743_v52  ;;  %v4119_v19 = vadd.f32 1.0, %v4103_v37  ;;  %v4121_v54 = vadd.f32 1.0, %v4105_v32 }
0x106f   : > { %v3996_v47 = vmul.f32 %v7700_v22, %v3980_v61  ;;  %v5603_v13 = vpop.eup %5602  ;;  %v7761_v3 = vmul.f32 0.70710677, %v7754_v58  ;;  %v4078_v4 = vmul.f32 %v5601_v25, %v3998_v12  ;;  %v7764_v20 = vadd.f32 %v7593_v7, %v3691_v23 }
0x1070   : > { %v4136_v57 = vmul.f32 %v4120_v17, %v3720_v21  ;;  %v4077_v22 = vmul.f32 %v5595_v36, %v3997_v44  ;;  %v4138_v45 = vmul.f32 %v4122_v59, %v3722_v43  ;;  %v4091_v38 = vsub.f32 1.0, %v4075_v0 }
0x1071   : > { %v4076_v41 = vmul.f32 %v5603_v13, %v3996_v47  ;;  %v3794_v1 = vand.u32 2147483647, %v7761_v3  ;;  %v3889_v60 = vadd.f32 -1.4531521, %v3873_v16  ;;  %v4135_v28 = vmul.f32 %v4119_v19, %v7672_v33 }
0x1072   : > { %v3772_v15 = vsel %vm3756_vm12, -1.0, %v5711_v63  ;;  %v4017_v30 = vsub.f32 0.0, %v7677_v50  ;;  %v4137_v37 = vmul.f32 %v4121_v54, %v7650_v24  ;;  %v4094_v36 = vsub.f32 1.0, %v4078_v4 }
0x1073   : > { %v4092_v55 = vsub.f32 1.0, %v4076_v41  ;;  %v3810_v10 = vmul.f32 0.3275911, %v3794_v1  ;;  %v7775_v32 = vmul.f32 0.70710677, %v7764_v20  ;;  %v4093_v12 = vsub.f32 1.0, %v4077_v22 }
0x1074   : > { %v5098_v46 = vpop.f32.mrf.mxu0  ;;  %v3771_v33 = vsel %vm3755_vm11, -1.0, %v5711_v63  ;;  %v4151_v25 = vpack.c.bf16 %v4136_v57, %v4135_v28  ;;  %v4152_v8 = vpack.c.bf16 %v4138_v45, %v4137_v37  ;;  %v3905_v44 = vmul.f32 %v7743_v52, %v3889_v60 }
0x1075   : > { %v4108_v21 = vmul.f32 %v4092_v55, %v3772_v15  ;;  %v3826_v61 = vadd.f32 1.0, %v3810_v10  ;;  %v4107_v17 = vmul.f32 %v4091_v38, %v3771_v33  ;;  %v7782_v23 = vand.u32 2147483647, %v7775_v32 }
0x1076   : > { %v3704_v43 = vpop.f32.mrf.mxu0  ;;  %v3774_v24 = vsel %vm3758_vm13, -1.0, %v5711_v63  ;;  %v3724_v59 = vmul.f32 0.5, %v7641_v11  ;;  %5116 = vmatprep.mubr.bf16.mxu1 %v4151_v25  ;;  %v7789_v2 = vadd.f32 %v5098_v46, %v7593_v7  ;;  %v4033_v13 = vmul.f32 %v4017_v30, %v7677_v50 }
0x1077   : > { %5606 = vrcp.f32 %v3826_v61  ;;  %v4110_v47 = vmul.f32 %v4094_v36, %v3774_v24  ;;  %v4124_v16 = vadd.f32 1.0, %v4108_v21  ;;  %v3808_v19 = vmul.f32 0.3275911, %v7782_v23  ;;  %5117 = vmatmul.mubr.bf16.vlgmr.msra.gmra.mxu1 %v4152_v8 }
0x1078   : > { %v5099_v54 = vpop.f32.mrf.mxu0  ;;  %v4109_v4 = vmul.f32 %v4093_v12, %v3773_v35  ;;  %v4015_v11 = vsub.f32 0.0, %v7718_v9  ;;  %v7798_v41 = vmul.f32 0.70710677, %v7789_v2  ;;  %v4123_v46 = vadd.f32 1.0, %v4107_v17 }
0x1079   : > { %v7791_v0 = vpop.eup %5604  ;;  %v3921_v57 = vadd.f32 1.4214138, %v3905_v44  ;;  %v3824_v22 = vadd.f32 1.0, %v3808_v19  ;;  %v7801_v45 = vadd.f32 %v7593_v7, %v3704_v43  ;;  %v4018_v50 = vsub.f32 0.0, %v3794_v1 }
0x107a   : > { %v3871_v27 = vmul.f32 1.0614054, %v7791_v0  ;;  %v7804_v55 = vand.u32 2147483647, %v7798_v41  ;;  %v7807_v35 = vadd.f32 %v5099_v54, %v7593_v7  ;;  %v3726_v60 = vmul.f32 0.5, %v7634_v14 }
0x107b   : > { %v4126_v28 = vadd.f32 1.0, %v4110_v47  ;;  %v4140_v15 = vmul.f32 %v4124_v16, %v3724_v59  ;;  %5608 = vrcp.f32 %v3824_v22  ;;  %v4059_v30 = vmul.f32 1.442695, %v4033_v13  ;;  %v3707_v16 = vpop.f32.mrf.mxu0 }
0x107c   : > { %v3887_v38 = vadd.f32 -1.4531521, %v3871_v27  ;;  %v4031_v37 = vmul.f32 %v4015_v11, %v7718_v9  ;;  %v3813_v36 = vmul.f32 0.3275911, %v7804_v55  ;;  %v4125_v21 = vadd.f32 1.0, %v4109_v4 }
0x107d   : > { %v4139_v43 = vmul.f32 %v4123_v46, %v7748_v53  ;;  %v3937_v12 = vmul.f32 %v7743_v52, %v3921_v57  ;;  %v7816_v33 = vmul.f32 0.70710677, %v7801_v45  ;;  %v4034_v14 = vmul.f32 %v4018_v50, %v3794_v1 }
0x107e   : > { %v3903_v10 = vmul.f32 %v7791_v0, %v3887_v38  ;;  %v3829_v25 = vadd.f32 1.0, %v3813_v36  ;;  %v7819_v8 = vmul.f32 0.70710677, %v7807_v35  ;;  %v3725_v17 = vmul.f32 0.5, %v7621_v62 }
0x107f   : > { %v4142_v44 = vmul.f32 %v4126_v28, %v3726_v60  ;;  %v3795_v9 = vand.u32 2147483647, %v7816_v33  ;;  %v4153_v24 = vpack.c.bf16 %v4140_v15, %v4139_v43  ;;  %v4055_v53 = vmul.f32 1.442695, %v4031_v37 }
0x1080   : > { %v3919_v61 = vadd.f32 1.4214138, %v3903_v10  ;;  %v4016_v47 = vsub.f32 0.0, %v7782_v23  ;;  %5610 = vrcp.f32 %v3829_v25  ;;  %v4141_v13 = vmul.f32 %v4125_v21, %v3725_v17 }
0x1081   : > { %v3953_v19 = vadd.f32 -0.28449672, %v3937_v12  ;;  %v3811_v1 = vmul.f32 0.3275911, %v3795_v9  ;;  %5120 = vmatprep.mubr.bf16.mxu1 %v4153_v24  ;;  %5612 = vpow2.f32 %v4059_v30  ;;  %v4061_v54 = vmul.f32 1.442695, %v4034_v14 }
0x1082   : > { %v3935_v59 = vmul.f32 %v7791_v0, %v3919_v61  ;;  %v3798_v4 = vand.u32 2147483647, %v7819_v8  ;;  %v7829_v46 = vadd.f32 %v7593_v7, %v3707_v16  ;;  %v4154_v57 = vpack.c.bf16 %v4142_v44, %v4141_v13 }
0x1083   : > { %v3827_v11 = vadd.f32 1.0, %v3811_v1  ;;  %5614 = vpow2.f32 %v4055_v53  ;;  %v4032_v38 = vmul.f32 %v4016_v47, %v7782_v23  ;;  %v3969_v60 = vmul.f32 %v7743_v52, %v3953_v19 }
0x1084   : > { %v7826_v62 = vpop.eup %5606  ;;  %v3951_v27 = vadd.f32 -0.28449672, %v3935_v59  ;;  %v3814_v50 = vmul.f32 0.3275911, %v3798_v4  ;;  %v7835_v28 = vmul.f32 0.70710677, %v7829_v46  ;;  %5121 = vmatmul.mubr.bf16.gmra.mxu1 %v4154_v57 }
0x1085   : > { %v3874_v22 = vmul.f32 1.0614054, %v7826_v62  ;;  %5616 = vrcp.f32 %v3827_v11  ;;  %v4057_v23 = vmul.f32 1.442695, %v4032_v38  ;;  %v3985_v21 = vadd.f32 0.2548296, %v3969_v60 }
0x1086   : > { %v3830_v30 = vadd.f32 1.0, %v3814_v50  ;;  %v3967_v10 = vmul.f32 %v7791_v0, %v3951_v27  ;;  %5618 = vpow2.f32 %v4061_v54  ;;  %v3796_v7 = vand.u32 2147483647, %v7835_v28 }
0x1087   : > { %v3890_v15 = vadd.f32 -1.4531521, %v3874_v22  ;;  %v4019_v17 = vsub.f32 0.0, %v3795_v9  ;;  %v4021_v59 = vsub.f32 0.0, %v7804_v55  ;;  %v4001_v47 = vmul.f32 %v7743_v52, %v3985_v21 }
0x1088   : > { %v7839_v37 = vpop.eup %5608  ;;  %5620 = vrcp.f32 %v3830_v30  ;;  %v3812_v12 = vmul.f32 0.3275911, %v3796_v7  ;;  %v3983_v14 = vadd.f32 0.2548296, %v3967_v10  ;;  %v4022_v13 = vsub.f32 0.0, %v3798_v4 }
0x1089   : > { %v3906_v36 = vmul.f32 %v7826_v62, %v3890_v15  ;;  %v3872_v43 = vmul.f32 1.0614054, %v7839_v37  ;;  %5622 = vpow2.f32 %v4057_v23  ;;  %vm3759_vm15 = vcmp.lt.f32.partialorder %v7705_v26, 0.0 }
0x108a   : > { %v3828_v44 = vadd.f32 1.0, %v3812_v12  ;;  %v3999_v27 = vmul.f32 %v7791_v0, %v3983_v14  ;;  %v4035_v57 = vmul.f32 %v4019_v17, %v3795_v9  ;;  %v3777_v22 = vsel %vm3761_vm14, -1.0, %v5711_v63 }
0x108b   : > { %v3922_v61 = vadd.f32 1.4214138, %v3906_v36  ;;  %v3888_v25 = vadd.f32 -1.4531521, %v3872_v43  ;;  %v4037_v50 = vmul.f32 %v4021_v59, %v7804_v55  ;;  %vm3762_vm1 = vcmp.lt.f32.partialorder %v7761_v3, 0.0 }
0x108c   : > { %5624 = vrcp.f32 %v3828_v44  ;;  %v4038_v26 = vmul.f32 %v4022_v13, %v3798_v4  ;;  %v3775_v0 = vsel %vm3759_vm15, -1.0, %v5711_v63  ;;  %v4020_v36 = vsub.f32 0.0, %v3796_v7 }
0x108d   : > { %v3938_v24 = vmul.f32 %v7826_v62, %v3922_v61  ;;  %v7846_v53 = vpop.eup %5610  ;;  %v3904_v16 = vmul.f32 %v7839_v37, %v3888_v25  ;;  %v4063_v55 = vmul.f32 1.442695, %v4035_v57  ;;  %v3778_v61 = vsel %vm3762_vm1, -1.0, %v5711_v63 }
0x108e   : > { %v3877_v1 = vmul.f32 1.0614054, %v7846_v53  ;;  %v5613_v54 = vpop.eup %5612  ;;  %v4067_v4 = vmul.f32 1.442695, %v4037_v50  ;;  %v4069_v59 = vmul.f32 1.442695, %v4038_v26 }
0x108f   : > { %v3954_v19 = vadd.f32 -0.28449672, %v3938_v24  ;;  %v3920_v11 = vadd.f32 1.4214138, %v3904_v16  ;;  %v4081_v15 = vmul.f32 %v5613_v54, %v4001_v47  ;;  %5626 = vpow2.f32 %v4063_v55 }
0x1090   : > { %v3893_v38 = vadd.f32 -1.4531521, %v3877_v1  ;;  %v5615_v60 = vpop.eup %5614  ;;  %5628 = vpow2.f32 %v4067_v4  ;;  %vm3760_vm2 = vcmp.lt.f32.partialorder %v7775_v32, 0.0  ;;  %vm3766_vm3 = vcmp.lt.f32.partialorder %v7819_v8, 0.0 }
0x1091   : > { %v3970_v52 = vmul.f32 %v7826_v62, %v3954_v19  ;;  %v3936_v30 = vmul.f32 %v7839_v37, %v3920_v11  ;;  %v4079_v23 = vmul.f32 %v5615_v60, %v3999_v27  ;;  %v4097_v17 = vsub.f32 1.0, %v4081_v15 }
0x1092   : > { %v7860_v10 = vpop.eup %5616  ;;  %v3909_v34 = vmul.f32 %v7846_v53, %v3893_v38  ;;  %v4036_v19 = vmul.f32 %v4020_v36, %v3796_v7  ;;  %5630 = vpow2.f32 %v4069_v59  ;;  %vm3763_vm4 = vcmp.lt.f32.partialorder %v7816_v33, 0.0 }
0x1093   : > { %v3986_v9 = vadd.f32 0.2548296, %v3970_v52  ;;  %v3952_v21 = vadd.f32 -0.28449672, %v3936_v30  ;;  %v3875_v43 = vmul.f32 1.0614054, %v7860_v10  ;;  %v5619_v12 = vpop.eup %5618 }
0x1094   : > { %v3925_v14 = vadd.f32 1.4214138, %v3909_v34  ;;  %v4095_v1 = vsub.f32 1.0, %v4079_v23  ;;  %v4065_v26 = vmul.f32 1.442695, %v4036_v19  ;;  %vm3765_vm5 = vcmp.lt.f32.partialorder %v7798_v41, 0.0 }
0x1095   : > { %v4002_v3 = vmul.f32 %v7826_v62, %v3986_v9  ;;  %v7867_v25 = vpop.eup %5620  ;;  %v3968_v44 = vmul.f32 %v7839_v37, %v3952_v21  ;;  %v3891_v24 = vadd.f32 -1.4531521, %v3875_v43  ;;  %v4113_v21 = vmul.f32 %v4097_v17, %v3777_v22 }
0x1096   : > { %v3941_v16 = vmul.f32 %v7846_v53, %v3925_v14  ;;  %v3878_v13 = vmul.f32 1.0614054, %v7867_v25  ;;  %v5623_v52 = vpop.eup %5622  ;;  %v4111_v9 = vmul.f32 %v4095_v1, %v3775_v0  ;;  %5632 = vpow2.f32 %v4065_v26 }
0x1097   : > { %v4082_v47 = vmul.f32 %v5619_v12, %v4002_v3  ;;  %v3984_v54 = vadd.f32 0.2548296, %v3968_v44  ;;  %v3907_v27 = vmul.f32 %v7860_v10, %v3891_v24  ;;  %v4129_v59 = vadd.f32 1.0, %v4113_v21 }
0x1098   : > { %v3957_v11 = vadd.f32 -0.28449672, %v3941_v16  ;;  %v3894_v57 = vadd.f32 -1.4531521, %v3878_v13  ;;  %v4127_v4 = vadd.f32 1.0, %v4111_v9  ;;  %v3727_v22 = vmul.f32 0.5, %v7692_v29 }
0x1099   : > { %v4098_v62 = vsub.f32 1.0, %v4082_v47  ;;  %v4000_v38 = vmul.f32 %v7839_v37, %v3984_v54  ;;  %v3923_v50 = vadd.f32 1.4214138, %v3907_v27  ;;  %v7875_v60 = vpop.eup %5624  ;;  %v3776_v37 = vsel %vm3760_vm2, -1.0, %v5711_v63 }
0x109a   : > { %v3973_v7 = vmul.f32 %v7846_v53, %v3957_v11  ;;  %v3910_v30 = vmul.f32 %v7867_v25, %v3894_v57  ;;  %v3876_v23 = vmul.f32 1.0614054, %v7875_v60  ;;  %v3730_v17 = vmul.f32 0.5, %v7754_v58 }
0x109b   : > { %v4114_v15 = vmul.f32 %v4098_v62, %v3778_v61  ;;  %v4080_v34 = vmul.f32 %v5623_v52, %v4000_v38  ;;  %v3939_v36 = vmul.f32 %v7860_v10, %v3923_v50  ;;  %v3728_v16 = vmul.f32 0.5, %v7764_v20 }
0x109c   : > { %v3926_v32 = vadd.f32 1.4214138, %v3910_v30  ;;  %v3892_v12 = vadd.f32 -1.4531521, %v3876_v23  ;;  %v3989_v61 = vadd.f32 0.2548296, %v3973_v7  ;;  %v4143_v57 = vmul.f32 %v4127_v4, %v3727_v22  ;;  %v5627_v58 = vpop.eup %5626 }
0x109d   : > { %v4096_v43 = vsub.f32 1.0, %v4080_v34  ;;  %v3955_v55 = vadd.f32 -0.28449672, %v3939_v36  ;;  %v4130_v3 = vadd.f32 1.0, %v4114_v15  ;;  %v3729_v54 = vmul.f32 0.5, %v7661_v31  ;;  %v5629_v20 = vpop.eup %5628 }
0x109e   : > { %v3942_v14 = vmul.f32 %v7867_v25, %v3926_v32  ;;  %v3908_v24 = vmul.f32 %v7875_v60, %v3892_v12  ;;  %v4005_v62 = vmul.f32 %v7846_v53, %v3989_v61  ;;  %v3779_v12 = vsel %vm3763_vm4, -1.0, %v5711_v63 }
0x109f   : > { %v4112_v44 = vmul.f32 %v4096_v43, %v3776_v37  ;;  %v3971_v0 = vmul.f32 %v7860_v10, %v3955_v55  ;;  %v4146_v27 = vmul.f32 %v4130_v3, %v3730_v17  ;;  %v4145_v50 = vmul.f32 %v4129_v59, %v3729_v54  ;;  %v5631_v9 = vpop.eup %5630 }
0x10a0   : > { %v3958_v47 = vadd.f32 -0.28449672, %v3942_v14  ;;  %v3924_v1 = vadd.f32 1.4214138, %v3908_v24  ;;  %v4085_v31 = vmul.f32 %v5629_v20, %v4005_v62  ;;  %v3782_v55 = vsel %vm3766_vm3, -1.0, %v5711_v63 }
0x10a1   : > { %v4128_v13 = vadd.f32 1.0, %v4112_v44  ;;  %v3987_v19 = vadd.f32 0.2548296, %v3971_v0  ;;  %v4156_v53 = vpack.c.bf16 %v4146_v27, %v4145_v50  ;;  %v3781_v8 = vsel %vm3765_vm5, -1.0, %v5711_v63 }
0x10a2   : > { %v3974_v11 = vmul.f32 %v7867_v25, %v3958_v47  ;;  %v3940_v29 = vmul.f32 %v7875_v60, %v3924_v1  ;;  %v4101_v32 = vsub.f32 1.0, %v4085_v31  ;;  %vm3764_vm6 = vcmp.lt.f32.partialorder %v7835_v28, 0.0 }
0x10a3   : > { %v4144_v52 = vmul.f32 %v4128_v13, %v3728_v16  ;;  %v4003_v38 = vmul.f32 %v7860_v10, %v3987_v19  ;;  %v5633_v43 = vpop.eup %5632  ;;  %v3780_v41 = vsel %vm3764_vm6, -1.0, %v5711_v63  ;;  %v3731_v22 = vmul.f32 0.5, %v7801_v45 }
0x10a4   : > { %v3990_v15 = vadd.f32 0.2548296, %v3974_v11  ;;  %v3956_v30 = vadd.f32 -0.28449672, %v3940_v29  ;;  %v4117_v14 = vmul.f32 %v4101_v32, %v3781_v8  ;;  %v3732_v17 = vmul.f32 0.5, %v7829_v46 }
0x10a5   : > { %v4083_v7 = vmul.f32 %v5627_v58, %v4003_v38  ;;  %v4155_v26 = vpack.c.bf16 %v4144_v52, %v4143_v57  ;;  %v3733_v28 = vmul.f32 0.5, %v7789_v2 }
0x10a6   : > { %v4006_v34 = vmul.f32 %v7867_v25, %v3990_v15  ;;  %v3972_v36 = vmul.f32 %v7875_v60, %v3956_v30  ;;  %v4133_v59 = vadd.f32 1.0, %v4117_v14 }
0x10a7   : > { %5124 = vmatprep.mubr.bf16.mxu1 %v4155_v26  ;;  %v4099_v23 = vsub.f32 1.0, %v4083_v7 }
0x10a8   : > { %v4086_v10 = vmul.f32 %v5631_v9, %v4006_v34  ;;  %5125 = vmatmul.mubr.bf16.gmra.mxu1 %v4156_v53  ;;  %v3988_v21 = vadd.f32 0.2548296, %v3972_v36  ;;  %v4149_v63 = vmul.f32 %v4133_v59, %v3733_v28 }
0x10a9   : > { %v4115_v61 = vmul.f32 %v4099_v23, %v3779_v12 }
0x10aa   : > { %v4102_v37 = vsub.f32 1.0, %v4086_v10  ;;  %v4004_v25 = vmul.f32 %v7875_v60, %v3988_v21  ;;  %v3734_v60 = vmul.f32 0.5, %v7807_v35 }
0x10ab   : > { %v4131_v0 = vadd.f32 1.0, %v4115_v61 }
0x10ac   : > { %v4118_v3 = vmul.f32 %v4102_v37, %v3782_v55  ;;  %v4084_v33 = vmul.f32 %v5633_v43, %v4004_v25 }
0x10ad   : > { %v4147_v13 = vmul.f32 %v4131_v0, %v3731_v22 }
0x10ae   : > { %v4100_v4 = vsub.f32 1.0, %v4084_v33  ;;  %v4134_v44 = vadd.f32 1.0, %v4118_v3 }
0x10b0   : > { %v4116_v24 = vmul.f32 %v4100_v4, %v3780_v41  ;;  %v4150_v16 = vmul.f32 %v4134_v44, %v3734_v60 }
0x10b2   : > { %v4132_v47 = vadd.f32 1.0, %v4116_v24  ;;  %v4158_v54 = vpack.c.bf16 %v4150_v16, %v4149_v63 }
0x10b4   : > { %v4148_v19 = vmul.f32 %v4132_v47, %v3732_v17 }
0x10b6   : > { %v4157_v1 = vpack.c.bf16 %v4148_v19, %v4147_v13 }
0x10b8   : > { %5128 = vmatprep.mubr.bf16.mxu1 %v4157_v1 }
0x10b9   : > { %5129 = vmatmul.mubr.bf16.gmra.mxu1 %v4158_v54 }
0x10ba   : > { %5647 = shalt.err (!%p5644_p3)
}
0x10bb   : > { %s5648_s22 = scalar_lea.hbm %s7912_s16, 8192  ;;  %s5652_s1 = scalar_lea.hbm %s8031_s13, 16384 }
0x10bc   : > { %p5649_p4 = scmp.ne.s32.totalorder %s7912_s16, %s5648_s22  ;;  %p5653_p9 = scmp.lt.s32.totalorder %s7912_s16, %s8031_s13 }
0x10bd   : > { %p5654_p10 = scmp.lt.s32.totalorder %s5652_s1, %s5648_s22 }
0x10be   : > { %p5650_p7 = pnand %p5649_p4, %p5822_p5 }
0x10bf   : > { %p5655_p11 = por %p5654_p10, %p5653_p9 }
0x10c0   : > { %p5651_p8 = pneg %p5650_p7 }
0x10c2   : > { %p5656_p12 = pnand %p5655_p11, %p5651_p8 }
0x10c4   : > { %5659 = shalt.err (!%p5656_p12)
}
0x10c5   : > { %s5713_s2 = smov 128   ;;  %s8106_s24 = smov 8   ;;  %v4593_v2 = vld [vmem:[%s8029_s11] ss:$0 sm:$0xff]  ;;  %v8111_v14 = vld [vmem:[#allocation7_spill] sm:$0xff] }
0x10c6   : > { %5180 = dma.vmem_to_hbm [thread:$0]  (%p5822_p5), %s7915_s0, 8192, %s7912_s16, %s7919_s23, %s5713_s2, %s5713_s2, %s8106_s24   ;;  %v8109_v55 = vld [vmem:[#allocation6_spill] sm:$0xff]  ;;  %v8112_v0 = vld [vmem:[#allocation11_spill] sm:$0xff] }
0x10c7   : > { %s8107_s3 = sshll.u32 %s5834_s20, 7  ;;  %v8113_v60 = vld [vmem:[#allocation10_spill] sm:$0xff] }
0x10c8   : > { %s7951_s1 = scalar_lea.vmem %s8030_s12, %s8107_s3 }
0x1137   : > { %v5118_v45 = vpop.f32.mrf.mxu1 }
0x1138   : > { %v4273_v35 = vadd.f32 %v5118_v45, %v4593_v2 }
0x1139   : > { %v4264_v46 = vpop.f32.mrf.mxu1 }
0x113a   : > { %v4329_v27 = vadd.f32 %v4273_v35, %v7308_v6  ;;  %v4265_v62 = vadd.f32 %v4593_v2, %v4264_v46 }
0x113b   : > { %v5119_v11 = vpop.f32.mrf.mxu1 }
0x113c   : > { %4345 = vst.msk [vmem:[%s7951_s1 + $0x10] sm:$0xff] %vm471_vm0, %v4329_v27  ;;  %v4327_v57 = vadd.f32 %v4265_v62, %v7305_v39  ;;  %v4276_v52 = vadd.f32 %v5119_v11, %v4593_v2 }
0x113d   : > { %v4267_v38 = vpop.f32.mrf.mxu1 }
0x113e   : > { %4343 = vst.msk [vmem:[%s7951_s1] sm:$0xff] %vm471_vm0, %v4327_v57  ;;  %v4330_v29 = vadd.f32 %v4276_v52, %v7318_v56  ;;  %v4268_v58 = vadd.f32 %v4593_v2, %v4267_v38 }
0x1140   : > { %4346 = vst.msk [vmem:[%s7951_s1 + $0x18] sm:$0xff] %vm471_vm0, %v4330_v29  ;;  %v4328_v6 = vadd.f32 %v4268_v58, %v7315_v48 }
0x1142   : > { %4344 = vst.msk [vmem:[%s7951_s1 + $0x8] sm:$0xff] %vm471_vm0, %v4328_v6 }
0x1144   : > { %v5122_v50 = vpop.f32.mrf.mxu1 }
0x1145   : > { %v4289_v15 = vadd.f32 %v5122_v50, %v4593_v2 }
0x1146   : > { %v4280_v20 = vpop.f32.mrf.mxu1 }
0x1147   : > { %v4333_v39 = vadd.f32 %v4289_v15, %v7337_v18  ;;  %v4281_v7 = vadd.f32 %v4593_v2, %v4280_v20 }
0x1148   : > { %v5123_v30 = vpop.f32.mrf.mxu1 }
0x1149   : > { %4349 = vst.msk [vmem:[%s7951_s1 + $0x30] sm:$0xff] %vm471_vm0, %v4333_v39  ;;  %v4331_v56 = vadd.f32 %v4281_v7, %v7327_v5  ;;  %v4292_v26 = vadd.f32 %v5123_v30, %v4593_v2 }
0x114a   : > { %v4283_v9 = vpop.f32.mrf.mxu1 }
0x114b   : > { %4347 = vst.msk [vmem:[%s7951_s1 + $0x20] sm:$0xff] %vm471_vm0, %v4331_v56  ;;  %v4334_v48 = vadd.f32 %v4292_v26, %v7340_v49  ;;  %v4284_v31 = vadd.f32 %v4593_v2, %v4283_v9 }
0x114d   : > { %4350 = vst.msk [vmem:[%s7951_s1 + $0x38] sm:$0xff] %vm471_vm0, %v4334_v48  ;;  %v4332_v18 = vadd.f32 %v4284_v31, %v7334_v40  ;;  %v8108_v40 = vld [vmem:[#allocation8_spill] sm:$0xff] }
0x114f   : > { %4348 = vst.msk [vmem:[%s7951_s1 + $0x28] sm:$0xff] %vm471_vm0, %v4332_v18 }
0x1168   : > { %v5126_v34 = vpop.f32.mrf.mxu1 }
0x1169   : > { %v4305_v53 = vadd.f32 %v5126_v34, %v4593_v2 }
0x116a   : > { %v4296_v36 = vpop.f32.mrf.mxu1 }
0x116b   : > { %v4337_v5 = vadd.f32 %v4305_v53, %v7361_v51  ;;  %v4297_v10 = vadd.f32 %v4593_v2, %v4296_v36 }
0x116c   : > { %v5127_v23 = vpop.f32.mrf.mxu1 }
0x116d   : > { %4353 = vst.msk [vmem:[%s7951_s1 + $0x50] sm:$0xff] %vm471_vm0, %v4337_v5  ;;  %v4335_v49 = vadd.f32 %v4297_v10, %v7351_v42  ;;  %v4308_v21 = vadd.f32 %v5127_v23, %v4593_v2  ;;  %v8110_v42 = vld [vmem:[#allocation9_spill] sm:$0xff] }
0x116e   : > { %v4299_v32 = vpop.f32.mrf.mxu1 }
0x116f   : > { %4351 = vst.msk [vmem:[%s7951_s1 + $0x40] sm:$0xff] %vm471_vm0, %v4335_v49  ;;  %v4338_v37 = vadd.f32 %v4308_v21, %v8108_v40  ;;  %v4300_v43 = vadd.f32 %v4593_v2, %v4299_v32 }
0x1171   : > { %4354 = vst.msk [vmem:[%s7951_s1 + $0x58] sm:$0xff] %vm471_vm0, %v4338_v37  ;;  %v4336_v51 = vadd.f32 %v4300_v43, %v8109_v55 }
0x1173   : > { %4352 = vst.msk [vmem:[%s7951_s1 + $0x48] sm:$0xff] %vm471_vm0, %v4336_v51 }
0x1179   : > { %v5130_v25 = vpop.f32.mrf.mxu1 }
0x117a   : > { %v4321_v12 = vadd.f32 %v5130_v25, %v4593_v2 }
0x117b   : > { %v4312_v3 = vpop.f32.mrf.mxu1 }
0x117c   : > { %v4341_v8 = vadd.f32 %v4321_v12, %v8110_v42  ;;  %v4313_v61 = vadd.f32 %v4593_v2, %v4312_v3 }
0x117d   : > { %v5131_v33 = vpop.f32.mrf.mxu1 }
0x117e   : > { %4357 = vst.msk [vmem:[%s7951_s1 + $0x70] sm:$0xff] %vm471_vm0, %v4341_v8  ;;  %v4339_v4 = vadd.f32 %v4313_v61, %v8111_v14  ;;  %v4324_v44 = vadd.f32 %v5131_v33, %v4593_v2 }
0x117f   : > { %v4315_v41 = vpop.f32.mrf.mxu1 }
0x1180   : > { %4355 = vst.msk [vmem:[%s7951_s1 + $0x60] sm:$0xff] %vm471_vm0, %v4339_v4  ;;  %v4342_v24 = vadd.f32 %v4324_v44, %v8112_v0  ;;  %v4316_v59 = vadd.f32 %v4593_v2, %v4315_v41 }
0x1182   : > { %4358 = vst.msk [vmem:[%s7951_s1 + $0x78] sm:$0xff] %vm471_vm0, %v4342_v24  ;;  %v4340_v22 = vadd.f32 %v4316_v59, %v8113_v60 }
0x1184   : > { %4356 = vst.msk [vmem:[%s7951_s1 + $0x68] sm:$0xff] %vm471_vm0, %v4340_v22 }
0x1185 PF: > { %p5186_p5 = scmp.ge.s32.totalorder %s5694_s28, 2  ;;  %s4404_s18 = sand.u32 1, %s5682_s25  }
0x1186   : > { %s4405_s20 = scalar_lea.sflag [#allocation4], %s4404_s18 }
0x1187   : > { %p5183_p13 = pnand %p5186_p5, %p5826_p6 }
0x1189   : > { %p5184_p0 = pneg %p5183_p13 }
0x118b   : > { %5677 = dma.done.wait (%p5184_p0), %s4405_s20, 8192  }
0x118c   : > { %5679 = vsyncadd (%p5184_p0), %s4405_s20, 4294959104  ;;  %p24_p1 = scmp.ge.s32.totalorder %s5809_s14, 4   ;;  %s8114_s25 = smov %s5686_s26 }
0x118d   : > { %s8115_s26 = smov %s5690_s27  ;;  %s8116_s27 = smov %s5820_s17 }
0x118e   : > { %s8117_s28 = smov %s5809_s14  ;;  %26 = sbr.rel (!%p24_p1) target bundleno = 8 (0x8), region = 118 }
0x1193   :  { %4410 = vsyncpa [#allocation4], 1 }
0x1194   :  { %4412 = vsyncpa [#allocation4 + $0x1], 1 }

</bundles_post_ra>
